<compile_context>
chip_gen: v7x
topology: tpu7x:2x2x1
jax: 0.10.0
libtpu: 0.0.40
codegen_flags: <defaults>
</compile_context>

<pallas_src>
import functools

import jax
import jax.numpy as jnp
from jax import lax
from jax.experimental import pallas as pl
from jax.experimental.pallas import tpu as pltpu

MARGIN = 1.0
SAFE_RADIUS = 4.0


# --------------------------------------------------------------------------- #
# Pallas kernel: grid = (batch, M_tiles); one sample per b, online max over m.
# --------------------------------------------------------------------------- #
def _margin_kernel(f1_ref, f2_ref, fall_ref, p1r_ref, p2r_ref, p2c_ref, apc_ref,
                   out_ref, run_max_ref, pos_ref, *, margin, safe_radius):
    m = pl.program_id(1)
    eps = 1e-12  # F.normalize default eps

    def l2_normalize(x):                       # x: (C, K); per-column (dim 0) norm
        nrm = jnp.sqrt(jnp.sum(x * x, axis=0, keepdims=True))
        return x / jnp.maximum(nrm, eps)

    # descriptors2 at the warped positions; needed for every M tile.
    d2 = l2_normalize(f2_ref[0].astype(jnp.float32))               # (C, N)
    d2b = d2.astype(jnp.bfloat16)

    # ---- once per sample (first M tile): positives + N x N image-2 mining ---- #
    @pl.when(m == 0)
    def _():
        d1 = l2_normalize(f1_ref[0].astype(jnp.float32))           # (C, N)
        # positive distance (exact f32): 2 - 2 <d1_i, d2_i>  ->  (1, N)
        pos_ref[...] = 2.0 - 2.0 * jnp.sum(d1 * d2, axis=0, keepdims=True)

        # sim2[j, i] = <d2_j, d1_i>; candidates j on sublanes, queries i on lanes.
        sim2 = lax.dot_general(d2b, d1.astype(jnp.bfloat16),
                               (((0,), (0,)), ((), ())),
                               preferred_element_type=jnp.float32)  # (N, N)
        p2c = p2c_ref[0]                      # (N, 2) image-2 positions (column form)
        p2r = p2r_ref[0]                      # (2, N) image-2 positions (row form)
        pd = jnp.maximum(jnp.abs(p2c[:, 0:1] - p2r[0:1, :]),
                         jnp.abs(p2c[:, 1:2] - p2r[1:2, :]))        # (N, N) Chebyshev
        # min_j(2 - 2 s + 10*in_radius) == 2 - 2 * max_j(s - 5*in_radius)
        adj = jnp.where(pd > safe_radius, sim2, sim2 - 5.0)
        run_max_ref[...] = jnp.max(adj, axis=0, keepdims=True)      # (1, N)

    # ---- every M tile: mining against this tile of all image-1 positions ---- #
    dall = l2_normalize(fall_ref[0].astype(jnp.float32))            # (C, Mt)
    # sim1[j, i] = <dall_j, d2_i>; tile positions j on sublanes, queries i on lanes.
    sim1 = lax.dot_general(dall.astype(jnp.bfloat16), d2b,
                           (((0,), (0,)), ((), ())),
                           preferred_element_type=jnp.float32)      # (Mt, N)
    apc = apc_ref[...]                        # (Mt, 2) grid positions of this tile
    p1r = p1r_ref[0]                          # (2, N)  selected image-1 positions
    pd = jnp.maximum(jnp.abs(apc[:, 0:1] - p1r[0:1, :]),
                     jnp.abs(apc[:, 1:2] - p1r[1:2, :]))            # (Mt, N)
    adj = jnp.where(pd > safe_radius, sim1, sim1 - 5.0)
    run_max_ref[...] = jnp.maximum(run_max_ref[...],
                                   jnp.max(adj, axis=0, keepdims=True))

    # ---- last M tile: hinge + per-sample means, one small concatenated store ---- #
    @pl.when(m == pl.num_programs(1) - 1)
    def _():
        pos = pos_ref[...]                                          # (1, N)
        neg = 2.0 - 2.0 * run_max_ref[...]                          # (1, N)
        hinge = jnp.maximum(margin + pos - neg, 0.0)
        out_ref[0] = jnp.concatenate(
            [jnp.mean(hinge, axis=1, keepdims=True),
             jnp.mean(pos, axis=1, keepdims=True),
             jnp.mean(neg, axis=1, keepdims=True)], axis=1)         # (1, 3)


def margin_loss_pallas(f1_sel, f2_sel, f1_all, p1r, p2r, p2c, allpos_col,
                       *, margin=MARGIN, safe_radius=SAFE_RADIUS, m_tile=None):
    B, C, N = f1_sel.shape
    M = f1_all.shape[2]
    if m_tile is None:
        m_tile = 512 if (M > 512 and M % 512 == 0) else M
    assert M % m_tile == 0, "m_tile must divide H*W"
    km = M // m_tile

    kernel = functools.partial(_margin_kernel, margin=margin, safe_radius=safe_radius)

    cost = pl.CostEstimate(
        flops=int(2 * B * C * N * (N + M) + 10 * B * N * (N + M)),
        transcendentals=int(B * (2 * N + M)),
        bytes_accessed=int(4 * (f1_sel.size + f2_sel.size + f1_all.size
                                + p1r.size + p2r.size + p2c.size
                                + allpos_col.size + B * 3)))

    return pl.pallas_call(
        kernel,
        out_shape=jax.ShapeDtypeStruct((B, 1, 3), jnp.float32),
        grid=(B, km),
        in_specs=[
            pl.BlockSpec((1, C, N), lambda b, m: (b, 0, 0)),        # f1 at ids
            pl.BlockSpec((1, C, N), lambda b, m: (b, 0, 0)),        # f2 at warped pos
            pl.BlockSpec((1, C, m_tile), lambda b, m: (b, 0, m)),   # all f1 (M-tiled)
            pl.BlockSpec((1, 2, N), lambda b, m: (b, 0, 0)),        # pos1 rows
            pl.BlockSpec((1, 2, N), lambda b, m: (b, 0, 0)),        # pos2 rows
            pl.BlockSpec((1, N, 2), lambda b, m: (b, 0, 0)),        # pos2 columns
            pl.BlockSpec((m_tile, 2), lambda b, m: (m, 0)),         # shared grid pos
        ],
        out_specs=pl.BlockSpec((1, 1, 3), lambda b, m: (b, 0, 0)),
        scratch_shapes=[pltpu.VMEM((1, N), jnp.float32),            # running max(sim-pen)
                        pltpu.VMEM((1, N), jnp.float32)],           # positive distance
        compiler_params=pltpu.CompilerParams(
            dimension_semantics=("parallel", "arbitrary")),
        cost_estimate=cost,
    )(f1_sel, f2_sel, f1_all, p1r, p2r, p2c, allpos_col)


# --------------------------------------------------------------------------- #
# Glue (matches the torch helpers the module relies on).
# --------------------------------------------------------------------------- #
def grid_positions(h, w):
    rows = jnp.arange(h, dtype=jnp.float32)
    cols = jnp.arange(w, dtype=jnp.float32)
    rr, cc = jnp.meshgrid(rows, cols, indexing="ij")
    return jnp.stack([rr.reshape(-1), cc.reshape(-1)], axis=0)  # (2, h*w)


def warp(pos1, h, w, trans_coords):
    # TODO(synk): warp() (with opt.perturb) is not defined in the reference module; we
    # use the provided per-pixel transformed coordinates directly and keep in-bounds.
    pos2 = trans_coords.reshape(2, h * w).astype(jnp.float32)
    valid = ((pos2[0] >= 0) & (pos2[0] <= h - 1) &
             (pos2[1] >= 0) & (pos2[1] <= w - 1))
    # Example inputs are constructed so every position is valid -> static shape.
    ids = jnp.nonzero(valid, size=h * w)[0]
    return pos1[:, ids], pos2[:, ids], ids


def margin_loss_forward(img1_1, img1_2, transformed_coordinates,
                        margin=MARGIN, safe_radius=SAFE_RADIUS, m_tile=None):
    # TODO(synk): only the default kl=False branch is implemented (no KL distillation).
    B, C, H, W = img1_1.shape
    M = H * W
    all_pos = grid_positions(H, W)          # (2, M), shared across the batch
    allpos_col = all_pos.T                  # (M, 2), passed once (b-independent spec)

    f1_sel_b, f2_sel_b, f1_all_b = [], [], []
    p1r_b, p2r_b, p2c_b = [], [], []
    for b in range(B):
        df1 = img1_1[b].reshape(C, M)
        df2 = img1_2[b].reshape(C, M)
        _, pos2, ids = warp(all_pos, H, W, transformed_coordinates[b])
        # TODO(synk): the torch code skips samples with ids.size(0) < 128 (dynamic
        # shapes); example inputs keep every position valid, so all samples count.
        fmap_pos1 = all_pos[:, ids]          # (2, N)
        fmap_pos2 = jnp.round(pos2)          # (2, N) rounded coords in image 2
        lin2 = (fmap_pos2[0].astype(jnp.int32) * W + fmap_pos2[1].astype(jnp.int32))
        f1_sel_b.append(df1[:, ids])         # (C, N) channels on sublanes
        f2_sel_b.append(df2[:, lin2])        # (C, N)
        f1_all_b.append(df1)                 # (C, M)
        p1r_b.append(fmap_pos1)              # (2, N)
        p2r_b.append(fmap_pos2)              # (2, N)
        p2c_b.append(fmap_pos2.T)            # (N, 2)

    stack = lambda xs: jnp.stack(xs).astype(jnp.float32)
    out = margin_loss_pallas(stack(f1_sel_b), stack(f2_sel_b), stack(f1_all_b),
                             stack(p1r_b), stack(p2r_b), stack(p2c_b),
                             allpos_col.astype(jnp.float32),
                             margin=margin, safe_radius=safe_radius, m_tile=m_tile)

    # out[b, 0, :] = [mean hinge, mean positive_distance, mean mined negative distance]
    n_valid = B
    loss = jnp.sum(out[:, 0, 0]) / n_valid
    pos_dist = jnp.sum(out[:, 0, 1]) / n_valid
    neg_dist = jnp.sum(out[:, 0, 2]) / n_valid
    return loss, pos_dist, neg_dist


# --------------------------------------------------------------------------- #
# Pure-JAX f32 reference (mirrors the torch module) for a numerical self-check.
# --------------------------------------------------------------------------- #
def _margin_loss_reference(img1_1, img1_2, transformed_coordinates,
                           margin=MARGIN, safe_radius=SAFE_RADIUS):
    B, C, H, W = img1_1.shape
    M = H * W
    all_pos = grid_positions(H, W)
    loss = pos_dist = neg_dist = 0.0
    for b in range(B):
        df1 = img1_1[b].reshape(C, M)
        df2 = img1_2[b].reshape(C, M)
        all_d1 = df1 / jnp.maximum(
            jnp.sqrt(jnp.sum(df1 * df1, axis=0, keepdims=True)), 1e-12)
        _, pos2, ids = warp(all_pos, H, W, transformed_coordinates[b])
        fmap_pos1 = all_pos[:, ids]
        d1 = all_d1[:, ids]
        fmap_pos2 = jnp.round(pos2)
        lin2 = fmap_pos2[0].astype(jnp.int32) * W + fmap_pos2[1].astype(jnp.int32)
        f2 = df2[:, lin2]
        d2 = f2 / jnp.maximum(jnp.sqrt(jnp.sum(f2 * f2, axis=0, keepdims=True)), 1e-12)
        pos_d = 2.0 - 2.0 * jnp.sum(d1 * d2, axis=0)
        pd2 = jnp.max(jnp.abs(fmap_pos2[:, :, None] - fmap_pos2[:, None, :]), axis=0)
        dm2 = 2.0 - 2.0 * (d1.T @ d2)
        neg2 = jnp.min(dm2 + jnp.where(pd2 > safe_radius, 0.0, 10.0), axis=1)
        pd1 = jnp.max(jnp.abs(fmap_pos1[:, :, None] - all_pos[:, None, :]), axis=0)
        dm1 = 2.0 - 2.0 * (d2.T @ all_d1)
        neg1 = jnp.min(dm1 + jnp.where(pd1 > safe_radius, 0.0, 10.0), axis=1)
        neg = jnp.minimum(neg1, neg2)
        loss = loss + jnp.mean(jnp.maximum(margin + pos_d - neg, 0.0))
        pos_dist = pos_dist + jnp.mean(pos_d)
        neg_dist = neg_dist + jnp.mean(neg)
    return loss / B, pos_dist / B, neg_dist / B


if __name__ == "__main__":
    key = jax.random.PRNGKey(0)
    B, C, H, W = 2, 32, 16, 16
    k1, k2, k3 = jax.random.split(key, 3)

    img1_1 = jax.random.normal(k1, (B, C, H, W), dtype=jnp.float32)
    img1_2 = jax.random.normal(k2, (B, C, H, W), dtype=jnp.float32)

    # transformed_coordinates[b] : (2, H, W) -> target (row, col) in image 2 for each
    # pixel of image 1.  Identity grid + small jitter, clipped so all warps are valid.
    base = grid_positions(H, W).reshape(2, H, W)
    jitter = jax.random.uniform(k3, (B, 2, H, W), minval=-0.3, maxval=0.3,
                                dtype=jnp.float32)
    transformed_coordinates = jnp.clip(base[None] + jitter, 0.0, float(H - 1))

    # m_tile=128 -> 2 M-tiles per sample, exercising the online-max accumulation path.
    loss, pos_dist, neg_dist = margin_loss_forward(
        img1_1, img1_2, transformed_coordinates, m_tile=128)
    jax.block_until_ready((loss, pos_dist, neg_dist))

    # Numerical self-check (tolerance covers the bf16 MXU matmuls).
    ref = _margin_loss_reference(img1_1, img1_2, transformed_coordinates)
    for name, got, want in zip(("loss", "pos_dist", "neg_dist"),
                               (loss, pos_dist, neg_dist), ref):
        if not bool(jnp.allclose(got, want, rtol=5e-2, atol=5e-2)):
            raise AssertionError(f"{name}: kernel={float(got)} reference={float(want)}")
    print("KERNEL_OK")
</pallas_src>

<mosaic_0001>
module attributes {stable_mosaic.version = 11 : i64} {
  func.func @_margin_kernel(%arg0: i32, %arg1: i32, %arg2: memref<1x32x256xf32, #tpu.memory_space<vmem>>, %arg3: memref<1x32x256xf32, #tpu.memory_space<vmem>>, %arg4: memref<1x32x128xf32, #tpu.memory_space<vmem>>, %arg5: memref<1x2x256xf32, #tpu.memory_space<vmem>>, %arg6: memref<1x2x256xf32, #tpu.memory_space<vmem>>, %arg7: memref<1x256x2xf32, #tpu.memory_space<vmem>>, %arg8: memref<128x2xf32, #tpu.memory_space<vmem>>, %arg9: memref<1x1x3xf32, #tpu.memory_space<vmem>>, %arg10: memref<1x256xf32, #tpu.memory_space<vmem>>, %arg11: memref<1x256xf32, #tpu.memory_space<vmem>>) attributes {dimension_semantics = [#tpu.dimension_semantics<parallel>, #tpu.dimension_semantics<arbitrary>], iteration_bounds = array<i64: 2, 2>, scalar_prefetch = 0 : i64, scratch_operands = 2 : i64, tpu.core_type = #tpu.core_type<tc>, window_params = [{transform_indices = @transform_0, window_bounds = array<i64: 1, 32, 256>}, {transform_indices = @transform_1, window_bounds = array<i64: 1, 32, 256>}, {transform_indices = @transform_2, window_bounds = array<i64: 1, 32, 128>}, {transform_indices = @transform_3, window_bounds = array<i64: 1, 2, 256>}, {transform_indices = @transform_4, window_bounds = array<i64: 1, 2, 256>}, {transform_indices = @transform_5, window_bounds = array<i64: 1, 256, 2>}, {transform_indices = @transform_6, window_bounds = array<i64: 128, 2>}, {transform_indices = @transform_7, window_bounds = array<i64: 1, 1, 3>}]} {
    %c0 = arith.constant 0 : index
    %c0_0 = arith.constant 0 : index
    %c0_1 = arith.constant 0 : index
    %0 = vector.load %arg3[%c0, %c0_0, %c0_1] : memref<1x32x256xf32, #tpu.memory_space<vmem>>, vector<1x32x256xf32>
    %1 = vector.shape_cast %0 : vector<1x32x256xf32> to vector<32x256xf32>
    %2 = arith.mulf %1, %1 : vector<32x256xf32>
    %cst = arith.constant dense<0.000000e+00> : vector<256xf32>
    %3 = vector.multi_reduction <add>, %2, %cst [0] : vector<32x256xf32> to vector<256xf32>
    %4 = vector.shape_cast %3 : vector<256xf32> to vector<1x256xf32>
    %5 = math.sqrt %4 : vector<1x256xf32>
    %cst_2 = arith.constant 9.99999996E-13 : f32
    %6 = vector.broadcast %cst_2 : f32 to vector<1x256xf32>
    %7 = arith.maximumf %5, %6 : vector<1x256xf32>
    %8 = vector.broadcast %7 : vector<1x256xf32> to vector<32x256xf32>
    %9 = arith.divf %1, %8 : vector<32x256xf32>
    %10 = arith.truncf %9 : vector<32x256xf32> to vector<32x256xbf16>
    %c0_i32 = arith.constant 0 : i32
    %11 = arith.cmpi eq, %arg1, %c0_i32 : i32
    %12 = arith.extui %11 : i1 to i32
    %c0_i32_3 = arith.constant 0 : i32
    %13 = arith.cmpi ne, %12, %c0_i32_3 : i32
    scf.if %13 {
      %c0_23 = arith.constant 0 : index
      %c0_24 = arith.constant 0 : index
      %c0_25 = arith.constant 0 : index
      %55 = vector.load %arg2[%c0_23, %c0_24, %c0_25] : memref<1x32x256xf32, #tpu.memory_space<vmem>>, vector<1x32x256xf32>
      %56 = vector.shape_cast %55 : vector<1x32x256xf32> to vector<32x256xf32>
      %57 = arith.mulf %56, %56 : vector<32x256xf32>
      %cst_26 = arith.constant dense<0.000000e+00> : vector<256xf32>
      %58 = vector.multi_reduction <add>, %57, %cst_26 [0] : vector<32x256xf32> to vector<256xf32>
      %59 = vector.shape_cast %58 : vector<256xf32> to vector<1x256xf32>
      %60 = math.sqrt %59 : vector<1x256xf32>
      %cst_27 = arith.constant 9.99999996E-13 : f32
      %61 = vector.broadcast %cst_27 : f32 to vector<1x256xf32>
      %62 = arith.maximumf %60, %61 : vector<1x256xf32>
      %63 = vector.broadcast %62 : vector<1x256xf32> to vector<32x256xf32>
      %64 = arith.divf %56, %63 : vector<32x256xf32>
      %65 = arith.mulf %64, %9 : vector<32x256xf32>
      %cst_28 = arith.constant dense<0.000000e+00> : vector<256xf32>
      %66 = vector.multi_reduction <add>, %65, %cst_28 [0] : vector<32x256xf32> to vector<256xf32>
      %67 = vector.shape_cast %66 : vector<256xf32> to vector<1x256xf32>
      %cst_29 = arith.constant 2.000000e+00 : f32
      %68 = vector.broadcast %cst_29 : f32 to vector<1x256xf32>
      %69 = arith.mulf %68, %67 : vector<1x256xf32>
      %cst_30 = arith.constant 2.000000e+00 : f32
      %70 = vector.broadcast %cst_30 : f32 to vector<1x256xf32>
      %71 = arith.subf %70, %69 : vector<1x256xf32>
      %c0_31 = arith.constant 0 : index
      %c0_32 = arith.constant 0 : index
      %72 = vector.load %arg11[%c0_31, %c0_32] : memref<1x256xf32, #tpu.memory_space<vmem>>, vector<1x256xf32>
      tpu.vector_store %arg11[%c0_31, %c0_32], %71 {strides = array<i32>} : memref<1x256xf32, #tpu.memory_space<vmem>>, vector<1x256xf32>,
      %73 = arith.truncf %64 : vector<32x256xf32> to vector<32x256xbf16>
      %cst_33 = arith.constant dense<0.000000e+00> : vector<256x256xf32>
      %74 = tpu.matmul %10, %73, %cst_33 {dimension_numbers = #tpu.dot_dimension_numbers<[0], [0], [1], [1], [0, 1, 1, 1], [], []>} : vector<32x256xbf16>, vector<32x256xbf16>, vector<256x256xf32> -> vector<256x256xf32>
      %c0_34 = arith.constant 0 : index
      %c0_35 = arith.constant 0 : index
      %c0_36 = arith.constant 0 : index
      %75 = vector.load %arg7[%c0_34, %c0_35, %c0_36] : memref<1x256x2xf32, #tpu.memory_space<vmem>>, vector<1x256x2xf32>
      %76 = vector.shape_cast %75 : vector<1x256x2xf32> to vector<256x2xf32>
      %c0_37 = arith.constant 0 : index
      %c0_38 = arith.constant 0 : index
      %c0_39 = arith.constant 0 : index
      %77 = vector.load %arg6[%c0_37, %c0_38, %c0_39] : memref<1x2x256xf32, #tpu.memory_space<vmem>>, vector<1x2x256xf32>
      %78 = vector.shape_cast %77 : vector<1x2x256xf32> to vector<2x256xf32>
      %79 = vector.extract_strided_slice %76 {offsets = [0, 0], sizes = [256, 1], strides = [1, 1]} : vector<256x2xf32> to vector<256x1xf32>
      %80 = vector.extract_strided_slice %78 {offsets = [0, 0], sizes = [1, 256], strides = [1, 1]} : vector<2x256xf32> to vector<1x256xf32>
      %81 = vector.broadcast %79 : vector<256x1xf32> to vector<256x256xf32>
      %82 = vector.broadcast %80 : vector<1x256xf32> to vector<256x256xf32>
      %83 = arith.subf %81, %82 : vector<256x256xf32>
      %84 = math.absf %83 : vector<256x256xf32>
      %85 = vector.extract_strided_slice %76 {offsets = [0, 1], sizes = [256, 1], strides = [1, 1]} : vector<256x2xf32> to vector<256x1xf32>
      %86 = vector.extract_strided_slice %78 {offsets = [1, 0], sizes = [1, 256], strides = [1, 1]} : vector<2x256xf32> to vector<1x256xf32>
      %87 = vector.broadcast %85 : vector<256x1xf32> to vector<256x256xf32>
      %88 = vector.broadcast %86 : vector<1x256xf32> to vector<256x256xf32>
      %89 = arith.subf %87, %88 : vector<256x256xf32>
      %90 = math.absf %89 : vector<256x256xf32>
      %91 = arith.maximumf %84, %90 : vector<256x256xf32>
      %cst_40 = arith.constant 4.000000e+00 : f32
      %92 = vector.broadcast %cst_40 : f32 to vector<256x256xf32>
      %93 = arith.cmpf ogt, %91, %92 : vector<256x256xf32>
      %cst_41 = arith.constant 5.000000e+00 : f32
      %94 = vector.broadcast %cst_41 : f32 to vector<256x256xf32>
      %95 = arith.subf %74, %94 : vector<256x256xf32>
      %96 = arith.select %93, %74, %95 : vector<256x256xi1>, vector<256x256xf32>
      %cst_42 = arith.constant dense<0xFF800000> : vector<256xf32>
      %97 = vector.multi_reduction <maximumf>, %96, %cst_42 [0] : vector<256x256xf32> to vector<256xf32>
      %98 = vector.shape_cast %97 : vector<256xf32> to vector<1x256xf32>
      %c0_43 = arith.constant 0 : index
      %c0_44 = arith.constant 0 : index
      %99 = vector.load %arg10[%c0_43, %c0_44] : memref<1x256xf32, #tpu.memory_space<vmem>>, vector<1x256xf32>
      tpu.vector_store %arg10[%c0_43, %c0_44], %98 {strides = array<i32>} : memref<1x256xf32, #tpu.memory_space<vmem>>, vector<1x256xf32>,
    } else {
    }
    %c0_4 = arith.constant 0 : index
    %c0_5 = arith.constant 0 : index
    %c0_6 = arith.constant 0 : index
    %14 = vector.load %arg4[%c0_4, %c0_5, %c0_6] : memref<1x32x128xf32, #tpu.memory_space<vmem>>, vector<1x32x128xf32>
    %15 = vector.shape_cast %14 : vector<1x32x128xf32> to vector<32x128xf32>
    %16 = arith.mulf %15, %15 : vector<32x128xf32>
    %cst_7 = arith.constant dense<0.000000e+00> : vector<128xf32>
    %17 = vector.multi_reduction <add>, %16, %cst_7 [0] : vector<32x128xf32> to vector<128xf32>
    %18 = vector.shape_cast %17 : vector<128xf32> to vector<1x128xf32>
    %19 = math.sqrt %18 : vector<1x128xf32>
    %cst_8 = arith.constant 9.99999996E-13 : f32
    %20 = vector.broadcast %cst_8 : f32 to vector<1x128xf32>
    %21 = arith.maximumf %19, %20 : vector<1x128xf32>
    %22 = vector.broadcast %21 : vector<1x128xf32> to vector<32x128xf32>
    %23 = arith.divf %15, %22 : vector<32x128xf32>
    %24 = arith.truncf %23 : vector<32x128xf32> to vector<32x128xbf16>
    %cst_9 = arith.constant dense<0.000000e+00> : vector<128x256xf32>
    %25 = tpu.matmul %24, %10, %cst_9 {dimension_numbers = #tpu.dot_dimension_numbers<[0], [0], [1], [1], [0, 1, 1, 1], [], []>} : vector<32x128xbf16>, vector<32x256xbf16>, vector<128x256xf32> -> vector<128x256xf32>
    %c0_10 = arith.constant 0 : index
    %c0_11 = arith.constant 0 : index
    %26 = vector.load %arg8[%c0_10, %c0_11] : memref<128x2xf32, #tpu.memory_space<vmem>>, vector<128x2xf32>
    %c0_12 = arith.constant 0 : index
    %c0_13 = arith.constant 0 : index
    %c0_14 = arith.constant 0 : index
    %27 = vector.load %arg5[%c0_12, %c0_13, %c0_14] : memref<1x2x256xf32, #tpu.memory_space<vmem>>, vector<1x2x256xf32>
    %28 = vector.shape_cast %27 : vector<1x2x256xf32> to vector<2x256xf32>
    %29 = vector.extract_strided_slice %26 {offsets = [0, 0], sizes = [128, 1], strides = [1, 1]} : vector<128x2xf32> to vector<128x1xf32>
    %30 = vector.extract_strided_slice %28 {offsets = [0, 0], sizes = [1, 256], strides = [1, 1]} : vector<2x256xf32> to vector<1x256xf32>
    %31 = vector.broadcast %29 : vector<128x1xf32> to vector<128x256xf32>
    %32 = vector.broadcast %30 : vector<1x256xf32> to vector<128x256xf32>
    %33 = arith.subf %31, %32 : vector<128x256xf32>
    %34 = math.absf %33 : vector<128x256xf32>
    %35 = vector.extract_strided_slice %26 {offsets = [0, 1], sizes = [128, 1], strides = [1, 1]} : vector<128x2xf32> to vector<128x1xf32>
    %36 = vector.extract_strided_slice %28 {offsets = [1, 0], sizes = [1, 256], strides = [1, 1]} : vector<2x256xf32> to vector<1x256xf32>
    %37 = vector.broadcast %35 : vector<128x1xf32> to vector<128x256xf32>
    %38 = vector.broadcast %36 : vector<1x256xf32> to vector<128x256xf32>
    %39 = arith.subf %37, %38 : vector<128x256xf32>
    %40 = math.absf %39 : vector<128x256xf32>
    %41 = arith.maximumf %34, %40 : vector<128x256xf32>
    %cst_15 = arith.constant 4.000000e+00 : f32
    %42 = vector.broadcast %cst_15 : f32 to vector<128x256xf32>
    %43 = arith.cmpf ogt, %41, %42 : vector<128x256xf32>
    %cst_16 = arith.constant 5.000000e+00 : f32
    %44 = vector.broadcast %cst_16 : f32 to vector<128x256xf32>
    %45 = arith.subf %25, %44 : vector<128x256xf32>
    %46 = arith.select %43, %25, %45 : vector<128x256xi1>, vector<128x256xf32>
    %c0_17 = arith.constant 0 : index
    %c0_18 = arith.constant 0 : index
    %47 = vector.load %arg10[%c0_17, %c0_18] : memref<1x256xf32, #tpu.memory_space<vmem>>, vector<1x256xf32>
    %cst_19 = arith.constant dense<0xFF800000> : vector<256xf32>
    %48 = vector.multi_reduction <maximumf>, %46, %cst_19 [0] : vector<128x256xf32> to vector<256xf32>
    %49 = vector.shape_cast %48 : vector<256xf32> to vector<1x256xf32>
    %50 = arith.maximumf %47, %49 : vector<1x256xf32>
    %c0_20 = arith.constant 0 : index
    %c0_21 = arith.constant 0 : index
    %51 = vector.load %arg10[%c0_20, %c0_21] : memref<1x256xf32, #tpu.memory_space<vmem>>, vector<1x256xf32>
    tpu.vector_store %arg10[%c0_20, %c0_21], %50 {strides = array<i32>} : memref<1x256xf32, #tpu.memory_space<vmem>>, vector<1x256xf32>,
    %c1_i32 = arith.constant 1 : i32
    %52 = arith.cmpi eq, %arg1, %c1_i32 : i32
    %53 = arith.extui %52 : i1 to i32
    %c0_i32_22 = arith.constant 0 : i32
    %54 = arith.cmpi ne, %53, %c0_i32_22 : i32
    scf.if %54 {
      %c0_23 = arith.constant 0 : index
      %c0_24 = arith.constant 0 : index
      %55 = vector.load %arg11[%c0_23, %c0_24] : memref<1x256xf32, #tpu.memory_space<vmem>>, vector<1x256xf32>
      %c0_25 = arith.constant 0 : index
      %c0_26 = arith.constant 0 : index
      %56 = vector.load %arg10[%c0_25, %c0_26] : memref<1x256xf32, #tpu.memory_space<vmem>>, vector<1x256xf32>
      %cst_27 = arith.constant 2.000000e+00 : f32
      %57 = vector.broadcast %cst_27 : f32 to vector<1x256xf32>
      %58 = arith.mulf %57, %56 : vector<1x256xf32>
      %cst_28 = arith.constant 2.000000e+00 : f32
      %59 = vector.broadcast %cst_28 : f32 to vector<1x256xf32>
      %60 = arith.subf %59, %58 : vector<1x256xf32>
      %cst_29 = arith.constant 1.000000e+00 : f32
      %61 = vector.broadcast %cst_29 : f32 to vector<1x256xf32>
      %62 = arith.addf %61, %55 : vector<1x256xf32>
      %63 = arith.subf %62, %60 : vector<1x256xf32>
      %cst_30 = arith.constant 0.000000e+00 : f32
      %64 = vector.broadcast %cst_30 : f32 to vector<1x256xf32>
      %65 = arith.maximumf %63, %64 : vector<1x256xf32>
      %cst_31 = arith.constant dense<0.000000e+00> : vector<1xf32>
      %66 = vector.multi_reduction <add>, %65, %cst_31 [1] : vector<1x256xf32> to vector<1xf32>
      %67 = vector.shape_cast %66 : vector<1xf32> to vector<1x1xf32>
      %cst_32 = arith.constant 2.560000e+02 : f32
      %68 = vector.broadcast %cst_32 : f32 to vector<1x1xf32>
      %69 = arith.divf %67, %68 : vector<1x1xf32>
      %cst_33 = arith.constant dense<0.000000e+00> : vector<1xf32>
      %70 = vector.multi_reduction <add>, %55, %cst_33 [1] : vector<1x256xf32> to vector<1xf32>
      %71 = vector.shape_cast %70 : vector<1xf32> to vector<1x1xf32>
      %cst_34 = arith.constant 2.560000e+02 : f32
      %72 = vector.broadcast %cst_34 : f32 to vector<1x1xf32>
      %73 = arith.divf %71, %72 : vector<1x1xf32>
      %cst_35 = arith.constant dense<0.000000e+00> : vector<1xf32>
      %74 = vector.multi_reduction <add>, %60, %cst_35 [1] : vector<1x256xf32> to vector<1xf32>
      %75 = vector.shape_cast %74 : vector<1xf32> to vector<1x1xf32>
      %cst_36 = arith.constant 2.560000e+02 : f32
      %76 = vector.broadcast %cst_36 : f32 to vector<1x1xf32>
      %77 = arith.divf %75, %76 : vector<1x1xf32>
      %78 = tpu.concatenate %69, %73, %77 in 1 : vector<1x1xf32>, vector<1x1xf32>, vector<1x1xf32> -> vector<1x3xf32>
      %c0_37 = arith.constant 0 : index
      %c0_38 = arith.constant 0 : index
      %c0_39 = arith.constant 0 : index
      %79 = vector.load %arg9[%c0_37, %c0_38, %c0_39] : memref<1x1x3xf32, #tpu.memory_space<vmem>>, vector<1x1x3xf32>
      %80 = vector.shape_cast %79 : vector<1x1x3xf32> to vector<1x3xf32>
      %81 = vector.shape_cast %78 : vector<1x3xf32> to vector<1x1x3xf32>
      tpu.vector_store %arg9[%c0_37, %c0_38, %c0_39], %81 {strides = array<i32>} : memref<1x1x3xf32, #tpu.memory_space<vmem>>, vector<1x1x3xf32>,
    } else {
    }
    return
  }
  func.func @transform_0(%arg0: i32, %arg1: i32) -> (i32, i32, i32) {
    %c0_i32 = arith.constant 0 : i32
    %c0_i32_0 = arith.constant 0 : i32
    %c0_i32_1 = arith.constant 0 : i32
    return %arg0, %c0_i32, %c0_i32_0 : i32, i32, i32
  }
  func.func @transform_1(%arg0: i32, %arg1: i32) -> (i32, i32, i32) {
    %c0_i32 = arith.constant 0 : i32
    %c0_i32_0 = arith.constant 0 : i32
    %c0_i32_1 = arith.constant 0 : i32
    return %arg0, %c0_i32, %c0_i32_0 : i32, i32, i32
  }
  func.func @transform_2(%arg0: i32, %arg1: i32) -> (i32, i32, i32) {
    %c0_i32 = arith.constant 0 : i32
    %c0_i32_0 = arith.constant 0 : i32
    return %arg0, %c0_i32, %arg1 : i32, i32, i32
  }
  func.func @transform_3(%arg0: i32, %arg1: i32) -> (i32, i32, i32) {
    %c0_i32 = arith.constant 0 : i32
    %c0_i32_0 = arith.constant 0 : i32
    %c0_i32_1 = arith.constant 0 : i32
    return %arg0, %c0_i32, %c0_i32_0 : i32, i32, i32
  }
  func.func @transform_4(%arg0: i32, %arg1: i32) -> (i32, i32, i32) {
    %c0_i32 = arith.constant 0 : i32
    %c0_i32_0 = arith.constant 0 : i32
    %c0_i32_1 = arith.constant 0 : i32
    return %arg0, %c0_i32, %c0_i32_0 : i32, i32, i32
  }
  func.func @transform_5(%arg0: i32, %arg1: i32) -> (i32, i32, i32) {
    %c0_i32 = arith.constant 0 : i32
    %c0_i32_0 = arith.constant 0 : i32
    %c0_i32_1 = arith.constant 0 : i32
    return %arg0, %c0_i32, %c0_i32_0 : i32, i32, i32
  }
  func.func @transform_6(%arg0: i32, %arg1: i32) -> (i32, i32) {
    %c0_i32 = arith.constant 0 : i32
    %c0_i32_0 = arith.constant 0 : i32
    return %arg1, %c0_i32 : i32, i32
  }
  func.func @transform_7(%arg0: i32, %arg1: i32) -> (i32, i32, i32) {
    %c0_i32 = arith.constant 0 : i32
    %c0_i32_0 = arith.constant 0 : i32
    %c0_i32_1 = arith.constant 0 : i32
    return %arg0, %c0_i32, %c0_i32_0 : i32, i32, i32
  }
}

</mosaic_0001>

<bundles_post_ra>
// kernel: tpu_custom_call.1
= control target key start
LH: loop header
LB: loop body
LE: loop exit
PB: predicated region body
PF: predicated region fallthrough
CT: control target
= control target key end

     0   :  { %s5654_s0 = inlined_call_operand.vmem [shape: f32[2,32,256], index: 0, kind: input, shape index: {}]   ;;  %s5655_s1 = inlined_call_operand.vmem [shape: f32[2,32,256], index: 1, kind: input, shape index: {}]   ;;  %s5656_s2 = inlined_call_operand.vmem [shape: f32[2,32,256], index: 2, kind: input, shape index: {}]   ;;  %s5657_s3 = inlined_call_operand.vmem [shape: f32[2,2,256], index: 3, kind: input, shape index: {}]   ;;  %s5658_s4 = inlined_call_operand.vmem [shape: f32[2,2,256], index: 4, kind: input, shape index: {}]   ;;  %s5659_s5 = inlined_call_operand.vmem [shape: f32[2,256,2], index: 5, kind: input, shape index: {}]   ;;  %s5660_s6 = inlined_call_operand.vmem [shape: f32[256,2], index: 6, kind: input, shape index: {}]   ;;  %s5661_s7 = inlined_call_operand.hbm [shape: f32[2,1,3], index: 7, kind: output, shape index: {}]  }
   0x1   :  { %5746 = sst [smem:[#allocation97_spill]] %s5656_s2 }
   0x2   :  { %12 = vsyncpa [#allocation6], 0 }
   0x3   :  { %14 = vsyncpa [#allocation6 + $0x1], 0  ;;  %s3270_s24 = smov 0   ;;  %s3272_s25 = smov 0  }
   0x4   :  { %s3274_s26 = smov 0   ;;  %s3276_s27 = smov 0  }
   0x5   :  { %s3278_s28 = smov 0   ;;  %s3280_s29 = smov 0  }
   0x6   :  { %s3282_s30 = smov 0   ;;  %s3284_s8 = smov 0  }
   0x7   :  { %s3286_s9 = smov 0   ;;  %s3288_s10 = smov 0  }
   0x8 LB: > { %5747 = sst [smem:[#allocation8_spill]] %s3193_s26  ;;  %s2819_s11 = sadd.s32 4294967295, %s3221_s10   ;;  %s3221_s10 = sphi %s3288_s10, %s20_s10   ;;  %s3217_s9 = sphi %s3286_s9, %s6189_s9   ;;  %s3213_s8 = sphi %s3284_s8, %s6188_s8   ;;  %s3209_s30 = sphi %s3282_s30, %s6187_s30   ;;  %s3205_s29 = sphi %s3280_s29, %s6186_s29   ;;  %s3201_s28 = sphi %s3278_s28, %s6185_s28   ;;  %s3197_s27 = sphi %s3276_s27, %s6184_s27   ;;  %s3193_s26 = sphi %s3274_s26, %s6183_s26   ;;  %s3189_s25 = sphi %s3272_s25, %s6191_s25   ;;  %s3185_s24 = sphi %s3270_s24, %s6190_s24  }
   0x9   : > { %5748 = sst [smem:[#allocation9_spill]] %s3201_s28  ;;  %s2820_s12 = sadd.s32 4294967294, %s3221_s10  }
   0xa   : > { %5749 = sst [smem:[#allocation10_spill]] %s3213_s8  ;;  %s29_s13 = sadd.s32 1, %s3213_s8 }
   0xb   : > { %5750 = sst [smem:[#allocation11_spill]] %s3217_s9  ;;  %s32_s14 = sadd.s32 1, %s3217_s9 }
   0xc   : > { %p30_p0 = scmp.ge.s32.totalorder %s29_s13, 2  ;;  %s93_s15 = sadd.s32 1, %s3201_s28 }
   0xd   : > { %p100_p1 = scmp.ne.s32.totalorder %s3201_s28, %s3197_s27  ;;  %p101_p2 = scmp.eq.s32.totalorder %s3221_s10, 0 }
   0xe   : > { %s6193_s13 = smov (%p30_p0, %s29_s13), 0  ;;  %s6195_s14 = smov (!%p30_p0, %s32_s14), %s3217_s9 }
   0xf   : > { %5751 = sst [smem:[#allocation12_spill]] %s6193_s13  ;;  %s89_s16 = ssub.s32 %s3213_s8, %s6193_s13 }
  0x10   : > { %p3333_p3 = por %p101_p2, %p100_p1  ;;  %p34_p4 = scmp.ge.s32.totalorder %s6195_s14, 2 }
  0x11   : > { %s223_s18 = sadd.s32 1, %s3193_s26  ;;  %p233_p5 = scmp.ne.s32.totalorder %s3193_s26, %s3189_s25 }
  0x12   : > { %p234_p6 = scmp.eq.s32.totalorder %s2819_s11, 3  ;;  %s6197_s14 = smov (%p34_p4, %s6195_s14), 0 }
  0x13   : > { %5753 = sst [smem:[#allocation13_spill]] %s6197_s14  ;;  %p239_p8 = scmp.ne.s32.totalorder %s3189_s25, %s3185_s24 }
  0x14   : > { %p3342_p7 = por %p234_p6, %p233_p5  ;;  %s88_s20 = ssub.s32 %s3217_s9, %s6197_s14 }
  0x15   : > { %p240_p9 = scmp.eq.s32.totalorder %s2820_s12, 3  ;;  %s90_s21 = sor.u32 %s89_s16, %s88_s20 }
  0x16   : > { %p221_p10 = scmp.eq.s32.totalorder %s88_s20, 0  ;;  %p91_p11 = scmp.eq.s32.totalorder %s90_s21, 0 }
  0x17   : > { %p3350_p12 = por %p240_p9, %p239_p8  ;;  %p2822_p13 = scmp.ge.s32.totalorder %s3221_s10, 4 }
  0x18   : > { %s3355_s23 = scalar_select %p221_p10, %s3193_s26, %s223_s18  }
  0x19   : > { %s5755_s22 = scalar_select %p3350_p12, 1, 0 }
  0x1a   : > { %5757 = sst [smem:[#allocation15_spill]] %s3355_s23  ;;  %256 = sbr.rel (%p2822_p13) target bundleno = 45 (0x2d), region = 16 }
  0x1b   : > { %5756 = sst [smem:[#allocation14_spill]] %s5755_s22 }
  0x1c   : > { %s3358_s11 = scalar_select %p91_p11, %s3201_s28, %s93_s15  }
  0x1e   : > { %5758 = sst [smem:[#allocation16_spill]] %s3358_s11 }
  0x21   : > { %275 = sbr.rel (!%p3333_p3) target bundleno = 45 (0x2d), region = 28  ;;  %s277_s12 = sand.u32 (%p3333_p3), 1, %s3201_s28  }
  0x22   : > { %s2824_s16 = sshll.u32 (%p3333_p3), %s3217_s9, 3  ;;  %s2823_s20 = sshll.u32 (%p3333_p3), %s277_s12, 5 }
  0x23   : > { %s281_s21 = sadd.s32 (%p3333_p3), %s3213_s8, %s2824_s16  ;;  %s5759_s2 = sld [smem:[#allocation97_spill]] (%p3333_p3) }
  0x24   : > { %s2825_s14 = sshll.u32 (%p3333_p3), %s281_s21, 3  ;;  %s279_s15 = scalar_lea.vmem (%p3333_p3), [#allocation4], %s2823_s20 }
  0x29   : > { %s283_s18 = scalar_lea.vmem %s5759_s2, %s2825_s14 }
  0x2a   : > { %v317_v0 = vld [vmem:[%s283_s18] sm:$0xff]  ;;  %v319_v1 = vld [vmem:[%s283_s18 + $0x10] sm:$0xff] }
  0x2b   : > { %v321_v2 = vld [vmem:[%s283_s18 + $0x20] sm:$0xff]  ;;  %318 = vst [vmem:[%s279_s15] sm:$0xff] %v317_v0  ;;  %320 = vst [vmem:[%s279_s15 + $0x8] sm:$0xff] %v319_v1  ;;  %v323_v3 = vld [vmem:[%s283_s18 + $0x30] sm:$0xff] }
  0x2c   : > { %322 = vst [vmem:[%s279_s15 + $0x10] sm:$0xff] %v321_v2  ;;  %324 = vst [vmem:[%s279_s15 + $0x18] sm:$0xff] %v323_v3 }
  0x2d PF: > { %p2826_p0 = scmp.ge.s32.totalorder %s3221_s10, 1  ;;  %p362_p1 = scmp.lt.s32.totalorder %s3221_s10, 5 }
  0x2f   : > { %p363_p2 = pnand %p2826_p0, %p362_p1 }
  0x31   : > { %366 = sbr.rel (%p363_p2) target bundleno = 1172 (0x494), region = 82 }
  0x38   : > { %s369_s13 = sand.u32 1, %s3197_s27   ;;  %p429_p3 = scmp.lt.s32.totalorder %s3209_s30, 1 }
  0x39   : > { %s3373_s17 = sshll.u32 %s369_s13, 5  ;;  %s2838_s22 = sshll.u32 %s3205_s29, 4 }
  0x3a   : > { %s430_s12 = scalar_select %p429_p3, %s3209_s30, 1 }
  0x3b   : > { %p3378_p4 = scmp.lt.s32.totalorder %s2838_s22, 31  ;;  %s5765_s16 = sand.u32 1, %s3189_s25  }
  0x3c   : > { %s2965_s20 = sshll.u32 %s430_s12, 6  ;;  %s2967_s21 = sshll.u32 %s430_s12, 2 }
  0x3d   : > { %s3385_s2 = scalar_lea.vmem %s5654_s0, %s2965_s20  ;;  %s438_s27 = scalar_lea.vmem %s5655_s1, %s2965_s20 }
  0x3e   : > { %s3393_s11 = scalar_lea.vmem %s5657_s3, %s2967_s21  ;;  %s3398_s26 = scalar_lea.vmem %s5658_s4, %s2967_s21  ;;  %v461_v4 = vld [vmem:[%s438_s27] sm:$0xff]  ;;  %v3400_v5 = vld [vmem:[%s438_s27 + $0x8] sm:$0xff]  ;;  %v463_v6 = vld [vmem:[%s438_s27 + $0x10] sm:$0xff] }
  0x3f   : > { %s2969_s18 = sshll.u32 %s430_s12, 8  ;;  %v464_v7 = vld [vmem:[%s438_s27 + $0x18] sm:$0xff]  ;;  %v465_v8 = vld [vmem:[%s438_s27 + $0x20] sm:$0xff]  ;;  %v466_v9 = vld [vmem:[%s438_s27 + $0x28] sm:$0xff]  ;;  %v469_v10 = vmul.f32 %v461_v4, %v461_v4  ;;  %v470_v11 = vmul.f32 %v3400_v5, %v3400_v5  ;;  %v471_v12 = vmul.f32 %v463_v6, %v463_v6  ;;  %s6199_s22 = smov (!%p3378_p4, %s2838_s22), 31 }
  0x40   : > { %s3407_s28 = scalar_lea.vmem %s5659_s5, %s2969_s18  ;;  %v467_v13 = vld [vmem:[%s438_s27 + $0x30] sm:$0xff]  ;;  %v468_v14 = vld [vmem:[%s438_s27 + $0x38] sm:$0xff]  ;;  %v472_v15 = vmul.f32 %v464_v7, %v464_v7  ;;  %v473_v16 = vmul.f32 %v465_v8, %v465_v8  ;;  %v474_v17 = vmul.f32 %v466_v9, %v466_v9  ;;  %s2839_s23 = sshll.u32 %s6199_s22, 3 }
  0x41   : > { %v475_v18 = vmul.f32 %v467_v13, %v467_v13  ;;  %v477_v19 = vadd.f32 %v471_v12, %v469_v10  ;;  %v476_v20 = vmul.f32 %v468_v14, %v468_v14  ;;  %s3414_s20 = scalar_lea.vmem %s5660_s6, %s2839_s23  ;;  %s3450_s22 = scalar_lea.vmem [#allocation4], %s3373_s17 }
  0x42   : > { %v486_v21 = vadd.f32 %v472_v15, %v470_v11  ;;  %s3454_s21 = scalar_lea.vmem [#allocation5], %s5765_s16  ;;  %p2840_p5 = scmp.ne.s32.totalorder %s3205_s29, 0 }
  0x43   : > { %v478_v22 = vadd.f32 %v477_v19, %v473_v16 }
  0x44   : > { %v487_v23 = vadd.f32 %v486_v21, %v474_v17 }
  0x45   : > { %v479_v24 = vadd.f32 %v478_v22, %v475_v18 }
  0x46   : > { %v488_v25 = vadd.f32 %v487_v23, %v476_v20 }
  0x47   : > { %v480_v26 = vrot.slane %v479_v24, 4 }
  0x48   : > { %v489_v27 = vrot.slane %v488_v25, 4 }
  0x49   : > { %v481_v28 = vadd.f32 %v480_v26, %v479_v24 }
  0x4a   : > { %v490_v29 = vadd.f32 %v489_v27, %v488_v25 }
  0x4b   : > { %v482_v30 = vrot.slane %v481_v28, 2 }
  0x4c   : > { %v491_v31 = vrot.slane %v490_v29, 2 }
  0x4d   : > { %v483_v32 = vadd.f32 %v482_v30, %v481_v28 }
  0x4e   : > { %v492_v33 = vadd.f32 %v491_v31, %v490_v29 }
  0x4f   : > { %v484_v34 = vrot.slane %v483_v32, 1 }
  0x50   : > { %v493_v35 = vrot.slane %v492_v33, 1 }
  0x51   : > { %v485_v36 = vadd.f32 %v484_v34, %v483_v32 }
  0x52   : > { %v494_v37 = vadd.f32 %v493_v35, %v492_v33 }
  0x53   : > { %3071 = vrsqrt.f32 %v485_v36  ;;  %vm497_vm0 = vcmp.eq.f32.partialorder %v485_v36, inf  ;;  %v500_v39 = vand.u32 2147483648, %v485_v36  ;;  %vm499_vm1 = vcmp.eq.f32.partialorder %v485_v36, 0.0 }
  0x54   : > { %3073 = vrsqrt.f32 %v494_v37  ;;  %vm504_vm2 = vcmp.eq.f32.partialorder %v494_v37, inf  ;;  %v507_v42 = vand.u32 2147483648, %v494_v37  ;;  %vm506_vm3 = vcmp.eq.f32.partialorder %v494_v37, 0.0 }
  0x5d   : > { %v3072_v38 = vpop.eup %3071 }
  0x5e   : > { %v3074_v40 = vpop.eup %3073  ;;  %v496_v41 = vmul.f32 %v3072_v38, %v485_v36 }
  0x5f   : > { %v503_v43 = vmul.f32 %v3074_v40, %v494_v37 }
  0x60   : > { %v498_v44 = vsel %vm497_vm0, %v485_v36, %v496_v41 }
  0x61   : > { %v501_v45 = vsel %vm499_vm1, %v500_v39, %v498_v44  ;;  %v505_v46 = vsel %vm504_vm2, %v494_v37, %v503_v43 }
  0x62   : > { %v508_v47 = vsel %vm506_vm3, %v507_v42, %v505_v46  ;;  %v509_v48 = vmax.f32 %v501_v45, 1e-12 }
  0x63   : > { %v510_v49 = vmax.f32 %v508_v47, 1e-12 }
  0x64   : > { %3075 = vrcp.f32 %v509_v48 }
  0x65   : > { %3077 = vrcp.f32 %v510_v49 }
  0x6e   : > { %v3076_v50 = vpop.eup %3075  ;;  %528 = sbr.rel (%p2840_p5) target bundleno = 537 (0x219), region = 90 }
  0x6f   : > { %v3078_v51 = vpop.eup %3077  ;;  %v3416_v52 = vmul.f32 %v3076_v50, %v461_v4  ;;  %v3418_v53 = vmul.f32 %v3076_v50, %v463_v6  ;;  %v3420_v54 = vmul.f32 %v3076_v50, %v465_v8  ;;  %v3422_v55 = vmul.f32 %v3076_v50, %v467_v13 }
  0x70   : > { %v3425_v56 = vmul.f32 %v3078_v51, %v3400_v5  ;;  %v3427_v57 = vmul.f32 %v3078_v51, %v464_v7  ;;  %v3429_v58 = vmul.f32 %v3078_v51, %v466_v9  ;;  %v3431_v59 = vmul.f32 %v3078_v51, %v468_v14 }
  0x71   : > { %v3435_v60 = vpack.c.bf16 %v3418_v53, %v3416_v52  ;;  %v3439_v61 = vpack.c.bf16 %v3422_v55, %v3420_v54 }
  0x72   : > { %v3443_v62 = vpack.c.bf16 %v3427_v57, %v3425_v56  ;;  %v3447_v63 = vpack.c.bf16 %v3431_v59, %v3429_v58 }
  0x73   : > { %5761 = vst [vmem:[#allocation17_spill] sm:$0xff] %v3435_v60  ;;  %5762 = vst [vmem:[#allocation18_spill] sm:$0xff] %v3439_v61 }
  0x74   : > { %5763 = vst [vmem:[#allocation19_spill] sm:$0xff] %v3443_v62  ;;  %5764 = vst [vmem:[#allocation20_spill] sm:$0xff] %v3447_v63 }
  0x75   : > { %662 = vxpose.xlu1.c.b16.start [1/2] (short) %v3443_v62, 128  ;;  %646 = vxpose.xlu0.c.b16.start [1/2] (short) %v3435_v60, 128  ;;  %v3223_v0 = vmov 0   ;;  %v3465_v1 = vld [vmem:[%s3385_s2 + $0x8] sm:$0xff]  ;;  %v3468_v2 = vld [vmem:[%s3385_s2 + $0x18] sm:$0xff]  ;;  %v3485_v9 = vld [vmem:[%s3385_s2] sm:$0xff]  ;;  %vm678_vm8 = vcmask 261120  }
  0x76   : > { %759 = vmatprep.mubr.bf16.mxu0 %v3223_v0  ;;  %839 = vmatprep.mubr.bf16.mxu1 %v3223_v0  ;;  %v3471_v3 = vld [vmem:[%s3385_s2 + $0x28] sm:$0xff]  ;;  %v3474_v4 = vld [vmem:[%s3385_s2 + $0x38] sm:$0xff]  ;;  %v538_v5 = vmul.f32 %v3465_v1, %v3465_v1  ;;  %v540_v6 = vmul.f32 %v3468_v2, %v3468_v2  ;;  %v3488_v10 = vld [vmem:[%s3385_s2 + $0x10] sm:$0xff]  ;;  %v537_v14 = vmul.f32 %v3485_v9, %v3485_v9 }
  0x77   : > { %v542_v7 = vmul.f32 %v3471_v3, %v3471_v3  ;;  %v544_v8 = vmul.f32 %v3474_v4, %v3474_v4  ;;  %v3491_v11 = vld [vmem:[%s3385_s2 + $0x20] sm:$0xff]  ;;  %v3495_v13 = vld [vmem:[%s3385_s2 + $0x30] sm:$0xff]  ;;  %v539_v15 = vmul.f32 %v3488_v10, %v3488_v10  ;;  %v3506_v32 = vld [vmem:[%s3407_s28 + $0x8] sm:$0xff] }
  0x78   : > { %v554_v12 = vadd.f32 %v540_v6, %v538_v5  ;;  %v541_v16 = vmul.f32 %v3491_v11, %v3491_v11  ;;  %v543_v18 = vmul.f32 %v3495_v13, %v3495_v13  ;;  %v3510_v36 = vld [vmem:[%s3407_s28 + $0x10] sm:$0xff]  ;;  %v3513_v37 = vld [vmem:[%s3407_s28] sm:$0xff]  ;;  %v3518_v38 = vld [vmem:[%s3407_s28 + $0x18] sm:$0xff] }
  0x79   : > { %663 = vxpose.xlu1.c.b16.end [2/2] (short) %v3447_v63, 128  ;;  %647 = vxpose.xlu0.c.b16.end [2/2] (short) %v3439_v61, 128  ;;  %v545_v19 = vadd.f32 %v539_v15, %v537_v14  ;;  %v3521_v39 = vld [vmem:[%s3407_s28 + $0x20] sm:$0xff]  ;;  %v3526_v41 = vld [vmem:[%s3407_s28 + $0x28] sm:$0xff]  ;;  %v3529_v43 = vld [vmem:[%s3407_s28 + $0x30] sm:$0xff] }
  0x7a   : > { %v555_v17 = vadd.f32 %v554_v12, %v542_v7  ;;  %v3534_v48 = vld [vmem:[%s3407_s28 + $0x38] sm:$0xff]  ;;  %v3537_v51 = vld [vmem:[%s3407_s28 + $0x40] sm:$0xff]  ;;  %v3545_v14 = vld [vmem:[%s3407_s28 + $0x50] sm:$0xff] }
  0x7b   : > { %v546_v21 = vadd.f32 %v545_v19, %v541_v16  ;;  %v3550_v15 = vld [vmem:[%s3407_s28 + $0x58] sm:$0xff]  ;;  %v3553_v16 = vld [vmem:[%s3407_s28 + $0x60] sm:$0xff]  ;;  %v3561_v19 = vld [vmem:[%s3407_s28 + $0x70] sm:$0xff] }
  0x7c   : > { %v556_v20 = vadd.f32 %v555_v17, %v544_v8  ;;  %v3542_v8 = vld [vmem:[%s3407_s28 + $0x48] sm:$0xff] }
  0x7d   : > { %3080 = vset.pattern.permute.xlu1 %v3223_v0  ;;  %v547_v23 = vadd.f32 %v546_v21, %v543_v18  ;;  %v3558_v17 = vld [vmem:[%s3407_s28 + $0x68] sm:$0xff] }
  0x7e   : > { %v557_v22 = vrot.slane %v556_v20, 4 }
  0x7f   : > { %v548_v25 = vrot.slane %v547_v23, 4 }
  0x80   : > { %v558_v24 = vadd.f32 %v557_v22, %v556_v20 }
  0x81   : > { %v549_v27 = vadd.f32 %v548_v25, %v547_v23  ;;  %v3570_v25 = vld [vmem:[%s3407_s28 + $0x78] sm:$0xff] }
  0x82   : > { %3079 = vset.pattern.permute.xlu0 %v3223_v0  ;;  %v559_v26 = vrot.slane %v558_v24, 2 }
  0x83   : > { %v550_v29 = vrot.slane %v549_v27, 2 }
  0x84   : > { %v560_v28 = vadd.f32 %v559_v26, %v558_v24 }
  0x85   : > { %v551_v31 = vadd.f32 %v550_v29, %v549_v27 }
  0x86   : > { %v561_v30 = vrot.slane %v560_v28, 1 }
  0x87   : > { %v552_v34 = vrot.slane %v551_v31, 1 }
  0x88   : > { %v562_v33 = vadd.f32 %v561_v30, %v560_v28 }
  0x89   : > { %v553_v35 = vadd.f32 %v552_v34, %v551_v31 }
  0x8a   : > { %3083 = vrsqrt.f32 %v562_v33  ;;  %vm572_vm4 = vcmp.eq.f32.partialorder %v562_v33, inf  ;;  %v575_v42 = vand.u32 2147483648, %v562_v33  ;;  %vm574_vm5 = vcmp.eq.f32.partialorder %v562_v33, 0.0 }
  0x8b   : > { %3085 = vrsqrt.f32 %v553_v35  ;;  %vm565_vm6 = vcmp.eq.f32.partialorder %v553_v35, inf  ;;  %v568_v47 = vand.u32 2147483648, %v553_v35  ;;  %vm567_vm7 = vcmp.eq.f32.partialorder %v553_v35, 0.0 }
  0x94   : > { %v3084_v40 = vpop.eup %3083 }
  0x95   : > { %960 = vperm.xlu1 %3080, %v3506_v32   ;;  %v571_v44 = vmul.f32 %v3084_v40, %v562_v33  ;;  %v3086_v45 = vpop.eup %3085 }
  0x96   : > { %v564_v50 = vmul.f32 %v3086_v45, %v553_v35 }
  0x97   : > { %v573_v46 = vsel %vm572_vm4, %v562_v33, %v571_v44  ;;  %v3601_v44 = vld [vmem:[%s3407_s28 + $0xa0] sm:$0xff] }
  0x98   : > { %v576_v49 = vsel %vm574_vm5, %v575_v42, %v573_v46  ;;  %v566_v6 = vsel %vm565_vm6, %v553_v35, %v564_v50  ;;  %v3592_v35 = vld [vmem:[%s3407_s28 + $0x90] sm:$0xff]  ;;  %v3598_v42 = vld [vmem:[%s3407_s28 + $0x98] sm:$0xff] }
  0x99   : > { %965 = vperm.xlu1 %3080, %v3510_v36   ;;  %v578_v5 = vmax.f32 %v576_v49, 1e-12  ;;  %v569_v7 = vsel %vm567_vm7, %v568_v47, %v566_v6  ;;  %v3606_v47 = vld [vmem:[%s3407_s28 + $0xa8] sm:$0xff]  ;;  %v3609_v50 = vld [vmem:[%s3407_s28 + $0xb0] sm:$0xff] }
  0x9a   : > { %955 = vperm.xlu0 %3079, %v3513_v37   ;;  %v577_v12 = vmax.f32 %v569_v7, 1e-12 }
  0x9b   : > { %3087 = vrcp.f32 %v578_v5 }
  0x9c   : > { %3089 = vrcp.f32 %v577_v12  ;;  %v3614_v12 = vld [vmem:[%s3407_s28 + $0xb8] sm:$0xff] }
  0x9d   : > { %970 = vperm.xlu1 %3080, %v3518_v38  }
  0x9e   : > { %975 = vperm.xlu0 %3079, %v3521_v39  }
  0xa1   : > { %980 = vperm.xlu1 %3080, %v3526_v41  }
  0xa2   : > { %985 = vperm.xlu0 %3079, %v3529_v43  }
  0xa5   : > { %990 = vperm.xlu1 %3080, %v3534_v48   ;;  %v3088_v18 = vpop.eup %3087 }
  0xa6   : > { %995 = vperm.xlu0 %3079, %v3537_v51   ;;  %v582_v20 = vmul.f32 %v3088_v18, %v3465_v1  ;;  %v584_v21 = vmul.f32 %v3088_v18, %v3468_v2  ;;  %v586_v22 = vmul.f32 %v3088_v18, %v3471_v3  ;;  %v588_v23 = vmul.f32 %v3088_v18, %v3474_v4  ;;  %v3090_v24 = vpop.eup %3089  ;;  %v3576_v2 = vld [vmem:[%s3407_s28 + $0x80] sm:$0xff] }
  0xa7   : > { %v580_v3 = vmul.f32 %v3090_v24, %v3485_v9  ;;  %v583_v4 = vmul.f32 %v3090_v24, %v3488_v10  ;;  %v3588_v10 = vld [vmem:[%s3407_s28 + $0x88] sm:$0xff] }
  0xa8   : > { %v590_v26 = vmul.f32 %v582_v20, %v3425_v56  ;;  %v592_v27 = vmul.f32 %v584_v21, %v3427_v57  ;;  %v643_v28 = vpack.c.bf16 %v584_v21, %v582_v20  ;;  %v594_v1 = vmul.f32 %v586_v22, %v3429_v58  ;;  %v3617_v20 = vld [vmem:[%s3407_s28 + $0xc0] sm:$0xff] }
  0xa9   : > { %1000 = vperm.xlu1 %3080, %v3542_v8   ;;  %v596_v29 = vmul.f32 %v588_v23, %v3431_v59  ;;  %v645_v30 = vpack.c.bf16 %v588_v23, %v586_v22  ;;  %v585_v56 = vmul.f32 %v3090_v24, %v3491_v11  ;;  %v587_v57 = vmul.f32 %v3090_v24, %v3495_v13  ;;  %v3622_v24 = vld [vmem:[%s3407_s28 + $0xc8] sm:$0xff] }
  0xaa   : > { %1005 = vperm.xlu0 %3079, %v3545_v14   ;;  %v606_v31 = vadd.f32 %v592_v27, %v590_v26  ;;  %727 = vmatprep.subr.bf16.mxu0 %v643_v28  ;;  %v589_v58 = vmul.f32 %v580_v3, %v3416_v52  ;;  %v591_v33 = vmul.f32 %v583_v4, %v3418_v53  ;;  %v3625_v27 = vld [vmem:[%s3407_s28 + $0xd0] sm:$0xff] }
  0xab   : > { %2970 = vmatprep.subr.bf16.mxu1 %v643_v28  ;;  %v642_v9 = vpack.c.bf16 %v583_v4, %v580_v3  ;;  %v593_v34 = vmul.f32 %v585_v56, %v3420_v54  ;;  %v595_v13 = vmul.f32 %v587_v57, %v3422_v55  ;;  %v644_v52 = vpack.c.bf16 %v587_v57, %v585_v56  ;;  %v3630_v4 = vld [vmem:[%s3407_s28 + $0xd8] sm:$0xff]  ;;  %v3640_v56 = vld [vmem:[%s3407_s28 + $0xe8] sm:$0xff]  ;;  %v3643_v57 = vld [vmem:[%s3407_s28 + $0xf0] sm:$0xff] }
  0xac   : > { %v607_v59 = vadd.f32 %v606_v31, %v594_v1  ;;  %v597_v11 = vadd.f32 %v591_v33, %v589_v58  ;;  %v3648_v58 = vld [vmem:[%s3407_s28 + $0xf8] sm:$0xff]  ;;  %v3224_v33 = vmov 1  }
  0xad   : > { %1010 = vperm.xlu1 %3080, %v3550_v15   ;;  %728 = vmatpush1.bf16.msra.mxu0 %v642_v9 }
  0xae   : > { %1015 = vperm.xlu0 %3079, %v3553_v16   ;;  %2972 = vmatpush1.bf16.msra.mxu1 %v642_v9  ;;  %v608_v40 = vadd.f32 %v607_v59, %v596_v29  ;;  %v598_v53 = vadd.f32 %v597_v11, %v593_v34  ;;  %v3633_v29 = vld [vmem:[%s3407_s28 + $0xe0] sm:$0xff] }
  0xaf   : > { %729 = vmatprep.subr.bf16.mxu0 %v645_v30  ;;  %2971 = vmatprep.subr.bf16.mxu1 %v645_v30 }
  0xb0   : > { %v609_v54 = vrot.slane %v608_v40, 4  ;;  %v599_v45 = vadd.f32 %v598_v53, %v595_v13 }
  0xb1   : > { %1020 = vperm.xlu1 %3080, %v3558_v17   ;;  %730 = vmatpush1.bf16.msra.mxu0 %v644_v52 }
  0xb2   : > { %1025 = vperm.xlu0 %3079, %v3561_v19   ;;  %2973 = vmatpush1.bf16.msra.mxu1 %v644_v52  ;;  %v610_v55 = vadd.f32 %v609_v54, %v608_v40  ;;  %v600_v46 = vrot.slane %v599_v45, 4 }
  0xb4   : > { %v611_v49 = vrot.slane %v610_v55, 2  ;;  %v601_v5 = vadd.f32 %v600_v46, %v599_v45 }
  0xb5   : > { %1030 = vperm.xlu1 %3080, %v3570_v25  }
  0xb6   : > { %1035 = vperm.xlu0 %3079, %v3576_v2   ;;  %v612_v6 = vadd.f32 %v611_v49, %v610_v55  ;;  %v602_v7 = vrot.slane %v601_v5, 2 }
  0xb8   : > { %v613_v18 = vrot.slane %v612_v6, 1  ;;  %v603_v21 = vadd.f32 %v602_v7, %v601_v5 }
  0xb9   : > { %1040 = vperm.xlu1 %3080, %v3588_v10  }
  0xba   : > { %1045 = vperm.xlu0 %3079, %v3592_v35   ;;  %v614_v22 = vadd.f32 %v613_v18, %v612_v6  ;;  %v604_v23 = vrot.slane %v603_v21, 1 }
  0xbc   : > { %v616_v26 = vmul.f32 2.0, %v614_v22  ;;  %v605_v28 = vadd.f32 %v604_v23, %v603_v21  ;;  %v5669_v23 = vlaneseq }
  0xbd   : > { %1050 = vperm.xlu1 %3080, %v3598_v42  }
  0xbe   : > { %1055 = vperm.xlu0 %3079, %v3601_v44   ;;  %v618_v1 = vsub.f32 2.0, %v616_v26  ;;  %v615_v3 = vmul.f32 2.0, %v605_v28 }
  0xc0   : > { %v617_v30 = vsub.f32 2.0, %v615_v3  ;;  %v952_v3 = vld [vmem:[%s3398_s26] sm:$0xf] }
  0xc1   : > { %1060 = vperm.xlu1 %3080, %v3606_v47  }
  0xc2   : > { %1065 = vperm.xlu0 %3079, %v3609_v50   ;;  %v3636_v31 = vcombine.low %v617_v30, %v618_v1 }
  0xc5   : > { %1070 = vperm.xlu1 %3080, %v3614_v12  }
  0xc6   : > { %1075 = vperm.xlu0 %3079, %v3617_v20  }
  0xc9   : > { %1080 = vperm.xlu1 %3080, %v3622_v24  }
  0xca   : > { %1085 = vperm.xlu0 %3079, %v3625_v27  }
  0xcd   : > { %1090 = vperm.xlu1 %3080, %v3630_v4  }
  0xce   : > { %1095 = vperm.xlu0 %3079, %v3633_v29  }
  0xd1   : > { %1100 = vperm.xlu1 %3080, %v3640_v56  }
  0xd2   : > { %1105 = vperm.xlu0 %3079, %v3643_v57  }
  0xd5   : > { %1110 = vperm.xlu1 %3080, %v3648_v58  }
  0xd6   : > { %3081 = vset.pattern.permute.xlu0 %v3224_v33 }
  0xd7   : > { %1261 = vperm.xlu0 %3081, %v3513_v37  }
  0xd9   : > { %3082 = vset.pattern.permute.xlu1 %v3224_v33 }
  0xda   : > { %1265 = vperm.xlu1 %3082, %v3506_v32  }
  0xdb   : > { %v670_v9 = vpop.trf.xlu1  ;;  %v654_v59 = vpop.trf.xlu0  ;;  %1273 = vperm.xlu0 %3081, %v3518_v38  }
  0xdc   : > { %2841 = vmatmul.mubr.msk.bf16.vlgmr.msra.gmra.mrb[0].mxu0 %vm678_vm8, %v654_v59  ;;  %2849 = vmatmul.mubr.msk.bf16.vlgmr.msra.gmra.mrb[0].mxu1 %vm678_vm8, %v670_v9 }
  0xdd   : > { %769 = vmatprep.mubr.bf16.mxu0 %v3223_v0  ;;  %849 = vmatprep.mubr.bf16.mxu1 %v3223_v0 }
  0xde   : > { %1269 = vperm.xlu1 %3082, %v3510_v36  }
  0xdf   : > { %1281 = vperm.xlu0 %3081, %v3526_v41   ;;  %v671_v37 = vpop.trf.xlu1  ;;  %v655_v34 = vpop.trf.xlu0 }
  0xe2   : > { %1277 = vperm.xlu1 %3082, %v3521_v39  }
  0xe3   : > { %1289 = vperm.xlu0 %3081, %v3534_v48   ;;  %v672_v32 = vpop.trf.xlu1  ;;  %v656_v36 = vpop.trf.xlu0 }
  0xe4   : > { %2842 = vmatmul.mubr.msk.bf16.gmra.mrb[4].mxu0 %vm678_vm8, %v655_v34  ;;  %2850 = vmatmul.mubr.msk.bf16.gmra.mrb[4].mxu1 %vm678_vm8, %v671_v37 }
  0xe5   : > { %779 = vmatprep.mubr.bf16.mxu0 %v3223_v0  ;;  %859 = vmatprep.mubr.bf16.mxu1 %v3223_v0 }
  0xe6   : > { %1285 = vperm.xlu1 %3082, %v3529_v43  }
  0xe7   : > { %1297 = vperm.xlu0 %3081, %v3542_v8   ;;  %v673_v38 = vpop.trf.xlu1  ;;  %v657_v39 = vpop.trf.xlu0 }
  0xea   : > { %1293 = vperm.xlu1 %3082, %v3537_v51  }
  0xeb   : > { %1305 = vperm.xlu0 %3081, %v3550_v15   ;;  %v674_v41 = vpop.trf.xlu1  ;;  %v658_v43 = vpop.trf.xlu0 }
  0xec   : > { %2843 = vmatmul.mubr.msk.bf16.gmra.mrb[8].mxu0 %vm678_vm8, %v656_v36  ;;  %2851 = vmatmul.mubr.msk.bf16.gmra.mrb[8].mxu1 %vm678_vm8, %v672_v32 }
  0xed   : > { %789 = vmatprep.mubr.bf16.mxu0 %v3223_v0  ;;  %869 = vmatprep.mubr.bf16.mxu1 %v3223_v0 }
  0xee   : > { %1301 = vperm.xlu1 %3082, %v3545_v14  }
  0xef   : > { %1313 = vperm.xlu0 %3081, %v3558_v17   ;;  %v675_v48 = vpop.trf.xlu1  ;;  %v659_v51 = vpop.trf.xlu0 }
  0xf2   : > { %1309 = vperm.xlu1 %3082, %v3553_v16  }
  0xf3   : > { %1321 = vperm.xlu0 %3081, %v3570_v25   ;;  %v676_v8 = vpop.trf.xlu1  ;;  %v660_v14 = vpop.trf.xlu0 }
  0xf4   : > { %2844 = vmatmul.mubr.msk.bf16.gmra.mrb[12].mxu0 %vm678_vm8, %v657_v39  ;;  %2852 = vmatmul.mubr.msk.bf16.gmra.mrb[12].mxu1 %vm678_vm8, %v673_v38 }
  0xf5   : > { %799 = vmatprep.mubr.bf16.mxu0 %v3223_v0  ;;  %879 = vmatprep.mubr.bf16.mxu1 %v3223_v0 }
  0xf6   : > { %1317 = vperm.xlu1 %3082, %v3561_v19  }
  0xf7   : > { %1329 = vperm.xlu0 %3081, %v3588_v10   ;;  %v677_v15 = vpop.trf.xlu1  ;;  %v661_v16 = vpop.trf.xlu0 }
  0xfa   : > { %1325 = vperm.xlu1 %3082, %v3576_v2  }
  0xfb   : > { %1337 = vperm.xlu0 %3081, %v3598_v42  }
  0xfc   : > { %2845 = vmatmul.mubr.msk.bf16.gmra.mrb[16].mxu0 %vm678_vm8, %v658_v43  ;;  %2853 = vmatmul.mubr.msk.bf16.gmra.mrb[16].mxu1 %vm678_vm8, %v674_v41 }
  0xfd   : > { %809 = vmatprep.mubr.bf16.mxu0 %v3223_v0  ;;  %889 = vmatprep.mubr.bf16.mxu1 %v3223_v0 }
  0xfe   : > { %1333 = vperm.xlu1 %3082, %v3592_v35  }
  0xff   : > { %1345 = vperm.xlu0 %3081, %v3606_v47  }
 0x102   : > { %1341 = vperm.xlu1 %3082, %v3601_v44  }
 0x103   : > { %1353 = vperm.xlu0 %3081, %v3614_v12  }
 0x104   : > { %2846 = vmatmul.mubr.msk.bf16.gmra.mrb[20].mxu0 %vm678_vm8, %v659_v51  ;;  %2854 = vmatmul.mubr.msk.bf16.gmra.mrb[20].mxu1 %vm678_vm8, %v675_v48 }
 0x105   : > { %819 = vmatprep.mubr.bf16.mxu0 %v3223_v0  ;;  %899 = vmatprep.mubr.bf16.mxu1 %v3223_v0 }
 0x106   : > { %1349 = vperm.xlu1 %3082, %v3609_v50  }
 0x107   : > { %1361 = vperm.xlu0 %3081, %v3622_v24   ;;  %v626_v24 = vshrl.u32 %v5669_v23, 7 }
 0x109   : > { %v1116_v28 = vsub.s32 0, %v626_v24  ;;  %v1120_v1 = vsub.s32 2, %v626_v24  ;;  %v1390_v33 = vsub.s32 1, %v626_v24  ;;  %v1394_v9 = vsub.s32 3, %v626_v24 }
 0x10a   : > { %1357 = vperm.xlu1 %3082, %v3617_v20  }
 0x10b   : > { %1369 = vperm.xlu0 %3081, %v3630_v4   ;;  %v1117_v30 = vrot.slane %v952_v3, %v1116_v28  ;;  %v1391_v38 = vrot.slane %v952_v3, %v1390_v33  ;;  %v1395_v39 = vrot.slane %v952_v3, %v1394_v9 }
 0x10c   : > { %2847 = vmatmul.mubr.msk.bf16.gmra.mrb[24].mxu0 %vm678_vm8, %v660_v14  ;;  %2855 = vmatmul.mubr.msk.bf16.gmra.mrb[24].mxu1 %vm678_vm8, %v676_v8 }
 0x10d   : > { %829 = vmatprep.mubr.bf16.mxu0 %v3223_v0  ;;  %909 = vmatprep.mubr.bf16.mxu1 %v3223_v0  ;;  %v3781_v59 = vrot.slane %v1117_v30, %v1116_v28 }
 0x10e   : > { %1365 = vperm.xlu1 %3082, %v3625_v27  }
 0x10f   : > { %1377 = vperm.xlu0 %3081, %v3640_v56   ;;  %v1121_v56 = vrot.slane %v952_v3, %v1120_v1  ;;  %v3809_v1 = vrot.slane %v1391_v38, %v1390_v33  ;;  %v3811_v3 = vrot.slane %v1395_v39, %v1390_v33 }
 0x111   : > { %v3783_v37 = vrot.slane %v1121_v56, %v1116_v28 }
 0x112   : > { %1373 = vperm.xlu1 %3082, %v3633_v29  }
 0x113   : > { %1385 = vperm.xlu0 %3081, %v3648_v58  }
 0x114   : > { %2848 = vmatmul.mubr.msk.bf16.gmra.mrb[28].mxu0 %vm678_vm8, %v661_v16  ;;  %2856 = vmatmul.mubr.msk.bf16.gmra.mrb[28].mxu1 %vm678_vm8, %v677_v15  ;;  %v3712_v17 = vpop.permute.xlu1 %960 }
 0x115   : > { %v1134_v41 = vsub.f32 %v3712_v17, %v3781_v59  ;;  %v1135_v43 = vsub.f32 %v3712_v17, %v3783_v37 }
 0x116   : > { %1381 = vperm.xlu1 %3082, %v3643_v57   ;;  %v3225_v57 = vmov 1966171168  }
 0x117   : > { %v623_v58 = vunpack.c.l.s4 %v3225_v57  ;;  %v3815_v30 = vand.u32 2147483647, %v1134_v41  ;;  %v3817_v56 = vand.u32 2147483647, %v1135_v43 }
 0x118   : > { %v3715_v19 = vpop.permute.xlu1 %965 }
 0x119   : > { %v3717_v0 = vpop.permute.xlu0 %955  ;;  %v624_v36 = vunpack.c.0.s8 %v623_v58  ;;  %v1136_v48 = vsub.f32 %v3715_v19, %v3781_v59  ;;  %v1137_v51 = vsub.f32 %v3715_v19, %v3783_v37 }
 0x11a   : > { %v1132_v8 = vsub.f32 %v3717_v0, %v3781_v59  ;;  %v1133_v14 = vsub.f32 %v3717_v0, %v3783_v37 }
 0x11b   : > { %v3805_v28 = vsub.s32 %v624_v36, %v626_v24  ;;  %v3819_v0 = vand.u32 2147483647, %v1136_v48  ;;  %v3823_v24 = vand.u32 2147483647, %v1137_v51 }
 0x11c   : > { %v3719_v25 = vpop.permute.xlu1 %970  ;;  %v3825_v58 = vand.u32 2147483647, %v1132_v8 }
 0x11d   : > { %v3721_v2 = vpop.permute.xlu0 %975  ;;  %v1138_v15 = vsub.f32 %v3719_v25, %v3781_v59  ;;  %5766 = vst [vmem:[#allocation21_spill] sm:$0xff] %v3805_v28  ;;  %v1139_v17 = vsub.f32 %v3719_v25, %v3783_v37  ;;  %v3827_v25 = vand.u32 2147483647, %v1133_v14 }
 0x11e   : > { %v1140_v57 = vsub.f32 %v3721_v2, %v3781_v59  ;;  %v1141_v33 = vsub.f32 %v3721_v2, %v3783_v37 }
 0x11f   : > { %v3831_v9 = vand.u32 2147483647, %v1138_v15  ;;  %v3839_v41 = vand.u32 2147483647, %v1139_v17 }
 0x120   : > { %v3723_v10 = vpop.permute.xlu1 %980  ;;  %v3847_v51 = vand.u32 2147483647, %v1140_v57 }
 0x121   : > { %v3725_v35 = vpop.permute.xlu0 %985  ;;  %v1142_v36 = vsub.f32 %v3723_v10, %v3781_v59  ;;  %v1143_v38 = vsub.f32 %v3723_v10, %v3783_v37  ;;  %5767 = vst [vmem:[#allocation22_spill] sm:$0xff] %v3839_v41  ;;  %v5825_v41 = vlaneseq }
 0x122   : > { %v1144_v39 = vsub.f32 %v3725_v35, %v3781_v59  ;;  %v1145_v43 = vsub.f32 %v3725_v35, %v3783_v37  ;;  %v3857_v35 = vand.u32 2147483647, %v1141_v33 }
 0x123   : > { %v3867_v61 = vand.u32 2147483647, %v1142_v36  ;;  %vm4175_vm9 = vcmp.lt.s32.totalorder %v5825_v41, 256 }
 0x124   : > { %v3727_v11 = vpop.permute.xlu1 %990  ;;  %5768 = vst [vmem:[#allocation23_spill] sm:$0xff] %v3857_v35  ;;  %v3871_v63 = vand.u32 2147483647, %v1144_v39  ;;  %v3875_v60 = vand.u32 2147483647, %v1145_v43 }
 0x125   : > { %v3729_v13 = vpop.permute.xlu0 %995  ;;  %v1146_v48 = vsub.f32 %v3727_v11, %v3781_v59  ;;  %v1147_v2 = vsub.f32 %v3727_v11, %v3783_v37 }
 0x126   : > { %v1148_v8 = vsub.f32 %v3729_v13, %v3781_v59  ;;  %v1149_v10 = vsub.f32 %v3729_v13, %v3783_v37  ;;  %v3869_v13 = vand.u32 2147483647, %v1143_v38  ;;  %5770 = vst [vmem:[#allocation25_spill] sm:$0xff] %v3871_v63  ;;  %5771 = vst [vmem:[#allocation26_spill] sm:$0xff] %v3875_v60 }
 0x127   : > { %v3879_v62 = vand.u32 2147483647, %v1147_v2 }
 0x128   : > { %v3731_v52 = vpop.permute.xlu1 %1000  ;;  %5769 = vst [vmem:[#allocation24_spill] sm:$0xff] %v3869_v13  ;;  %v3883_v35 = vand.u32 2147483647, %v1148_v8  ;;  %v3885_v36 = vand.u32 2147483647, %v1149_v10 }
 0x129   : > { %v3733_v40 = vpop.permute.xlu0 %1005  ;;  %v1150_v14 = vsub.f32 %v3731_v52, %v3781_v59  ;;  %v1151_v17 = vsub.f32 %v3731_v52, %v3783_v37  ;;  %v3877_v52 = vand.u32 2147483647, %v1146_v48  ;;  %5773 = vst [vmem:[#allocation28_spill] sm:$0xff] %v3879_v62 }
 0x12a   : > { %v1152_v11 = vsub.f32 %v3733_v40, %v3781_v59  ;;  %v1153_v57 = vsub.f32 %v3733_v40, %v3783_v37  ;;  %5774 = vst [vmem:[#allocation29_spill] sm:$0xff] %v3883_v35  ;;  %5775 = vst [vmem:[#allocation30_spill] sm:$0xff] %v3885_v36 }
 0x12b   : > { %5772 = vst [vmem:[#allocation27_spill] sm:$0xff] %v3877_v52  ;;  %v3887_v38 = vand.u32 2147483647, %v1150_v14  ;;  %v3891_v63 = vand.u32 2147483647, %v1151_v17 }
 0x12c   : > { %v3735_v53 = vpop.permute.xlu1 %1010  ;;  %v3893_v43 = vand.u32 2147483647, %v1152_v11  ;;  %v3895_v48 = vand.u32 2147483647, %v1153_v57 }
 0x12d   : > { %v3737_v42 = vpop.permute.xlu0 %1015  ;;  %v1154_v33 = vsub.f32 %v3735_v53, %v3781_v59  ;;  %v1155_v40 = vsub.f32 %v3735_v53, %v3783_v37  ;;  %5776 = vst [vmem:[#allocation31_spill] sm:$0xff] %v3887_v38  ;;  %5777 = vst [vmem:[#allocation32_spill] sm:$0xff] %v3891_v63 }
 0x12e   : > { %v1156_v39 = vsub.f32 %v3737_v42, %v3781_v59  ;;  %5778 = vst [vmem:[#allocation33_spill] sm:$0xff] %v3893_v43  ;;  %5779 = vst [vmem:[#allocation34_spill] sm:$0xff] %v3895_v48  ;;  %v1157_v2 = vsub.f32 %v3737_v42, %v3783_v37 }
 0x12f   : > { %v3899_v60 = vand.u32 2147483647, %v1154_v33  ;;  %v3909_v17 = vand.u32 2147483647, %v1155_v40 }
 0x130   : > { %v3739_v54 = vpop.permute.xlu1 %1020  ;;  %v3919_v48 = vand.u32 2147483647, %v1156_v39 }
 0x131   : > { %v3741_v44 = vpop.permute.xlu0 %1025  ;;  %5780 = vst [vmem:[#allocation35_spill] sm:$0xff] %v3899_v60  ;;  %v1158_v53 = vsub.f32 %v3739_v54, %v3781_v59  ;;  %v1159_v8 = vsub.f32 %v3739_v54, %v3783_v37  ;;  %5781 = vst [vmem:[#allocation36_spill] sm:$0xff] %v3909_v17 }
 0x132   : > { %v1160_v10 = vsub.f32 %v3741_v44, %v3781_v59  ;;  %v1161_v11 = vsub.f32 %v3741_v44, %v3783_v37  ;;  %5782 = vst [vmem:[#allocation37_spill] sm:$0xff] %v3919_v48  ;;  %v3927_v44 = vand.u32 2147483647, %v1157_v2 }
 0x133   : > { %v3935_v48 = vand.u32 2147483647, %v1158_v53  ;;  %v3937_v60 = vand.u32 2147483647, %v1159_v8 }
 0x134   : > { %v3743_v45 = vpop.permute.xlu1 %1030  ;;  %5783 = vst [vmem:[#allocation38_spill] sm:$0xff] %v3927_v44  ;;  %v3939_v36 = vand.u32 2147483647, %v1160_v10  ;;  %v3943_v2 = vand.u32 2147483647, %v1161_v11 }
 0x135   : > { %v3745_v55 = vpop.permute.xlu0 %1035  ;;  %v1162_v42 = vsub.f32 %v3743_v45, %v3781_v59  ;;  %v1163_v57 = vsub.f32 %v3743_v45, %v3783_v37  ;;  %5784 = vst [vmem:[#allocation39_spill] sm:$0xff] %v3935_v48  ;;  %5785 = vst [vmem:[#allocation40_spill] sm:$0xff] %v3937_v60 }
 0x136   : > { %v1164_v54 = vsub.f32 %v3745_v55, %v3781_v59  ;;  %v1165_v40 = vsub.f32 %v3745_v55, %v3783_v37  ;;  %5786 = vst [vmem:[#allocation41_spill] sm:$0xff] %v3939_v36  ;;  %5787 = vst [vmem:[#allocation42_spill] sm:$0xff] %v3943_v2 }
 0x137   : > { %v3945_v44 = vand.u32 2147483647, %v1162_v42 }
 0x138   : > { %v3747_v46 = vpop.permute.xlu1 %1040  ;;  %v3951_v63 = vand.u32 2147483647, %v1164_v54 }
 0x139   : > { %v3749_v47 = vpop.permute.xlu0 %1045  ;;  %v1166_v43 = vsub.f32 %v3747_v46, %v3781_v59  ;;  %v1167_v17 = vsub.f32 %v3747_v46, %v3783_v37  ;;  %5788 = vst [vmem:[#allocation43_spill] sm:$0xff] %v3945_v44  ;;  %v3947_v46 = vand.u32 2147483647, %v1163_v57 }
 0x13a   : > { %v1168_v45 = vsub.f32 %v3749_v47, %v3781_v59  ;;  %v1169_v39 = vsub.f32 %v3749_v47, %v3783_v37  ;;  %5790 = vst [vmem:[#allocation45_spill] sm:$0xff] %v3951_v63  ;;  %v3953_v47 = vand.u32 2147483647, %v1165_v40 }
 0x13b   : > { %5789 = vst [vmem:[#allocation44_spill] sm:$0xff] %v3947_v46  ;;  %v3955_v53 = vand.u32 2147483647, %v1166_v43  ;;  %v3961_v11 = vand.u32 2147483647, %v1167_v17 }
 0x13c   : > { %v3751_v49 = vpop.permute.xlu1 %1050  ;;  %5791 = vst [vmem:[#allocation46_spill] sm:$0xff] %v3953_v47  ;;  %v3963_v42 = vand.u32 2147483647, %v1168_v45  ;;  %v3965_v57 = vand.u32 2147483647, %v1169_v39 }
 0x13d   : > { %v3753_v50 = vpop.permute.xlu0 %1055  ;;  %v1170_v55 = vsub.f32 %v3751_v49, %v3781_v59  ;;  %v1171_v35 = vsub.f32 %v3751_v49, %v3783_v37  ;;  %5792 = vst [vmem:[#allocation47_spill] sm:$0xff] %v3961_v11 }
 0x13e   : > { %v1172_v8 = vsub.f32 %v3753_v50, %v3781_v59  ;;  %5793 = vst [vmem:[#allocation48_spill] sm:$0xff] %v3963_v42  ;;  %5794 = vst [vmem:[#allocation49_spill] sm:$0xff] %v3965_v57  ;;  %v1173_v49 = vsub.f32 %v3753_v50, %v3783_v37 }
 0x13f   : > { %v3971_v40 = vand.u32 2147483647, %v1170_v55  ;;  %v3979_v45 = vand.u32 2147483647, %v1171_v35 }
 0x140   : > { %v3755_v5 = vpop.permute.xlu1 %1060 }
 0x141   : > { %v3757_v6 = vpop.permute.xlu0 %1065  ;;  %5795 = vst [vmem:[#allocation50_spill] sm:$0xff] %v3971_v40  ;;  %v1174_v43 = vsub.f32 %v3755_v5, %v3781_v59  ;;  %v1175_v47 = vsub.f32 %v3755_v5, %v3783_v37  ;;  %5796 = vst [vmem:[#allocation51_spill] sm:$0xff] %v3979_v45  ;;  %v3987_v40 = vand.u32 2147483647, %v1172_v8  ;;  %v3995_v45 = vand.u32 2147483647, %v1173_v49 }
 0x142   : > { %v1176_v17 = vsub.f32 %v3757_v6, %v3781_v59  ;;  %v1177_v39 = vsub.f32 %v3757_v6, %v3783_v37 }
 0x143   : > { %5797 = vst [vmem:[#allocation52_spill] sm:$0xff] %v3987_v40  ;;  %5798 = vst [vmem:[#allocation53_spill] sm:$0xff] %v3995_v45  ;;  %v4003_v8 = vand.u32 2147483647, %v1174_v43  ;;  %v4005_v40 = vand.u32 2147483647, %v1175_v47 }
 0x144   : > { %v3759_v7 = vpop.permute.xlu1 %1070  ;;  %v4007_v63 = vand.u32 2147483647, %v1176_v17  ;;  %v4013_v45 = vand.u32 2147483647, %v1177_v39  ;;  %v5856_v52 = vld [vmem:[#allocation47_spill] sm:$0xff] }
 0x145   : > { %v3761_v12 = vpop.permute.xlu0 %1075  ;;  %v1178_v50 = vsub.f32 %v3759_v7, %v3781_v59  ;;  %v1179_v55 = vsub.f32 %v3759_v7, %v3783_v37  ;;  %5799 = vst [vmem:[#allocation54_spill] sm:$0xff] %v4005_v40 }
 0x146   : > { %v1180_v57 = vsub.f32 %v3761_v12, %v3781_v59  ;;  %v1181_v5 = vsub.f32 %v3761_v12, %v3783_v37  ;;  %5800 = vst [vmem:[#allocation55_spill] sm:$0xff] %v4007_v63  ;;  %5801 = vst [vmem:[#allocation56_spill] sm:$0xff] %v4013_v45 }
 0x147   : > { %v4017_v11 = vand.u32 2147483647, %v1179_v55 }
 0x148   : > { %v3763_v18 = vpop.permute.xlu1 %1080  ;;  %v4023_v47 = vand.u32 2147483647, %v1180_v57  ;;  %v4025_v17 = vand.u32 2147483647, %v1181_v5 }
 0x149   : > { %v3765_v20 = vpop.permute.xlu0 %1085  ;;  %v1182_v35 = vsub.f32 %v3763_v18, %v3781_v59  ;;  %v1183_v6 = vsub.f32 %v3763_v18, %v3783_v37  ;;  %v4015_v18 = vand.u32 2147483647, %v1178_v50 }
 0x14a   : > { %v1184_v42 = vsub.f32 %v3765_v20, %v3781_v59  ;;  %v1185_v7 = vsub.f32 %v3765_v20, %v3783_v37  ;;  %5802 = vst [vmem:[#allocation57_spill] sm:$0xff] %v4023_v47  ;;  %5803 = vst [vmem:[#allocation58_spill] sm:$0xff] %v4025_v17 }
 0x14b   : > { %v4027_v63 = vand.u32 2147483647, %v1182_v35  ;;  %v4031_v39 = vand.u32 2147483647, %v1183_v6 }
 0x14c   : > { %v3767_v21 = vpop.permute.xlu1 %1090  ;;  %v4033_v50 = vand.u32 2147483647, %v1184_v42  ;;  %v4035_v55 = vand.u32 2147483647, %v1185_v7 }
 0x14d   : > { %v3769_v22 = vpop.permute.xlu0 %1095  ;;  %v1186_v12 = vsub.f32 %v3767_v21, %v3781_v59  ;;  %v1187_v20 = vsub.f32 %v3767_v21, %v3783_v37  ;;  %5804 = vst [vmem:[#allocation59_spill] sm:$0xff] %v4027_v63  ;;  %5805 = vst [vmem:[#allocation60_spill] sm:$0xff] %v4031_v39 }
 0x14e   : > { %v1188_v40 = vsub.f32 %v3769_v22, %v3781_v59  ;;  %5806 = vst [vmem:[#allocation61_spill] sm:$0xff] %v4033_v50  ;;  %5807 = vst [vmem:[#allocation62_spill] sm:$0xff] %v4035_v55  ;;  %v1189_v57 = vsub.f32 %v3769_v22, %v3783_v37 }
 0x14f   : > { %v4039_v45 = vand.u32 2147483647, %v1186_v12  ;;  %v4047_v6 = vand.u32 2147483647, %v1187_v20 }
 0x150   : > { %v3772_v26 = vpop.permute.xlu1 %1100  ;;  %v4055_v55 = vand.u32 2147483647, %v1188_v40 }
 0x151   : > { %v3774_v27 = vpop.permute.xlu0 %1105  ;;  %5808 = vst [vmem:[#allocation63_spill] sm:$0xff] %v4039_v45  ;;  %v1190_v5 = vsub.f32 %v3772_v26, %v3781_v59  ;;  %5809 = vst [vmem:[#allocation64_spill] sm:$0xff] %v4047_v6  ;;  %v1191_v42 = vsub.f32 %v3772_v26, %v3783_v37  ;;  %v4075_v45 = vand.u32 2147483647, %v1189_v57 }
 0x152   : > { %5810 = vst [vmem:[#allocation65_spill] sm:$0xff] %v4055_v55  ;;  %v1192_v22 = vsub.f32 %v3774_v27, %v3781_v59  ;;  %v1193_v50 = vsub.f32 %v3774_v27, %v3783_v37 }
 0x153   : > { %5811 = vst [vmem:[#allocation66_spill] sm:$0xff] %v4075_v45  ;;  %v4077_v27 = vand.u32 2147483647, %v1190_v5 }
 0x154   : > { %v3777_v4 = vpop.permute.xlu1 %1110  ;;  %v4093_v57 = vand.u32 2147483647, %v1193_v50 }
 0x155   : > { %v1195_v26 = vsub.f32 %v3777_v4, %v3783_v37  ;;  %5812 = vst [vmem:[#allocation67_spill] sm:$0xff] %v4077_v27  ;;  %v4085_v37 = vand.u32 2147483647, %v1191_v42 }
 0x156   : > { %v3779_v29 = vpop.permute.xlu0 %1261  ;;  %5815 = vst [vmem:[#allocation70_spill] sm:$0xff] %v4093_v57 }
 0x157   : > { %v1406_v21 = vsub.f32 %v3779_v29, %v3809_v1  ;;  %v1407_v35 = vsub.f32 %v3779_v29, %v3811_v3  ;;  %v1194_v29 = vsub.f32 %v3777_v4, %v3781_v59  ;;  %v628_v4 = vrot.slane %v3636_v31, %v3805_v28  ;;  %5813 = vst [vmem:[#allocation68_spill] sm:$0xff] %v4085_v37 }
 0x158   : > { %v4099_v45 = vand.u32 2147483647, %v1195_v26 }
 0x159   : > { %v3785_v34 = vpop.permute.xlu1 %1265  ;;  %v4067_v6 = vand.u32 2147483647, %v1406_v21  ;;  %v4079_v59 = vand.u32 2147483647, %v1407_v35  ;;  %v4095_v5 = vand.u32 2147483647, %v1194_v29 }
 0x15a   : > { %v3787_v32 = vpop.permute.xlu0 %1273  ;;  %v1408_v7 = vsub.f32 %v3785_v34, %v3809_v1  ;;  %v1409_v12 = vsub.f32 %v3785_v34, %v3811_v3  ;;  %5817 = vst [vmem:[#allocation72_spill] sm:$0xff] %v4099_v45 }
 0x15b   : > { %v1412_v34 = vsub.f32 %v3787_v32, %v3809_v1  ;;  %v1413_v40 = vsub.f32 %v3787_v32, %v3811_v3  ;;  %v4091_v32 = vand.u32 2147483647, %v1192_v22  ;;  %5816 = vst [vmem:[#allocation71_spill] sm:$0xff] %v4095_v5 }
 0x15c   : > { %v4087_v21 = vand.u32 2147483647, %v1408_v7  ;;  %v4089_v47 = vand.u32 2147483647, %v1409_v12 }
 0x15d   : > { %v3803_v16 = vpop.permute.xlu1 %1269  ;;  %5814 = vst [vmem:[#allocation69_spill] sm:$0xff] %v4091_v32  ;;  %v4103_v42 = vand.u32 2147483647, %v1412_v34  ;;  %v4105_v7 = vand.u32 2147483647, %v1413_v40 }
 0x15e   : > { %v3813_v19 = vpop.permute.xlu0 %1281  ;;  %v1410_v17 = vsub.f32 %v3803_v16, %v3809_v1  ;;  %v1411_v35 = vsub.f32 %v3803_v16, %v3811_v3 }
 0x15f   : > { %5818 = vst [vmem:[#allocation73_spill] sm:$0xff] %v4105_v7  ;;  %v1416_v50 = vsub.f32 %v3813_v19, %v3809_v1  ;;  %v1417_v16 = vsub.f32 %v3813_v19, %v3811_v3  ;;  %v635_v7 = vrot.slane %v628_v4, %v3805_v28 }
 0x160   : > { %v4109_v22 = vand.u32 2147483647, %v1410_v17  ;;  %v4127_v31 = vand.u32 2147483647, %v1411_v35 }
 0x161   : > { %v3855_v15 = vpop.permute.xlu1 %1277  ;;  %v4145_v5 = vand.u32 2147483647, %v1416_v50  ;;  %641 = vst.msk [vmem:[#allocation3] sm:$0x3] %vm4175_vm9, %v635_v7 }
 0x162   : > { %v3865_v23 = vpop.permute.xlu0 %1289  ;;  %v1414_v40 = vsub.f32 %v3855_v15, %v3809_v1  ;;  %v1415_v17 = vsub.f32 %v3855_v15, %v3811_v3 }
 0x163   : > { %v1420_v19 = vsub.f32 %v3865_v23, %v3809_v1  ;;  %v1421_v45 = vsub.f32 %v3865_v23, %v3811_v3  ;;  %v4147_v23 = vand.u32 2147483647, %v1417_v16 }
 0x164   : > { %v4151_v34 = vand.u32 2147483647, %v1414_v40  ;;  %v4153_v27 = vand.u32 2147483647, %v1415_v17 }
 0x165   : > { %v3907_v14 = vpop.permute.xlu1 %1285  ;;  %5819 = vst [vmem:[#allocation74_spill] sm:$0xff] %v4147_v23  ;;  %v4161_v50 = vand.u32 2147483647, %v1420_v19  ;;  %v4163_v16 = vand.u32 2147483647, %v1421_v45 }
 0x166   : > { %v3917_v33 = vpop.permute.xlu0 %1297  ;;  %v1418_v26 = vsub.f32 %v3907_v14, %v3809_v1  ;;  %v1419_v15 = vsub.f32 %v3907_v14, %v3811_v3 }
 0x167   : > { %v1424_v35 = vsub.f32 %v3917_v33, %v3809_v1  ;;  %v1425_v37 = vsub.f32 %v3917_v33, %v3811_v3  ;;  %5820 = vst [vmem:[#allocation75_spill] sm:$0xff] %v4161_v50  ;;  %5821 = vst [vmem:[#allocation76_spill] sm:$0xff] %v4163_v16 }
 0x168   : > { %v4165_v39 = vand.u32 2147483647, %v1418_v26  ;;  %v4167_v40 = vand.u32 2147483647, %v1419_v15 }
 0x169   : > { %v3959_v10 = vpop.permute.xlu1 %1293  ;;  %v4169_v17 = vand.u32 2147483647, %v1424_v35  ;;  %v4181_v19 = vand.u32 2147483647, %v1425_v37  ;;  %v5832_v37 = vld [vmem:[#allocation23_spill] sm:$0xff] }
 0x16a   : > { %v3969_v54 = vpop.permute.xlu0 %1305  ;;  %v1422_v14 = vsub.f32 %v3959_v10, %v3809_v1  ;;  %v1423_v57 = vsub.f32 %v3959_v10, %v3811_v3  ;;  %5822 = vst [vmem:[#allocation77_spill] sm:$0xff] %v4165_v39  ;;  %5823 = vst [vmem:[#allocation78_spill] sm:$0xff] %v4167_v40  ;;  %v5826_v10 = vmov 0 }
 0x16b   : > { %5824 = vst [vmem:[#allocation79_spill] sm:$0xff] %v4169_v17  ;;  %v5827_v10 = vsel %vm4175_vm9, 4294967295, %v5826_v10  ;;  %5829 = vst [vmem:[#allocation81_spill] sm:$0xff] %v4181_v19  ;;  %v1428_v26 = vsub.f32 %v3969_v54, %v3809_v1  ;;  %v1429_v15 = vsub.f32 %v3969_v54, %v3811_v3 }
 0x16c   : > { %5828 = vst [vmem:[#allocation80_spill] sm:$0xff] %v5827_v10  ;;  %v4191_v4 = vand.u32 2147483647, %v1422_v14  ;;  %v4193_v32 = vand.u32 2147483647, %v1423_v57 }
 0x16d   : > { %v4011_v49 = vpop.permute.xlu1 %1301  ;;  %v4215_v50 = vand.u32 2147483647, %v1428_v26  ;;  %v4217_v54 = vand.u32 2147483647, %v1429_v15 }
 0x16e   : > { %v4021_v43 = vpop.permute.xlu0 %1313  ;;  %5830 = vst [vmem:[#allocation82_spill] sm:$0xff] %v4191_v4  ;;  %5831 = vst [vmem:[#allocation83_spill] sm:$0xff] %v4193_v32  ;;  %v1426_v35 = vsub.f32 %v4011_v49, %v3809_v1  ;;  %v1427_v45 = vsub.f32 %v4011_v49, %v3811_v3 }
 0x16f   : > { %5836 = vst [vmem:[#allocation23_spill] sm:$0xff] %v4215_v50  ;;  %5837 = vst [vmem:[#allocation84_spill] sm:$0xff] %v4217_v54  ;;  %v1432_v16 = vsub.f32 %v4021_v43, %v3809_v1  ;;  %v1433_v49 = vsub.f32 %v4021_v43, %v3811_v3 }
 0x170   : > { %v4231_v15 = vand.u32 2147483647, %v1426_v35  ;;  %v4239_v7 = vand.u32 2147483647, %v1427_v45 }
 0x171   : > { %v4063_v20 = vpop.permute.xlu1 %1309  ;;  %v4247_v38 = vand.u32 2147483647, %v1432_v16  ;;  %v4257_v40 = vand.u32 2147483647, %v1433_v49 }
 0x172   : > { %v4073_v55 = vpop.permute.xlu0 %1321  ;;  %v1430_v10 = vsub.f32 %v4063_v20, %v3809_v1  ;;  %5840 = vst [vmem:[#allocation85_spill] sm:$0xff] %v4231_v15  ;;  %v1431_v19 = vsub.f32 %v4063_v20, %v3811_v3  ;;  %5841 = vst [vmem:[#allocation86_spill] sm:$0xff] %v4239_v7 }
 0x173   : > { %v1436_v28 = vsub.f32 %v4073_v55, %v3809_v1  ;;  %v1437_v23 = vsub.f32 %v4073_v55, %v3811_v3  ;;  %5842 = vst [vmem:[#allocation87_spill] sm:$0xff] %v4247_v38  ;;  %5845 = vst [vmem:[#allocation88_spill] sm:$0xff] %v4257_v40  ;;  %v5857_v38 = vld [vmem:[#allocation45_spill] sm:$0xff] }
 0x174   : > { %v4263_v39 = vand.u32 2147483647, %v1431_v19 }
 0x175   : > { %v4115_v29 = vpop.permute.xlu1 %1317  ;;  %v4267_v14 = vand.u32 2147483647, %v1437_v23 }
 0x176   : > { %v4125_v12 = vpop.permute.xlu0 %1329  ;;  %v1434_v43 = vsub.f32 %v4115_v29, %v3809_v1  ;;  %v1435_v17 = vsub.f32 %v4115_v29, %v3811_v3  ;;  %v4259_v29 = vand.u32 2147483647, %v1430_v10  ;;  %5848 = vst [vmem:[#allocation90_spill] sm:$0xff] %v4263_v39 }
 0x177   : > { %v1440_v35 = vsub.f32 %v4125_v12, %v3809_v1  ;;  %v1441_v20 = vsub.f32 %v4125_v12, %v3811_v3  ;;  %v4265_v12 = vand.u32 2147483647, %v1436_v28  ;;  %5850 = vst [vmem:[#allocation92_spill] sm:$0xff] %v4267_v14 }
 0x178   : > { %5846 = vst [vmem:[#allocation89_spill] sm:$0xff] %v4259_v29  ;;  %v4271_v50 = vand.u32 2147483647, %v1434_v43  ;;  %v4273_v62 = vand.u32 2147483647, %v1435_v17 }
 0x179   : > { %v1326_v33 = vpop.permute.xlu1 %1325  ;;  %5849 = vst [vmem:[#allocation91_spill] sm:$0xff] %v4265_v12  ;;  %v1504_v49 = vand.u32 2147483647, %v1440_v35  ;;  %v1505_v57 = vand.u32 2147483647, %v1441_v20  ;;  %v5858_v12 = vld [vmem:[#allocation46_spill] sm:$0xff] }
 0x17a   : > { %v4171_v63 = vpop.permute.xlu0 %1337  ;;  %v1438_v32 = vsub.f32 %v1326_v33, %v3809_v1  ;;  %v1439_v55 = vsub.f32 %v1326_v33, %v3811_v3  ;;  %5852 = vst [vmem:[#allocation93_spill] sm:$0xff] %v4271_v50  ;;  %5853 = vst [vmem:[#allocation94_spill] sm:$0xff] %v4273_v62 }
 0x17b   : > { %v1444_v43 = vsub.f32 %v4171_v63, %v3809_v1  ;;  %v1568_v45 = vmax.f32.f32 %v3955_v53, %v1504_v49  ;;  %v1445_v40 = vsub.f32 %v4171_v63, %v3811_v3  ;;  %v1569_v60 = vmax.f32.f32 %v5856_v52, %v1505_v57 }
 0x17c   : > { %v1502_v19 = vand.u32 2147483647, %v1438_v32  ;;  %v1503_v4 = vand.u32 2147483647, %v1439_v55  ;;  %v5859_v63 = vmax.f32.f32 %v3825_v58, %v4067_v6 }
 0x17d   : > { %v1334_v41 = vpop.permute.xlu1 %1333  ;;  %v4303_v14 = vand.u32 2147483647, %v1444_v43  ;;  %v4325_v43 = vand.u32 2147483647, %v1445_v40  ;;  %vm4336_vm13 = vcmp.gt.f32.partialorder %v1568_v45, 4.0  ;;  %vm4358_vm1 = vcmp.gt.f32.partialorder %v1569_v60, 4.0 }
 0x17e   : > { %v4229_v26 = vpop.permute.xlu0 %1345  ;;  %v1442_v17 = vsub.f32 %v1334_v41, %v3809_v1  ;;  %v1443_v20 = vsub.f32 %v1334_v41, %v3811_v3  ;;  %v1566_v54 = vmax.f32.f32 %v5857_v38, %v1502_v19  ;;  %v1567_v44 = vmax.f32.f32 %v5858_v12, %v1503_v4  ;;  %v5900_v19 = vld [vmem:[#allocation52_spill] sm:$0xff] }
 0x17f   : > { %v1448_v41 = vsub.f32 %v4229_v26, %v3809_v1  ;;  %v1449_v28 = vsub.f32 %v4229_v26, %v3811_v3  ;;  %vm4311_vm10 = vcmp.gt.f32.partialorder %v5859_v63, 4.0  ;;  %v5862_v26 = vmax.f32.f32 %v3827_v25, %v4079_v59 }
 0x180   : > { %v1506_v55 = vand.u32 2147483647, %v1442_v17  ;;  %v1507_v38 = vand.u32 2147483647, %v1443_v20  ;;  %vm4343_vm14 = vcmp.gt.f32.partialorder %v1566_v54, 4.0  ;;  %vm4347_vm15 = vcmp.gt.f32.partialorder %v1567_v44, 4.0 }
 0x181   : > { %v1342_v33 = vpop.permute.xlu1 %1341  ;;  %vm4321_vm11 = vcmp.gt.f32.partialorder %v5862_v26, 4.0  ;;  %v4340_v25 = vand.u32 2147483647, %v1448_v41  ;;  %v5879_v20 = vld [vmem:[#allocation48_spill] sm:$0xff]  ;;  %v4363_v41 = vand.u32 2147483647, %v1449_v28 }
 0x182   : > { %v1354_v10 = vpop.permute.xlu0 %1353  ;;  %v1446_v53 = vsub.f32 %v1342_v33, %v3809_v1  ;;  %v1447_v4 = vsub.f32 %v1342_v33, %v3811_v3  ;;  %v5865_v33 = vmax.f32.f32 %v3815_v30, %v4087_v21  ;;  %v5874_v30 = vmax.f32.f32 %v3817_v56, %v4089_v47  ;;  %v5880_v26 = vld [vmem:[#allocation49_spill] sm:$0xff] }
 0x183   : > { %v1452_v57 = vsub.f32 %v1354_v10, %v3809_v1  ;;  %v1453_v12 = vsub.f32 %v1354_v10, %v3811_v3  ;;  %v1570_v54 = vmax.f32.f32 %v5879_v20, %v1506_v55  ;;  %v5882_v55 = vld [vmem:[#allocation51_spill] sm:$0xff]  ;;  %v5902_v10 = vld [vmem:[#allocation22_spill] sm:$0xff] }
 0x184   : > { %vm4332_vm12 = vcmp.gt.f32.partialorder %v5865_v33, 4.0  ;;  %vm4354_vm0 = vcmp.gt.f32.partialorder %v5874_v30, 4.0  ;;  %v4365_v63 = vand.u32 2147483647, %v1446_v53  ;;  %v1571_v33 = vmax.f32.f32 %v5880_v26, %v1507_v38  ;;  %v5881_v30 = vld [vmem:[#allocation50_spill] sm:$0xff] }
 0x185   : > { %v1350_v32 = vpop.permute.xlu1 %1349  ;;  %v4369_v46 = vand.u32 2147483647, %v1447_v4  ;;  %v4371_v56 = vand.u32 2147483647, %v1452_v57  ;;  %v4373_v47 = vand.u32 2147483647, %v1453_v12  ;;  %v1572_v62 = vmax.f32.f32 %v5881_v30, %v4303_v14 }
 0x186   : > { %v1362_v49 = vpop.permute.xlu0 %1361  ;;  %v1450_v58 = vsub.f32 %v1350_v32, %v3809_v1  ;;  %v1451_v6 = vsub.f32 %v1350_v32, %v3811_v3  ;;  %v1573_v28 = vmax.f32.f32 %v5882_v55, %v4325_v43  ;;  %v5883_v43 = vld [vmem:[#allocation54_spill] sm:$0xff]  ;;  %v5885_v4 = vmax.f32.f32 %v3819_v0, %v4109_v22 }
 0x187   : > { %v1456_v59 = vsub.f32 %v1362_v49, %v3809_v1  ;;  %v1457_v44 = vsub.f32 %v1362_v49, %v3811_v3  ;;  %vm4410_vm3 = vcmp.gt.f32.partialorder %v1570_v54, 4.0  ;;  %v5890_v54 = vmax.f32.f32 %v3823_v24, %v4127_v31 }
 0x188   : > { %v4379_v20 = vand.u32 2147483647, %v1450_v58  ;;  %v4381_v53 = vand.u32 2147483647, %v1451_v6  ;;  %vm4406_vm2 = vcmp.gt.f32.partialorder %v5885_v4, 4.0  ;;  %vm4432_vm5 = vcmp.gt.f32.partialorder %v1571_v33, 4.0 }
 0x189   : > { %v1358_v60 = vpop.permute.xlu1 %1357  ;;  %v4387_v57 = vand.u32 2147483647, %v1456_v59  ;;  %v4396_v6 = vand.u32 2147483647, %v1457_v44  ;;  %vm4428_vm4 = vcmp.gt.f32.partialorder %v5890_v54, 4.0  ;;  %v5895_v31 = vmax.f32.f32 %v3831_v9, %v4103_v42  ;;  %v5931_v33 = vld [vmem:[#allocation24_spill] sm:$0xff] }
 0x18a   : > { %vm4452_vm7 = vcmp.gt.f32.partialorder %v1572_v62, 4.0  ;;  %v1455_v42 = vsub.f32 %v1358_v60, %v3811_v3 }
 0x18b   : > { %5884 = vst [vmem:[#allocation47_spill] sm:$0xff] %v4396_v6  ;;  %vm4448_vm6 = vcmp.gt.f32.partialorder %v5895_v31, 4.0  ;;  %v5911_v31 = vld [vmem:[#allocation59_spill] sm:$0xff] }
 0x1af   : > { %v4383_v49 = vpop.f32.mrb[0].mxu0  ;;  %v841_v38 = vpop.f32.mrb[0].mxu1 }
 0x1b0   : > { %v4390_v12 = vadd.f32 -5.0, %v4383_v49  ;;  %v2889_v26 = vadd.f32 -5.0, %v841_v38  ;;  %v4392_v14 = vpop.f32.mrb[1].mxu0  ;;  %v843_v30 = vpop.f32.mrb[1].mxu1 }
 0x1b1   : > { %v4399_v55 = vadd.f32 -5.0, %v4392_v14  ;;  %v2890_v2 = vadd.f32 -5.0, %v843_v30  ;;  %v4401_v50 = vpop.f32.mrb[2].mxu0  ;;  %v845_v59 = vpop.f32.mrb[2].mxu1 }
 0x1b2   : > { %v1726_v44 = vsel %vm4311_vm10, %v4383_v49, %v4390_v12  ;;  %v1758_v58 = vsel %vm4343_vm14, %v841_v38, %v2889_v26  ;;  %v4421_v39 = vadd.f32 -5.0, %v4401_v50  ;;  %v2891_v0 = vadd.f32 -5.0, %v845_v59  ;;  %v4423_v22 = vpop.f32.mrb[3].mxu0  ;;  %v847_v4 = vpop.f32.mrb[3].mxu1 }
 0x1b3   : > { %v1727_v40 = vsel %vm4321_vm11, %v4392_v14, %v4399_v55  ;;  %v1759_v49 = vsel %vm4347_vm15, %v843_v30, %v2890_v2  ;;  %v4443_v38 = vadd.f32 -5.0, %v4423_v22  ;;  %v2892_v24 = vadd.f32 -5.0, %v847_v4  ;;  %v1370_v14 = vpop.permute.xlu0 %1369  ;;  %v5901_v55 = vld [vmem:[#allocation53_spill] sm:$0xff] }
 0x1b4   : > { %v1574_v26 = vmax.f32.f32 %v5900_v19, %v4365_v63  ;;  %v1454_v2 = vsub.f32 %v1358_v60, %v3809_v1  ;;  %v1728_v32 = vsel %vm4332_vm12, %v4401_v50, %v4421_v39  ;;  %v1760_v9 = vsel %vm4336_vm13, %v845_v59, %v2891_v0  ;;  %v5903_v60 = vld [vmem:[#allocation73_spill] sm:$0xff]  ;;  %v5912_v19 = vld [vmem:[#allocation60_spill] sm:$0xff] }
 0x1b5   : > { %v1804_v62 = vmax.f32 %v1760_v9, %v1758_v58  ;;  %v1761_v63 = vsel %vm4358_vm1, %v847_v4, %v2892_v24  ;;  %v1575_v54 = vmax.f32.f32 %v5901_v55, %v4369_v46  ;;  %v5904_v58 = vmax.f32.f32 %v5902_v10, %v5903_v60  ;;  %v5909_v46 = vld [vmem:[#allocation55_spill] sm:$0xff]  ;;  %v5910_v4 = vld [vmem:[#allocation56_spill] sm:$0xff] }
 0x1b6   : > { %v1841_v17 = vmax.f32 %v1761_v63, %v1759_v49  ;;  %vm4485_vm10 = vcmp.gt.f32.partialorder %v1573_v28, 4.0  ;;  %v4497_v10 = vand.u32 2147483647, %v1454_v2  ;;  %v1460_v28 = vsub.f32 %v1370_v14, %v3809_v1 }
 0x1b7   : > { %vm4481_vm8 = vcmp.gt.f32.partialorder %v5904_v58, 4.0  ;;  %v771_v63 = vpop.f32.mrb[4].mxu0  ;;  %v851_v55 = vpop.f32.mrb[4].mxu1  ;;  %v4500_v0 = vand.u32 2147483647, %v1455_v42  ;;  %v1461_v24 = vsub.f32 %v1370_v14, %v3811_v3  ;;  %v5913_v9 = vmax.f32.f32 %v3847_v51, %v4151_v34 }
 0x1b8   : > { %v2861_v60 = vadd.f32 -5.0, %v771_v63  ;;  %v2893_v58 = vadd.f32 -5.0, %v851_v55  ;;  %v773_v50 = vpop.f32.mrb[5].mxu0  ;;  %v853_v39 = vpop.f32.mrb[5].mxu1  ;;  %vm4510_vm12 = vcmp.gt.f32.partialorder %v1574_v26, 4.0  ;;  %v5918_v51 = vmax.f32.f32 %v5832_v37, %v4153_v27  ;;  %v5966_v27 = vld [vmem:[#allocation28_spill] sm:$0xff] }
 0x1b9   : > { %v2862_v30 = vadd.f32 -5.0, %v773_v50  ;;  %v2894_v29 = vadd.f32 -5.0, %v853_v39  ;;  %v775_v49 = vpop.f32.mrb[6].mxu0  ;;  %v855_v23 = vpop.f32.mrb[6].mxu1  ;;  %vm4506_vm11 = vcmp.gt.f32.partialorder %v5913_v9, 4.0  ;;  %vm4525_vm14 = vcmp.gt.f32.partialorder %v1575_v54, 4.0 }
 0x1ba   : > { %v1730_v42 = vsel %vm4406_vm2, %v771_v63, %v2861_v60  ;;  %v1762_v14 = vsel %vm4410_vm3, %v851_v55, %v2893_v58  ;;  %v2863_v13 = vadd.f32 -5.0, %v775_v49  ;;  %v2895_v15 = vadd.f32 -5.0, %v855_v23  ;;  %v777_v16 = vpop.f32.mrb[7].mxu0  ;;  %v857_v6 = vpop.f32.mrb[7].mxu1 }
 0x1bb   : > { %vm4521_vm13 = vcmp.gt.f32.partialorder %v5918_v51, 4.0  ;;  %v1790_v36 = vmax.f32 %v1726_v44, %v1730_v42  ;;  %v1806_v9 = vmax.f32 %v1804_v62, %v1762_v14  ;;  %v1731_v48 = vsel %vm4428_vm4, %v773_v50, %v2862_v30  ;;  %v1366_v44 = vpop.permute.xlu1 %1365  ;;  %v5929_v50 = vld [vmem:[#allocation57_spill] sm:$0xff] }
 0x1bc   : > { %v1763_v63 = vsel %vm4432_vm5, %v853_v39, %v2894_v29  ;;  %v5923_v55 = vmax.f32.f32 %v3867_v61, %v4145_v5  ;;  %v5926_v37 = vmax.f32.f32 %v4003_v8, %v4340_v25  ;;  %v1827_v35 = vmax.f32 %v1727_v40, %v1731_v48  ;;  %v5930_v25 = vld [vmem:[#allocation58_spill] sm:$0xff] }
 0x1bd   : > { %v1843_v62 = vmax.f32 %v1841_v17, %v1763_v63  ;;  %v1732_v29 = vsel %vm4448_vm6, %v775_v49, %v2863_v13  ;;  %v1764_v61 = vsel %vm4452_vm7, %v855_v23, %v2895_v15  ;;  %v2864_v30 = vadd.f32 -5.0, %v777_v16  ;;  %v1378_v17 = vpop.permute.xlu0 %1377  ;;  %v5932_v13 = vld [vmem:[#allocation74_spill] sm:$0xff] }
 0x1be   : > { %vm4536_vm15 = vcmp.gt.f32.partialorder %v5923_v55, 4.0  ;;  %vm4543_vm1 = vcmp.gt.f32.partialorder %v5926_v37, 4.0  ;;  %v1791_v5 = vmax.f32 %v1728_v32, %v1732_v29  ;;  %v1808_v52 = vmax.f32 %v1806_v9, %v1764_v61  ;;  %v5940_v61 = vld [vmem:[#allocation25_spill] sm:$0xff] }
 0x1bf   : > { %v2896_v39 = vadd.f32 -5.0, %v857_v6  ;;  %v1582_v8 = vmax.f32.f32 %v5929_v50, %v4497_v10  ;;  %v1583_v60 = vmax.f32.f32 %v5930_v25, %v4500_v0  ;;  %v4555_v58 = vand.u32 2147483647, %v1460_v28  ;;  %v781_v14 = vpop.f32.mrb[8].mxu0  ;;  %v861_v51 = vpop.f32.mrb[8].mxu1  ;;  %v6030_v25 = vld [vmem:[#allocation84_spill] sm:$0xff] }
 0x1c0   : > { %v4557_v40 = vand.u32 2147483647, %v1461_v24  ;;  %v5933_v49 = vmax.f32.f32 %v5931_v33, %v5932_v13  ;;  %v5936_v23 = vmax.f32.f32 %v5883_v43, %v4363_v41  ;;  %v1458_v32 = vsub.f32 %v1366_v44, %v3809_v1  ;;  %v783_v55 = vpop.f32.mrb[9].mxu0  ;;  %v863_v37 = vpop.f32.mrb[9].mxu1 }
 0x1c1   : > { %v1459_v24 = vsub.f32 %v1366_v44, %v3811_v3  ;;  %v1733_v28 = vsel %vm4481_vm8, %v777_v16, %v2864_v30  ;;  %v1765_v42 = vsel %vm4485_vm10, %v857_v6, %v2896_v39  ;;  %v5939_v41 = vsel %vm4354_vm0, %v4423_v22, %v4443_v38  ;;  %v785_v6 = vpop.f32.mrb[10].mxu0  ;;  %v865_v29 = vpop.f32.mrb[10].mxu1  ;;  %v5941_v30 = vld [vmem:[#allocation77_spill] sm:$0xff] }
 0x1c2   : > { %vm4562_vm2 = vcmp.gt.f32.partialorder %v5933_v49, 4.0  ;;  %vm4569_vm3 = vcmp.gt.f32.partialorder %v5936_v23, 4.0  ;;  %v1828_v43 = vmax.f32 %v5939_v41, %v1733_v28  ;;  %v1845_v9 = vmax.f32 %v1843_v62, %v1765_v42  ;;  %v787_v49 = vpop.f32.mrb[11].mxu0  ;;  %v867_v23 = vpop.f32.mrb[11].mxu1  ;;  %v5948_v28 = vld [vmem:[#allocation26_spill] sm:$0xff] }
 0x1c3   : > { %v2865_v48 = vadd.f32 -5.0, %v781_v14  ;;  %v2897_v63 = vadd.f32 -5.0, %v861_v51  ;;  %v1464_v44 = vsub.f32 %v1378_v17, %v3809_v1  ;;  %v1465_v16 = vsub.f32 %v1378_v17, %v3811_v3  ;;  %v5949_v42 = vld [vmem:[#allocation78_spill] sm:$0xff]  ;;  %v4704_v50 = vpop.permute.xlu0 %1385 }
 0x1c4   : > { %v2866_v59 = vadd.f32 -5.0, %v783_v55  ;;  %v2898_v45 = vadd.f32 -5.0, %v863_v37  ;;  %v5942_v21 = vmax.f32.f32 %v5940_v61, %v5941_v30  ;;  %v5945_v22 = vmax.f32.f32 %v5909_v46, %v4379_v20 }
 0x1c5   : > { %v1734_v62 = vsel %vm4506_vm11, %v781_v14, %v2865_v48  ;;  %v1766_v17 = vsel %vm4510_vm12, %v861_v51, %v2897_v63  ;;  %v2867_v33 = vadd.f32 -5.0, %v785_v6  ;;  %v2899_v13 = vadd.f32 -5.0, %v865_v29  ;;  %v5956_v48 = vld [vmem:[#allocation27_spill] sm:$0xff] }
 0x1c6   : > { %vm4589_vm4 = vcmp.gt.f32.partialorder %v5942_v21, 4.0  ;;  %vm4596_vm0 = vcmp.gt.f32.partialorder %v5945_v22, 4.0  ;;  %v5950_v41 = vmax.f32.f32 %v5948_v28, %v5949_v42  ;;  %v5953_v20 = vmax.f32.f32 %v5910_v4, %v4381_v53  ;;  %v5957_v63 = vld [vmem:[#allocation75_spill] sm:$0xff]  ;;  %v6000_v4 = vld [vmem:[#allocation81_spill] sm:$0xff] }
 0x1c7   : > { %v1792_v7 = vmax.f32 %v1790_v36, %v1734_v62  ;;  %v1810_v2 = vmax.f32 %v1808_v52, %v1766_v17  ;;  %v1735_v14 = vsel %vm4521_vm13, %v783_v55, %v2866_v59  ;;  %v1767_v51 = vsel %vm4525_vm14, %v863_v37, %v2898_v45  ;;  %v5964_v22 = vld [vmem:[#allocation63_spill] sm:$0xff]  ;;  %v791_v42 = vpop.f32.mrb[12].mxu0 }
 0x1c8   : > { %vm4607_vm5 = vcmp.gt.f32.partialorder %v5950_v41, 4.0  ;;  %vm4614_vm6 = vcmp.gt.f32.partialorder %v5953_v20, 4.0  ;;  %v5958_v30 = vmax.f32.f32 %v5956_v48, %v5957_v63  ;;  %v5961_v53 = vmax.f32.f32 %v4015_v18, %v4371_v56  ;;  %v5965_v18 = vld [vmem:[#allocation64_spill] sm:$0xff]  ;;  %v871_v41 = vpop.f32.mrb[12].mxu1 }
 0x1c9   : > { %v1829_v36 = vmax.f32 %v1827_v35, %v1735_v14  ;;  %v1847_v34 = vmax.f32 %v1845_v9, %v1767_v51  ;;  %v1736_v26 = vsel %vm4536_vm15, %v785_v6, %v2867_v33  ;;  %v1768_v52 = vsel %vm4543_vm1, %v865_v29, %v2899_v13  ;;  %v1374_v9 = vpop.permute.xlu1 %1373  ;;  %v5967_v6 = vld [vmem:[#allocation76_spill] sm:$0xff]  ;;  %v873_v51 = vpop.f32.mrb[13].mxu1 }
 0x1ca   : > { %vm4625_vm7 = vcmp.gt.f32.partialorder %v5958_v30, 4.0  ;;  %vm4632_vm8 = vcmp.gt.f32.partialorder %v5961_v53, 4.0  ;;  %v1793_v55 = vmax.f32 %v1791_v5, %v1736_v26  ;;  %v1812_v37 = vmax.f32 %v1810_v2, %v1768_v52  ;;  %v875_v15 = vpop.f32.mrb[14].mxu1  ;;  %v5975_v53 = vld [vmem:[#allocation82_spill] sm:$0xff] }
 0x1cb   : > { %v2868_v59 = vadd.f32 -5.0, %v787_v49  ;;  %v2900_v45 = vadd.f32 -5.0, %v867_v23  ;;  %v1588_v62 = vmax.f32.f32 %v5964_v22, %v4555_v58  ;;  %v1589_v56 = vmax.f32.f32 %v5965_v18, %v4557_v40 }
 0x1cc   : > { %v4644_v17 = vand.u32 2147483647, %v1458_v32  ;;  %v4646_v35 = vand.u32 2147483647, %v1459_v24  ;;  %v5968_v33 = vmax.f32.f32 %v5966_v27, %v5967_v6  ;;  %v5971_v5 = vmax.f32.f32 %v4017_v11, %v4373_v47  ;;  %v793_v47 = vpop.f32.mrb[13].mxu0  ;;  %v5981_v27 = vld [vmem:[#allocation30_spill] sm:$0xff] }
 0x1cd   : > { %v4662_v13 = vand.u32 2147483647, %v1464_v44  ;;  %v4664_v32 = vand.u32 2147483647, %v1465_v16  ;;  %v1737_v24 = vsel %vm4562_vm2, %v787_v49, %v2868_v59  ;;  %v1769_v28 = vsel %vm4569_vm3, %v867_v23, %v2900_v45  ;;  %v795_v30 = vpop.f32.mrb[14].mxu0  ;;  %v5974_v49 = vld [vmem:[#allocation29_spill] sm:$0xff] }
 0x1ce   : > { %vm4651_vm10 = vcmp.gt.f32.partialorder %v5968_v33, 4.0  ;;  %vm4658_vm11 = vcmp.gt.f32.partialorder %v5971_v5, 4.0  ;;  %v1830_v20 = vmax.f32 %v1828_v43, %v1737_v24  ;;  %v1849_v2 = vmax.f32 %v1847_v34, %v1769_v28  ;;  %v797_v45 = vpop.f32.mrb[15].mxu0  ;;  %v5982_v6 = vld [vmem:[#allocation83_spill] sm:$0xff] }
 0x1cf   : > { %v2869_v14 = vadd.f32 -5.0, %v791_v42  ;;  %v2901_v11 = vadd.f32 -5.0, %v871_v41  ;;  %v1462_v48 = vsub.f32 %v1374_v9, %v3809_v1  ;;  %v1463_v44 = vsub.f32 %v1374_v9, %v3811_v3  ;;  %v877_v9 = vpop.f32.mrb[15].mxu1  ;;  %v5988_v28 = vld [vmem:[#allocation31_spill] sm:$0xff] }
 0x1d0   : > { %v2870_v16 = vadd.f32 -5.0, %v793_v47  ;;  %v2902_v63 = vadd.f32 -5.0, %v873_v51  ;;  %v5976_v12 = vmax.f32.f32 %v5974_v49, %v5975_v53  ;;  %vm4682_vm13 = vcmp.gt.f32.partialorder %v1582_v8, 4.0  ;;  %v5998_v49 = vld [vmem:[#allocation67_spill] sm:$0xff] }
 0x1d1   : > { %v1738_v34 = vsel %vm4589_vm4, %v791_v42, %v2869_v14  ;;  %v1770_v26 = vsel %vm4596_vm0, %v871_v41, %v2901_v11  ;;  %v2871_v52 = vadd.f32 -5.0, %v795_v30  ;;  %v2903_v59 = vadd.f32 -5.0, %v875_v15  ;;  %v5989_v42 = vld [vmem:[#allocation79_spill] sm:$0xff]  ;;  %v6029_v14 = vld [vmem:[#allocation36_spill] sm:$0xff] }
 0x1d2   : > { %vm4675_vm12 = vcmp.gt.f32.partialorder %v5976_v12, 4.0  ;;  %v5983_v33 = vmax.f32.f32 %v5981_v27, %v5982_v6  ;;  %vm4700_vm15 = vcmp.gt.f32.partialorder %v1583_v60, 4.0  ;;  %v1794_v8 = vmax.f32 %v1792_v7, %v1738_v34  ;;  %v6004_v53 = vld [vmem:[#allocation47_spill] sm:$0xff]  ;;  %v881_v27 = vpop.f32.mrb[16].mxu1  ;;  %v6039_v12 = vld [vmem:[#allocation89_spill] sm:$0xff] }
 0x1d3   : > { %v1814_v39 = vmax.f32 %v1812_v37, %v1770_v26  ;;  %v1739_v38 = vsel %vm4607_vm5, %v793_v47, %v2870_v16  ;;  %v1771_v24 = vsel %vm4614_vm6, %v873_v51, %v2902_v63  ;;  %v5990_v41 = vmax.f32.f32 %v5988_v28, %v5989_v42  ;;  %v5996_v16 = vld [vmem:[#allocation61_spill] sm:$0xff] }
 0x1d4   : > { %vm4693_vm14 = vcmp.gt.f32.partialorder %v5983_v33, 4.0  ;;  %v5993_v0 = vmax.f32.f32 %v5911_v31, %v4387_v57  ;;  %v1831_v60 = vmax.f32 %v1829_v36, %v1739_v38  ;;  %v1851_v61 = vmax.f32 %v1849_v2, %v1771_v24  ;;  %v5997_v57 = vld [vmem:[#allocation62_spill] sm:$0xff]  ;;  %v1382_v2 = vpop.permute.xlu1 %1381  ;;  %v883_v24 = vpop.f32.mrb[17].mxu1 }
 0x1d5   : > { %vm4713_vm1 = vcmp.gt.f32.partialorder %v5990_v41, 4.0  ;;  %v1740_v46 = vsel %vm4625_vm7, %v795_v30, %v2871_v52  ;;  %v1772_v7 = vsel %vm4632_vm8, %v875_v15, %v2903_v59  ;;  %v2872_v47 = vadd.f32 -5.0, %v797_v45  ;;  %v5999_v30 = vld [vmem:[#allocation32_spill] sm:$0xff]  ;;  %v801_v59 = vpop.f32.mrb[16].mxu0  ;;  %v885_v54 = vpop.f32.mrb[18].mxu1 }
 0x1d6   : > { %vm4720_vm2 = vcmp.gt.f32.partialorder %v5993_v0, 4.0  ;;  %v1795_v37 = vmax.f32 %v1793_v55, %v1740_v46  ;;  %v1816_v11 = vmax.f32 %v1814_v39, %v1772_v7  ;;  %v2904_v51 = vadd.f32 -5.0, %v877_v9  ;;  %v803_v38 = vpop.f32.mrb[17].mxu0  ;;  %v6009_v0 = vld [vmem:[#allocation85_spill] sm:$0xff] }
 0x1d7   : > { %v1586_v63 = vmax.f32.f32 %v5996_v16, %v4644_v17  ;;  %v1587_v31 = vmax.f32.f32 %v5997_v57, %v4646_v35  ;;  %v1592_v36 = vmax.f32.f32 %v5998_v49, %v4662_v13  ;;  %v1468_v21 = vsub.f32 %v4704_v50, %v3809_v1  ;;  %v805_v41 = vpop.f32.mrb[18].mxu0  ;;  %v6014_v16 = vld [vmem:[#allocation86_spill] sm:$0xff] }
 0x1d8   : > { %v6001_v15 = vmax.f32.f32 %v5999_v30, %v6000_v4  ;;  %v6005_v17 = vmax.f32.f32 %v5912_v19, %v6004_v53  ;;  %v4750_v35 = vand.u32 2147483647, %v1462_v48  ;;  %v4752_v34 = vand.u32 2147483647, %v1463_v44  ;;  %v807_v7 = vpop.f32.mrb[19].mxu0  ;;  %v6019_v53 = vld [vmem:[#allocation23_spill] sm:$0xff] }
 0x1d9   : > { %v1741_v26 = vsel %vm4651_vm10, %v797_v45, %v2872_v47  ;;  %v1773_v52 = vsel %vm4658_vm11, %v877_v9, %v2904_v51  ;;  %v2873_v39 = vadd.f32 -5.0, %v801_v59  ;;  %v2905_v19 = vadd.f32 -5.0, %v881_v27  ;;  %v6008_v45 = vld [vmem:[#allocation33_spill] sm:$0xff]  ;;  %v887_v47 = vpop.f32.mrb[19].mxu1  ;;  %v6013_v51 = vld [vmem:[#allocation34_spill] sm:$0xff] }
 0x1da   : > { %vm4739_vm3 = vcmp.gt.f32.partialorder %v6001_v15, 4.0  ;;  %vm4746_vm4 = vcmp.gt.f32.partialorder %v6005_v17, 4.0  ;;  %v1832_v6 = vmax.f32 %v1830_v20, %v1741_v26  ;;  %v1853_v33 = vmax.f32 %v1851_v61, %v1773_v52  ;;  %v6018_v15 = vld [vmem:[#allocation35_spill] sm:$0xff]  ;;  %v6057_v52 = vld [vmem:[#allocation40_spill] sm:$0xff] }
 0x1db   : > { %v1466_v28 = vsub.f32 %v1382_v2, %v3809_v1  ;;  %v1467_v48 = vsub.f32 %v1382_v2, %v3811_v3  ;;  %v2874_v44 = vadd.f32 -5.0, %v803_v38  ;;  %v2906_v42 = vadd.f32 -5.0, %v883_v24 }
 0x1dc   : > { %v6010_v29 = vmax.f32.f32 %v6008_v45, %v6009_v0  ;;  %v1742_v20 = vsel %vm4675_vm12, %v801_v59, %v2873_v39  ;;  %v1774_v61 = vsel %vm4682_vm13, %v881_v27, %v2905_v19  ;;  %v2875_v1 = vadd.f32 -5.0, %v805_v41  ;;  %v6037_v45 = vld [vmem:[#allocation66_spill] sm:$0xff] }
 0x1dd   : > { %v2907_v46 = vadd.f32 -5.0, %v885_v54  ;;  %v6015_v57 = vmax.f32.f32 %v6013_v51, %v6014_v16  ;;  %v1796_v30 = vmax.f32 %v1794_v8, %v1742_v20  ;;  %v1818_v4 = vmax.f32 %v1816_v11, %v1774_v61  ;;  %v6038_v61 = vld [vmem:[#allocation37_spill] sm:$0xff]  ;;  %v6043_v16 = vld [vmem:[#allocation38_spill] sm:$0xff] }
 0x1de   : > { %vm4763_vm0 = vcmp.gt.f32.partialorder %v6010_v29, 4.0  ;;  %v1743_v23 = vsel %vm4693_vm14, %v803_v38, %v2874_v44  ;;  %v1775_v43 = vsel %vm4700_vm15, %v883_v24, %v2906_v42  ;;  %v6020_v17 = vmax.f32.f32 %v6018_v15, %v6019_v53  ;;  %v811_v24 = vpop.f32.mrb[20].mxu0  ;;  %v891_v44 = vpop.f32.mrb[20].mxu1 }
 0x1df   : > { %vm4774_vm5 = vcmp.gt.f32.partialorder %v6015_v57, 4.0  ;;  %vm4792_vm7 = vcmp.gt.f32.partialorder %v1588_v62, 4.0  ;;  %v1833_v8 = vmax.f32 %v1831_v60, %v1743_v23  ;;  %v1855_v5 = vmax.f32 %v1853_v33, %v1775_v43  ;;  %v6044_v57 = vld [vmem:[#allocation90_spill] sm:$0xff] }
 0x1e0   : > { %vm4785_vm6 = vcmp.gt.f32.partialorder %v6020_v17, 4.0  ;;  %v1744_v10 = vsel %vm4713_vm1, %v805_v41, %v2875_v1  ;;  %v1776_v11 = vsel %vm4720_vm2, %v885_v54, %v2907_v46  ;;  %v2876_v39 = vadd.f32 -5.0, %v807_v7  ;;  %v893_v54 = vpop.f32.mrb[21].mxu1  ;;  %v6048_v17 = vld [vmem:[#allocation39_spill] sm:$0xff] }
 0x1e1   : > { %v1797_v59 = vmax.f32 %v1795_v37, %v1744_v10  ;;  %v1805_v27 = vmax.f32 %v1776_v11, %v1818_v4  ;;  %v2908_v19 = vadd.f32 -5.0, %v887_v47  ;;  %v1469_v38 = vsub.f32 %v4704_v50, %v3811_v3  ;;  %v6036_v50 = vld [vmem:[#allocation65_spill] sm:$0xff]  ;;  %v895_v20 = vpop.f32.mrb[22].mxu1 }
 0x1e2   : > { %v4802_v58 = vand.u32 2147483647, %v1468_v21  ;;  %vm4804_vm8 = vcmp.gt.f32.partialorder %v1586_v63, 4.0  ;;  %vm4808_vm10 = vcmp.gt.f32.partialorder %v1587_v31, 4.0  ;;  %v6031_v60 = vmax.f32.f32 %v6029_v14, %v6030_v25  ;;  %v897_v51 = vpop.f32.mrb[23].mxu1  ;;  %v6053_v25 = vld [vmem:[#allocation68_spill] sm:$0xff] }
 0x1e3   : > { %vm4822_vm12 = vcmp.gt.f32.partialorder %v1589_v56, 4.0  ;;  %v1590_v63 = vmax.f32.f32 %v6036_v50, %v4750_v35  ;;  %v4828_v31 = vand.u32 2147483647, %v1466_v28  ;;  %v1745_v21 = vsel %vm4739_vm3, %v807_v7, %v2876_v39  ;;  %v813_v56 = vpop.f32.mrb[21].mxu0 }
 0x1e4   : > { %vm4815_vm11 = vcmp.gt.f32.partialorder %v6031_v60, 4.0  ;;  %v1777_v33 = vsel %vm4746_vm4, %v887_v47, %v2908_v19  ;;  %v1834_v42 = vmax.f32 %v1832_v6, %v1745_v21  ;;  %v2877_v40 = vadd.f32 -5.0, %v811_v24  ;;  %v815_v55 = vpop.f32.mrb[22].mxu0  ;;  %v6054_v21 = vld [vmem:[#allocation71_spill] sm:$0xff] }
 0x1e5   : > { %v1842_v41 = vmax.f32 %v1777_v33, %v1855_v5  ;;  %v2909_v18 = vadd.f32 -5.0, %v891_v44  ;;  %v1591_v0 = vmax.f32.f32 %v6037_v45, %v4752_v34  ;;  %v4836_v35 = vand.u32 2147483647, %v1467_v48  ;;  %v817_v47 = vpop.f32.mrb[23].mxu0  ;;  %v6049_v5 = vld [vmem:[#allocation87_spill] sm:$0xff]  ;;  %v6067_v45 = vld [vmem:[#allocation70_spill] sm:$0xff] }
 0x1e6   : > { %v2878_v28 = vadd.f32 -5.0, %v813_v56  ;;  %v2910_v29 = vadd.f32 -5.0, %v893_v54  ;;  %v6040_v1 = vmax.f32.f32 %v6038_v61, %v6039_v12  ;;  %v1746_v6 = vsel %vm4763_vm0, %v811_v24, %v2877_v40 }
 0x1e7   : > { %v1778_v7 = vsel %vm4804_vm8, %v891_v44, %v2909_v18  ;;  %v2879_v34 = vadd.f32 -5.0, %v815_v55  ;;  %v2911_v48 = vadd.f32 -5.0, %v895_v20  ;;  %v6045_v4 = vmax.f32.f32 %v6043_v16, %v6044_v57  ;;  %v901_v44 = vpop.f32.mrb[24].mxu1 }
 0x1e8   : > { %vm4841_vm13 = vcmp.gt.f32.partialorder %v6040_v1, 4.0  ;;  %v1798_v43 = vmax.f32 %v1796_v30, %v1746_v6  ;;  %v1807_v15 = vmax.f32 %v1805_v27, %v1778_v7  ;;  %v1747_v9 = vsel %vm4774_vm5, %v813_v56, %v2878_v28  ;;  %v903_v37 = vpop.f32.mrb[25].mxu1 }
 0x1e9   : > { %vm4852_vm14 = vcmp.gt.f32.partialorder %v6045_v4, 4.0  ;;  %v1779_v53 = vsel %vm4808_vm10, %v893_v54, %v2910_v29  ;;  %v6050_v10 = vmax.f32.f32 %v6048_v17, %v6049_v5  ;;  %v1835_v39 = vmax.f32 %v1833_v8, %v1747_v9  ;;  %v6058_v8 = vld [vmem:[#allocation88_spill] sm:$0xff]  ;;  %v6066_v54 = vld [vmem:[#allocation69_spill] sm:$0xff] }
 0x1ea   : > { %v1844_v19 = vmax.f32 %v1842_v41, %v1779_v53  ;;  %v1748_v22 = vsel %vm4785_vm6, %v815_v55, %v2879_v34  ;;  %v1780_v30 = vsel %vm4792_vm7, %v895_v20, %v2911_v48  ;;  %v2880_v14 = vadd.f32 -5.0, %v817_v47  ;;  %v905_v20 = vpop.f32.mrb[26].mxu1  ;;  %v6068_v48 = vld [vmem:[#allocation43_spill] sm:$0xff]  ;;  %v6073_v17 = vld [vmem:[#allocation41_spill] sm:$0xff] }
 0x1eb   : > { %vm4863_vm15 = vcmp.gt.f32.partialorder %v6050_v10, 4.0  ;;  %v1799_v2 = vmax.f32 %v1797_v59, %v1748_v22  ;;  %v1809_v27 = vmax.f32 %v1807_v15, %v1780_v30  ;;  %v2912_v62 = vadd.f32 -5.0, %v897_v51  ;;  %v907_v6 = vpop.f32.mrb[27].mxu1  ;;  %v6074_v5 = vld [vmem:[#allocation93_spill] sm:$0xff]  ;;  %v6079_v22 = vld [vmem:[#allocation94_spill] sm:$0xff] }
 0x1ec   : > { %v1593_v60 = vmax.f32.f32 %v6053_v25, %v4664_v32  ;;  %v4873_v50 = vand.u32 2147483647, %v1469_v38  ;;  %v1596_v33 = vmax.f32.f32 %v6054_v21, %v4802_v58  ;;  %vm4880_vm1 = vcmp.gt.f32.partialorder %v1592_v36, 4.0  ;;  %v821_v58 = vpop.f32.mrb[24].mxu0  ;;  %v6088_v25 = vld [vmem:[#allocation72_spill] sm:$0xff] }
 0x1ed   : > { %v6059_v59 = vmax.f32.f32 %v6057_v52, %v6058_v8  ;;  %v1749_v32 = vsel %vm4815_vm11, %v817_v47, %v2880_v14  ;;  %v1781_v38 = vsel %vm4822_vm12, %v897_v51, %v2912_v62  ;;  %vm4895_vm3 = vcmp.gt.f32.partialorder %v1590_v63, 4.0  ;;  %v823_v56 = vpop.f32.mrb[25].mxu0  ;;  %v6069_v47 = vld [vmem:[#allocation91_spill] sm:$0xff] }
 0x1ee   : > { %vm4899_vm4 = vcmp.gt.f32.partialorder %v1591_v0, 4.0  ;;  %v1836_v36 = vmax.f32 %v1834_v42, %v1749_v32  ;;  %v1846_v41 = vmax.f32 %v1844_v19, %v1781_v38  ;;  %v2881_v40 = vadd.f32 -5.0, %v821_v58  ;;  %v825_v55 = vpop.f32.mrb[26].mxu0 }
 0x1ef   : > { %vm4887_vm2 = vcmp.gt.f32.partialorder %v6059_v59, 4.0  ;;  %v2913_v18 = vadd.f32 -5.0, %v901_v44  ;;  %v1594_v3 = vmax.f32.f32 %v6066_v54, %v4828_v31  ;;  %v1595_v28 = vmax.f32.f32 %v6067_v45, %v4836_v35  ;;  %v827_v1 = vpop.f32.mrb[27].mxu0  ;;  %v911_v59 = vpop.f32.mrb[28].mxu1 }
 0x1f0   : > { %v2882_v63 = vadd.f32 -5.0, %v823_v56  ;;  %v2914_v29 = vadd.f32 -5.0, %v903_v37  ;;  %v1750_v0 = vsel %vm4841_vm13, %v821_v58, %v2881_v40  ;;  %v2883_v61 = vadd.f32 -5.0, %v825_v55  ;;  %v831_v8 = vpop.f32.mrb[28].mxu0  ;;  %v913_v49 = vpop.f32.mrb[29].mxu1 }
 0x1f1   : > { %v1782_v42 = vsel %vm4895_vm3, %v901_v44, %v2913_v18  ;;  %v2915_v12 = vadd.f32 -5.0, %v905_v20  ;;  %v1800_v7 = vmax.f32 %v1798_v43, %v1750_v0  ;;  %v6070_v51 = vmax.f32.f32 %v6068_v48, %v6069_v47  ;;  %v833_v13 = vpop.f32.mrb[29].mxu0  ;;  %v915_v18 = vpop.f32.mrb[30].mxu1 }
 0x1f2   : > { %v1811_v34 = vmax.f32 %v1809_v27, %v1782_v42  ;;  %v1751_v31 = vsel %vm4852_vm14, %v823_v56, %v2882_v63  ;;  %v1783_v35 = vsel %vm4899_vm4, %v903_v37, %v2914_v29  ;;  %v1752_v4 = vsel %vm4863_vm15, %v825_v55, %v2883_v61  ;;  %v6083_v27 = vld [vmem:[#allocation44_spill] sm:$0xff]  ;;  %v835_v40 = vpop.f32.mrb[30].mxu0  ;;  %v917_v45 = vpop.f32.mrb[31].mxu1 }
 0x1f3   : > { %vm4918_vm0 = vcmp.gt.f32.partialorder %v6070_v51, 4.0  ;;  %v1837_v16 = vmax.f32 %v1835_v39, %v1751_v31  ;;  %v1848_v57 = vmax.f32 %v1846_v41, %v1783_v35  ;;  %v1784_v43 = vsel %vm4880_vm1, %v905_v20, %v2915_v12  ;;  %v6078_v39 = vld [vmem:[#allocation42_spill] sm:$0xff] }
 0x1f4   : > { %v1801_v23 = vmax.f32 %v1799_v2, %v1752_v4  ;;  %v1813_v15 = vmax.f32 %v1811_v34, %v1784_v43  ;;  %v2884_v9 = vadd.f32 -5.0, %v827_v1  ;;  %v2916_v53 = vadd.f32 -5.0, %v907_v6  ;;  %v6084_v2 = vld [vmem:[#allocation92_spill] sm:$0xff] }
 0x1f5   : > { %vm1657_vm5 = vcmp.gt.f32.partialorder %v1593_v60, 4.0  ;;  %v6075_v10 = vmax.f32.f32 %v6073_v17, %v6074_v5  ;;  %v6080_v30 = vmax.f32.f32 %v6078_v39, %v6079_v22  ;;  %v6085_v14 = vmax.f32.f32 %v6083_v27, %v6084_v2 }
 0x1f6   : > { %v1597_v60 = vmax.f32.f32 %v6088_v25, %v4873_v50  ;;  %vm4949_vm10 = vcmp.gt.f32.partialorder %v1596_v33, 4.0  ;;  %v1753_v26 = vsel %vm4887_vm2, %v827_v1, %v2884_v9  ;;  %v1785_v52 = vsel %vm1657_vm5, %v907_v6, %v2916_v53 }
 0x1f7   : > { %vm4929_vm6 = vcmp.gt.f32.partialorder %v6075_v10, 4.0  ;;  %vm4936_vm7 = vcmp.gt.f32.partialorder %v6080_v30, 4.0  ;;  %vm4943_vm8 = vcmp.gt.f32.partialorder %v6085_v14, 4.0  ;;  %v1838_v32 = vmax.f32 %v1836_v36, %v1753_v26  ;;  %v6095_v30 = vld [vmem:[#allocation21_spill] sm:$0xff] }
 0x1f8   : > { %v1850_v38 = vmax.f32 %v1848_v57, %v1785_v52  ;;  %v2885_v58 = vadd.f32 -5.0, %v831_v8  ;;  %v2917_v44 = vadd.f32 -5.0, %v911_v59  ;;  %vm4955_vm11 = vcmp.gt.f32.partialorder %v1594_v3, 4.0  ;;  %v837_v3 = vpop.f32.mrb[31].mxu0 }
 0x1f9   : > { %vm4959_vm12 = vcmp.gt.f32.partialorder %v1595_v28, 4.0  ;;  %v2886_v33 = vadd.f32 -5.0, %v833_v13  ;;  %v2918_v24 = vadd.f32 -5.0, %v913_v49  ;;  %v2887_v37 = vadd.f32 -5.0, %v835_v40 }
 0x1fa   : > { %v1754_v36 = vsel %vm4929_vm6, %v831_v8, %v2885_v58  ;;  %v1786_v56 = vsel %vm4955_vm11, %v911_v59, %v2917_v44  ;;  %v2919_v54 = vadd.f32 -5.0, %v915_v18  ;;  %v2888_v55 = vadd.f32 -5.0, %v837_v3 }
 0x1fb   : > { %v1802_v63 = vmax.f32 %v1800_v7, %v1754_v36  ;;  %v1755_v28 = vsel %vm4936_vm7, %v833_v13, %v2886_v33  ;;  %v1787_v29 = vsel %vm4959_vm12, %v913_v49, %v2918_v24  ;;  %v1756_v0 = vsel %vm4918_vm0, %v835_v40, %v2887_v37 }
 0x1fc   : > { %v1839_v20 = vmax.f32 %v1837_v16, %v1755_v28  ;;  %v1788_v42 = vsel %vm4949_vm10, %v915_v18, %v2919_v54  ;;  %v2920_v61 = vadd.f32 -5.0, %v917_v45  ;;  %vm1661_vm13 = vcmp.gt.f32.partialorder %v1597_v60, 4.0 }
 0x1fd   : > { %v1815_v12 = vmax.f32 %v1813_v15, %v1802_v63  ;;  %v1803_v1 = vmax.f32 %v1801_v23, %v1756_v0  ;;  %v1757_v6 = vsel %vm4943_vm8, %v837_v3, %v2888_v55 }
 0x1fe   : > { %v1852_v7 = vmax.f32 %v1850_v38, %v1839_v20  ;;  %v1840_v34 = vmax.f32 %v1838_v32, %v1757_v6  ;;  %v1789_v31 = vsel %vm1661_vm13, %v917_v45, %v2920_v61 }
 0x1ff   : > { %v1817_v35 = vmax.f32 %v1815_v12, %v1786_v56 }
 0x200   : > { %v1854_v48 = vmax.f32 %v1852_v7, %v1787_v29 }
 0x201   : > { %v1819_v47 = vmax.f32 %v1817_v35, %v1803_v1 }
 0x202   : > { %v1856_v51 = vmax.f32 %v1854_v48, %v1840_v34 }
 0x203   : > { %v1820_v16 = vmax.f32 %v1788_v42, %v1819_v47 }
 0x204   : > { %v1857_v46 = vmax.f32 %v1789_v31, %v1856_v51 }
 0x205   : > { %v1821_v57 = vrot.slane %v1820_v16, 4 }
 0x206   : > { %v1858_v4 = vrot.slane %v1857_v46, 4 }
 0x207   : > { %v1822_v43 = vmax.f32 %v1820_v16, %v1821_v57 }
 0x208   : > { %v1859_v9 = vmax.f32 %v1857_v46, %v1858_v4 }
 0x209   : > { %v1823_v53 = vrot.slane %v1822_v43, 2 }
 0x20a   : > { %v1860_v17 = vrot.slane %v1859_v9, 2 }
 0x20b   : > { %v1824_v15 = vmax.f32 %v1822_v43, %v1823_v53 }
 0x20c   : > { %v1861_v23 = vmax.f32 %v1859_v9, %v1860_v17 }
 0x20d   : > { %v1825_v5 = vrot.slane %v1824_v15, 1 }
 0x20e   : > { %v1862_v10 = vrot.slane %v1861_v23, 1 }
 0x20f   : > { %v1826_v19 = vmax.f32 %v1824_v15, %v1825_v5 }
 0x210   : > { %v1863_v39 = vmax.f32 %v1861_v23, %v1862_v10 }
 0x212   : > { %v1866_v22 = vcombine.low %v1826_v19, %v1863_v39 }
 0x214   : > { %v1873_v11 = vrot.slane %v1866_v22, %v6095_v30 }
 0x216   : > { %v1880_v27 = vrot.slane %v1873_v11, %v6095_v30 }
 0x218   : > { %1882 = vst.msk [vmem:[#allocation2] sm:$0x3] %vm4175_vm9, %v1880_v27 }
 0x219 PF: > { %v1883_v14 = vld [vmem:[%s3450_s22] sm:$0xff]  ;;  %v1884_v62 = vld [vmem:[%s3450_s22 + $0x8] sm:$0xff]  ;;  %v1885_v25 = vld [vmem:[%s3450_s22 + $0x10] sm:$0xff]  ;;  %v3226_v59 = vmov 0   ;;  %v3227_v3 = vmov 1   ;;  %vm1931_vm15 = vcmask 261120  }
 0x21a   : > { %v1886_v21 = vld [vmem:[%s3450_s22 + $0x18] sm:$0xff]  ;;  %v1887_v26 = vmul.f32 %v1883_v14, %v1883_v14  ;;  %v1888_v52 = vmul.f32 %v1884_v62, %v1884_v62  ;;  %v1889_v8 = vmul.f32 %v1885_v25, %v1885_v25  ;;  %3091 = vset.pattern.permute.xlu1 %v3226_v59  ;;  %v2070_v49 = vld [vmem:[%s3414_s20 + $0x8] sm:$0xff]  ;;  %1988 = vmatprep.mubr.bf16.mxu0 %v3226_v59  ;;  %v2071_v29 = vld [vmem:[%s3414_s20 + $0x10] sm:$0xff]  ;;  %p2961_p6 = scmp.ne.s32.totalorder %s3205_s29, 1 }
 0x21b   : > { %v2069_v32 = vld [vmem:[%s3414_s20] sm:$0xff]  ;;  %v1890_v44 = vmul.f32 %v1886_v21, %v1886_v21  ;;  %2028 = vmatprep.mubr.bf16.mxu1 %v3226_v59  ;;  %v2072_v24 = vld [vmem:[%s3414_s20 + $0x18] sm:$0xff]  ;;  %v2074_v61 = vld [vmem:[%s3414_s20 + $0x28] sm:$0xff] }
 0x21c   : > { %2088 = vperm.xlu1 %3091, %v2069_v32   ;;  %v1891_v13 = vadd.f32 %v1888_v52, %v1887_v26  ;;  %v2073_v36 = vld [vmem:[%s3414_s20 + $0x20] sm:$0xff]  ;;  %v2076_v48 = vld [vmem:[%s3414_s20 + $0x38] sm:$0xff]  ;;  %v2078_v51 = vld [vmem:[%s3414_s20 + $0x48] sm:$0xff] }
 0x21d   : > { %v2077_v47 = vld [vmem:[%s3414_s20 + $0x40] sm:$0xff]  ;;  %v2080_v16 = vld [vmem:[%s3414_s20 + $0x58] sm:$0xff]  ;;  %v2075_v46 = vld [vmem:[%s3414_s20 + $0x30] sm:$0xff] }
 0x21e   : > { %v6098_v38 = vld [vmem:[#allocation17_spill] sm:$0xff]  ;;  %v1892_v41 = vadd.f32 %v1891_v13, %v1889_v8  ;;  %v6100_v50 = vld [vmem:[#allocation18_spill] sm:$0xff]  ;;  %v2084_v53 = vld [vmem:[%s3414_s20 + $0x78] sm:$0xff] }
 0x21f   : > { %v6097_v60 = vld [vmem:[#allocation19_spill] sm:$0xff]  ;;  %v6099_v58 = vld [vmem:[#allocation20_spill] sm:$0xff]  ;;  %v2082_v43 = vld [vmem:[%s3414_s20 + $0x68] sm:$0xff] }
 0x220   : > { %1956 = vmatprep.subr.bf16.mxu0 %v6097_v60  ;;  %2974 = vmatprep.subr.bf16.mxu1 %v6097_v60  ;;  %v1893_v33 = vadd.f32 %v1892_v41, %v1890_v44  ;;  %v2079_v57 = vld [vmem:[%s3414_s20 + $0x50] sm:$0xff]  ;;  %v2081_v4 = vld [vmem:[%s3414_s20 + $0x60] sm:$0xff] }
 0x221   : > { %1957 = vmatpush1.bf16.msra.mxu0 %v6098_v38  ;;  %2976 = vmatpush1.bf16.msra.mxu1 %v6098_v38  ;;  %v2083_v9 = vld [vmem:[%s3414_s20 + $0x70] sm:$0xff]  ;;  %v2085_v44 = vld [vmem:[%s3393_s11] sm:$0xf] }
 0x222   : > { %1958 = vmatprep.subr.bf16.mxu0 %v6099_v58  ;;  %2975 = vmatprep.subr.bf16.mxu1 %v6099_v58  ;;  %v1894_v40 = vrot.slane %v1893_v33, 4 }
 0x223   : > { %2093 = vperm.xlu1 %3091, %v2070_v49  }
 0x224   : > { %v1895_v18 = vadd.f32 %v1894_v40, %v1893_v33 }
 0x225   : > { %1959 = vmatpush1.bf16.msra.mxu0 %v6100_v50  ;;  %2977 = vmatpush1.bf16.msra.mxu1 %v6100_v50 }
 0x226   : > { %v1896_v56 = vrot.slane %v1895_v18, 2 }
 0x227   : > { %2103 = vperm.xlu1 %3091, %v2072_v24  }
 0x228   : > { %v1897_v37 = vadd.f32 %v1896_v56, %v1895_v18 }
 0x22a   : > { %v1898_v54 = vrot.slane %v1897_v37, 1 }
 0x22b   : > { %2108 = vperm.xlu1 %3091, %v2073_v36  }
 0x22c   : > { %v1899_v45 = vadd.f32 %v1898_v54, %v1897_v37 }
 0x22e   : > { %3107 = vrsqrt.f32 %v1899_v45  ;;  %vm1902_vm9 = vcmp.eq.f32.partialorder %v1899_v45, inf  ;;  %v1905_v28 = vand.u32 2147483648, %v1899_v45  ;;  %vm1904_vm14 = vcmp.eq.f32.partialorder %v1899_v45, 0.0 }
 0x22f   : > { %3093 = vset.pattern.permute.xlu1 %v3227_v3 }
 0x230   : > { %2250 = vperm.xlu1 %3093, %v2069_v32  }
 0x234   : > { %2254 = vperm.xlu1 %3093, %v2070_v49  }
 0x238   : > { %v3108_v63 = vpop.eup %3107  ;;  %2258 = vperm.xlu1 %3093, %v2071_v29  }
 0x239   : > { %v1901_v55 = vmul.f32 %v3108_v63, %v1899_v45 }
 0x23b   : > { %v1903_v20 = vsel %vm1902_vm9, %v1899_v45, %v1901_v55 }
 0x23c   : > { %v1906_v0 = vsel %vm1904_vm14, %v1905_v28, %v1903_v20  ;;  %2262 = vperm.xlu1 %3093, %v2072_v24  }
 0x23d   : > { %v1907_v42 = vmax.f32 %v1906_v0, 1e-12 }
 0x23f   : > { %3109 = vrcp.f32 %v1907_v42 }
 0x240   : > { %3094 = vset.pattern.permute.xlu1 %v3226_v59 }
 0x241   : > { %2113 = vperm.xlu1 %3094, %v2074_v61  }
 0x245   : > { %3095 = vset.pattern.permute.xlu1 %v3227_v3 }
 0x246   : > { %2266 = vperm.xlu1 %3095, %v2073_v36  }
 0x249   : > { %v3110_v12 = vpop.eup %3109 }
 0x24a   : > { %v1909_v1 = vmul.f32 %v3110_v12, %v1883_v14  ;;  %v1910_v6 = vmul.f32 %v3110_v12, %v1884_v62  ;;  %v1911_v7 = vmul.f32 %v3110_v12, %v1885_v25  ;;  %v1912_v34 = vmul.f32 %v3110_v12, %v1886_v21  ;;  %2270 = vperm.xlu1 %3095, %v2074_v61  }
 0x24c   : > { %v1913_v31 = vpack.c.bf16 %v1910_v6, %v1909_v1  ;;  %v1914_v35 = vpack.c.bf16 %v1912_v34, %v1911_v7 }
 0x24e   : > { %1915 = vxpose.xlu0.c.b16.start [1/2] (short) %v1913_v31, 128  ;;  %3096 = vset.pattern.permute.xlu1 %v3226_v59 }
 0x24f   : > { %2123 = vperm.xlu1 %3096, %v2076_v48  }
 0x252   : > { %1916 = vxpose.xlu0.c.b16.end [2/2] (short) %v1914_v35, 128 }
 0x253   : > { %3097 = vset.pattern.permute.xlu1 %v3227_v3 }
 0x254   : > { %2278 = vperm.xlu1 %3097, %v2076_v48  }
 0x258   : > { %3098 = vset.pattern.permute.xlu1 %v3226_v59 }
 0x259   : > { %2128 = vperm.xlu1 %3098, %v2077_v47  }
 0x25b   : > { %3092 = vset.pattern.permute.xlu0 %v3226_v59 }
 0x25d   : > { %3099 = vset.pattern.permute.xlu1 %v3227_v3 }
 0x25e   : > { %2282 = vperm.xlu1 %3099, %v2077_v47  }
 0x262   : > { %2286 = vperm.xlu1 %3099, %v2078_v51  }
 0x266   : > { %3100 = vset.pattern.permute.xlu1 %v3226_v59 }
 0x267   : > { %2143 = vperm.xlu1 %3100, %v2080_v16  }
 0x26b   : > { %3101 = vset.pattern.permute.xlu1 %v3227_v3 }
 0x26c   : > { %2294 = vperm.xlu1 %3101, %v2080_v16  }
 0x270   : > { %3102 = vset.pattern.permute.xlu1 %v3226_v59 }
 0x271   : > { %2148 = vperm.xlu1 %3102, %v2081_v4  }
 0x273   : > { %2098 = vperm.xlu0 %3092, %v2071_v29  }
 0x275   : > { %3103 = vset.pattern.permute.xlu1 %v3227_v3 }
 0x276   : > { %2298 = vperm.xlu1 %3103, %v2081_v4  }
 0x277   : > { %2118 = vperm.xlu0 %3092, %v2075_v46  }
 0x27a   : > { %2302 = vperm.xlu1 %3103, %v2082_v43  }
 0x27b   : > { %2133 = vperm.xlu0 %3092, %v2078_v51  }
 0x27e   : > { %3105 = vset.pattern.permute.xlu1 %v3226_v59 }
 0x27f   : > { %2138 = vperm.xlu0 %3092, %v2079_v57   ;;  %2163 = vperm.xlu1 %3105, %v2084_v53  }
 0x283   : > { %2153 = vperm.xlu0 %3092, %v2082_v43   ;;  %3106 = vset.pattern.permute.xlu1 %v3227_v3 }
 0x284   : > { %2310 = vperm.xlu1 %3106, %v2084_v53  }
 0x287   : > { %2158 = vperm.xlu0 %3092, %v2083_v9  }
 0x28b   : > { %3104 = vset.pattern.permute.xlu0 %v3227_v3 }
 0x28c   : > { %2274 = vperm.xlu0 %3104, %v2075_v46  }
 0x290   : > { %2290 = vperm.xlu0 %3104, %v2079_v57  }
 0x294   : > { %2306 = vperm.xlu0 %3104, %v2083_v9  }
 0x29b   : > { %v2089_v30 = vpop.permute.xlu1 %2088 }
 0x2a2   : > { %v2094_v11 = vpop.permute.xlu1 %2093 }
 0x2a6   : > { %v2104_v27 = vpop.permute.xlu1 %2103 }
 0x2aa   : > { %v2109_v2 = vpop.permute.xlu1 %2108 }
 0x2af   : > { %v2251_v14 = vpop.permute.xlu1 %2250 }
 0x2b3   : > { %v2255_v62 = vpop.permute.xlu1 %2254 }
 0x2b4   : > { %v1923_v17 = vpop.trf.xlu0 }
 0x2b5   : > { %2921 = vmatmul.mubr.msk.bf16.vlgmr.msra.gmra.mrb[0].mxu0 %vm1931_vm15, %v1923_v17 }
 0x2b6   : > { %1998 = vmatprep.mubr.bf16.mxu0 %v3226_v59 }
 0x2b7   : > { %v5041_v25 = vpop.permute.xlu1 %2258 }
 0x2b8   : > { %v1924_v15 = vpop.trf.xlu0 }
 0x2bb   : > { %v2263_v60 = vpop.permute.xlu1 %2262 }
 0x2bc   : > { %v1925_v23 = vpop.trf.xlu0 }
 0x2bd   : > { %2922 = vmatmul.mubr.msk.bf16.gmra.mrb[4].mxu0 %vm1931_vm15, %v1924_v15 }
 0x2be   : > { %2008 = vmatprep.mubr.bf16.mxu0 %v3226_v59 }
 0x2c0   : > { %v1926_v5 = vpop.trf.xlu0  ;;  %v5043_v21 = vpop.permute.xlu1 %2113 }
 0x2c4   : > { %v1927_v10 = vpop.trf.xlu0 }
 0x2c5   : > { %2923 = vmatmul.mubr.msk.bf16.gmra.mrb[8].mxu0 %vm1931_vm15, %v1925_v23  ;;  %2925 = vmatmul.mubr.msk.bf16.vlgmr.msra.gmra.mrb[0].mxu1 %vm1931_vm15, %v1927_v10  ;;  %v5045_v26 = vpop.permute.xlu1 %2266 }
 0x2c6   : > { %2018 = vmatprep.mubr.bf16.mxu0 %v3226_v59  ;;  %2038 = vmatprep.mubr.bf16.mxu1 %v3226_v59 }
 0x2c8   : > { %v1928_v19 = vpop.trf.xlu0 }
 0x2c9   : > { %v5047_v52 = vpop.permute.xlu1 %2270 }
 0x2cc   : > { %v1929_v39 = vpop.trf.xlu0 }
 0x2cd   : > { %2924 = vmatmul.mubr.msk.bf16.gmra.mrb[12].mxu0 %vm1931_vm15, %v1926_v5  ;;  %2926 = vmatmul.mubr.msk.bf16.gmra.mrb[4].mxu1 %vm1931_vm15, %v1928_v19 }
 0x2ce   : > { %2048 = vmatprep.mubr.bf16.mxu1 %v3226_v59  ;;  %v5049_v8 = vpop.permute.xlu1 %2123 }
 0x2d0   : > { %v1930_v22 = vpop.trf.xlu0 }
 0x2d3   : > { %v5054_v38 = vpop.permute.xlu1 %2278 }
 0x2d5   : > { %2927 = vmatmul.mubr.msk.bf16.gmra.mrb[8].mxu1 %vm1931_vm15, %v1929_v39 }
 0x2d6   : > { %2058 = vmatprep.mubr.bf16.mxu1 %v3226_v59  ;;  %v5737_v59 = vlaneseq }
 0x2d8   : > { %v5052_v32 = vshrl.u32 %v5737_v59, 7  ;;  %v5065_v50 = vpop.permute.xlu1 %2128 }
 0x2da   : > { %6101 = vst [vmem:[#allocation19_spill] sm:$0xff] %v5052_v32  ;;  %v5057_v58 = vsub.s32 0, %v5052_v32  ;;  %v2173_v13 = vsub.s32 2, %v5052_v32  ;;  %v5062_v49 = vsub.s32 1, %v5052_v32  ;;  %v2319_v41 = vsub.s32 3, %v5052_v32 }
 0x2dc   : > { %6102 = vst [vmem:[#allocation17_spill] sm:$0xff] %v5057_v58  ;;  %6103 = vst [vmem:[#allocation20_spill] sm:$0xff] %v5062_v49  ;;  %v2170_v33 = vrot.slane %v2085_v44, %v5057_v58  ;;  %v2174_v24 = vrot.slane %v2085_v44, %v2173_v13  ;;  %v2316_v40 = vrot.slane %v2085_v44, %v5062_v49 }
 0x2dd   : > { %2928 = vmatmul.mubr.msk.bf16.gmra.mrb[12].mxu1 %vm1931_vm15, %v1930_v22  ;;  %v2320_v18 = vrot.slane %v2085_v44, %v2319_v41  ;;  %v5077_v54 = vpop.permute.xlu1 %2282 }
 0x2de   : > { %v5072_v56 = vrot.slane %v2170_v33, %v5057_v58  ;;  %v5075_v37 = vrot.slane %v2174_v24, %v5057_v58  ;;  %v5080_v3 = vrot.slane %v2316_v40, %v5062_v49 }
 0x2df   : > { %v5083_v45 = vrot.slane %v2320_v18, %v5062_v49 }
 0x2e0   : > { %6104 = vst [vmem:[#allocation18_spill] sm:$0xff] %v5072_v56  ;;  %6105 = vst [vmem:[#allocation95_spill] sm:$0xff] %v5075_v37  ;;  %v2185_v28 = vsub.f32 %v2089_v30, %v5072_v56  ;;  %v2186_v29 = vsub.f32 %v2089_v30, %v5075_v37  ;;  %v2187_v55 = vsub.f32 %v2094_v11, %v5072_v56 }
 0x2e1   : > { %v2331_v20 = vsub.f32 %v2251_v14, %v5080_v3  ;;  %v2332_v0 = vsub.f32 %v2251_v14, %v5083_v45  ;;  %v2188_v42 = vsub.f32 %v2094_v11, %v5075_v37  ;;  %v2333_v61 = vsub.f32 %v2255_v62, %v5080_v3  ;;  %v5095_v1 = vpop.permute.xlu1 %2286 }
 0x2e2   : > { %v2334_v12 = vsub.f32 %v2255_v62, %v5083_v45  ;;  %v5097_v6 = vand.u32 2147483647, %v2185_v28  ;;  %v2191_v7 = vsub.f32 %v2104_v27, %v5072_v56  ;;  %v2192_v34 = vsub.f32 %v2104_v27, %v5075_v37 }
 0x2e3   : > { %v5103_v35 = vand.u32 2147483647, %v2186_v29  ;;  %v2193_v48 = vsub.f32 %v2109_v2, %v5072_v56  ;;  %v2337_v47 = vsub.f32 %v2263_v60, %v5080_v3  ;;  %v2338_v51 = vsub.f32 %v2263_v60, %v5083_v45 }
 0x2e4   : > { %v5108_v16 = vand.u32 2147483647, %v2187_v55  ;;  %v2194_v46 = vsub.f32 %v2109_v2, %v5075_v37  ;;  %v2363_v57 = vand.u32 2147483647, %v2331_v20  ;;  %v2364_v4 = vand.u32 2147483647, %v2332_v0 }
 0x2e5   : > { %v5111_v43 = vand.u32 2147483647, %v2188_v42  ;;  %v5113_v9 = vand.u32 2147483647, %v2333_v61  ;;  %v5115_v53 = vand.u32 2147483647, %v2334_v12  ;;  %v2335_v17 = vsub.f32 %v5041_v25, %v5080_v3 }
 0x2e6   : > { %v5119_v15 = vand.u32 2147483647, %v2191_v7  ;;  %v5121_v23 = vand.u32 2147483647, %v2192_v34  ;;  %v2336_v5 = vsub.f32 %v5041_v25, %v5083_v45  ;;  %v5125_v10 = vand.u32 2147483647, %v2193_v48  ;;  %v5131_v22 = vpop.permute.xlu1 %2143 }
 0x2e7   : > { %v5127_v19 = vand.u32 2147483647, %v2337_v47  ;;  %v5129_v39 = vand.u32 2147483647, %v2338_v51  ;;  %v5133_v30 = vand.u32 2147483647, %v2194_v46  ;;  %v2395_v11 = vmax.f32.f32 %v5097_v6, %v2363_v57 }
 0x2e8   : > { %v2396_v27 = vmax.f32.f32 %v5103_v35, %v2364_v4  ;;  %v2339_v2 = vsub.f32 %v5045_v26, %v5080_v3  ;;  %v2397_v62 = vmax.f32.f32 %v5108_v16, %v5113_v9  ;;  %v2398_v25 = vmax.f32.f32 %v5111_v43, %v5115_v53 }
 0x2e9   : > { %v5145_v60 = vand.u32 2147483647, %v2335_v17  ;;  %v2340_v44 = vsub.f32 %v5045_v26, %v5083_v45  ;;  %v5149_v13 = vand.u32 2147483647, %v2336_v5  ;;  %v2195_v41 = vsub.f32 %v5043_v21, %v5072_v56 }
 0x2ea   : > { %v2196_v33 = vsub.f32 %v5043_v21, %v5075_v37  ;;  %v2341_v24 = vsub.f32 %v5047_v52, %v5080_v3  ;;  %v2342_v26 = vsub.f32 %v5047_v52, %v5083_v45  ;;  %v2199_v28 = vsub.f32 %v5049_v8, %v5072_v56 }
 0x2eb   : > { %v5165_v29 = vand.u32 2147483647, %v2339_v2  ;;  %v2200_v21 = vsub.f32 %v5049_v8, %v5075_v37  ;;  %v2345_v55 = vsub.f32 %v5054_v38, %v5080_v3  ;;  %v2346_v20 = vsub.f32 %v5054_v38, %v5083_v45  ;;  %v5181_v12 = vpop.permute.xlu1 %2294 }
 0x2ec   : > { %v5173_v0 = vand.u32 2147483647, %v2340_v44  ;;  %v2201_v42 = vsub.f32 %v5065_v50, %v5072_v56  ;;  %v2202_v52 = vsub.f32 %v5065_v50, %v5075_v37  ;;  %v2347_v61 = vsub.f32 %v5077_v54, %v5080_v3 }
 0x2ed   : > { %v5183_v8 = vand.u32 2147483647, %v2195_v41  ;;  %v5185_v6 = vand.u32 2147483647, %v2196_v33  ;;  %v5187_v7 = vand.u32 2147483647, %v2341_v24  ;;  %v2348_v38 = vsub.f32 %v5077_v54, %v5083_v45 }
 0x2ee   : > { %v5197_v48 = vand.u32 2147483647, %v2342_v26  ;;  %v5199_v47 = vand.u32 2147483647, %v2199_v28  ;;  %v5203_v16 = vand.u32 2147483647, %v2200_v21  ;;  %v2349_v17 = vsub.f32 %v5095_v1, %v5080_v3 }
 0x2ef   : > { %v5205_v46 = vand.u32 2147483647, %v2345_v55  ;;  %v5207_v54 = vand.u32 2147483647, %v2346_v20  ;;  %v5211_v4 = vand.u32 2147483647, %v2201_v42  ;;  %v2350_v5 = vsub.f32 %v5095_v1, %v5083_v45 }
 0x2f0   : > { %v5213_v43 = vand.u32 2147483647, %v2202_v52  ;;  %vm5217_vm1 = vcmp.gt.f32.partialorder %v2395_v11, 4.0  ;;  %v5221_v53 = vand.u32 2147483647, %v2348_v38  ;;  %v2207_v2 = vsub.f32 %v5131_v22, %v5072_v56  ;;  %v2149_v26 = vpop.permute.xlu1 %2148 }
 0x2f1   : > { %vm5229_vm2 = vcmp.gt.f32.partialorder %v2396_v27, 4.0  ;;  %v2208_v24 = vsub.f32 %v5131_v22, %v5075_v37  ;;  %vm5237_vm3 = vcmp.gt.f32.partialorder %v2397_v62, 4.0  ;;  %vm5251_vm4 = vcmp.gt.f32.partialorder %v2398_v25, 4.0 }
 0x2f2   : > { %v5069_v36 = vpop.permute.xlu0 %2098  ;;  %v5265_v38 = vand.u32 2147483647, %v2349_v17  ;;  %v5267_v25 = vand.u32 2147483647, %v2350_v5  ;;  %v2354_v17 = vsub.f32 %v5181_v12, %v5083_v45  ;;  %v2210_v51 = vsub.f32 %v2149_v26, %v5075_v37 }
 0x2f3   : > { %v2189_v35 = vsub.f32 %v5069_v36, %v5072_v56  ;;  %v2190_v50 = vsub.f32 %v5069_v36, %v5075_v37  ;;  %v5215_v36 = vand.u32 2147483647, %v2347_v61  ;;  %v5275_v21 = vand.u32 2147483647, %v2208_v24 }
 0x2f4   : > { %6114 = vst [vmem:[#allocation96_spill] sm:$0xff] %v5267_v25  ;;  %v5331_v28 = vand.u32 2147483647, %v2354_v17  ;;  %v6143_v58 = vmax.f32.f32 %v5199_v47, %v5205_v46 }
 0x2f5   : > { %v2221_v41 = vand.u32 2147483647, %v2189_v35  ;;  %v2222_v11 = vand.u32 2147483647, %v2190_v50  ;;  %v5269_v35 = vand.u32 2147483647, %v2207_v2 }
 0x2f6   : > { %v5085_v63 = vpop.permute.xlu0 %2118  ;;  %vm5456_vm14 = vcmp.gt.f32.partialorder %v6143_v58, 4.0 }
 0x2f7   : > { %v2197_v33 = vsub.f32 %v5085_v63, %v5072_v56  ;;  %v2198_v55 = vsub.f32 %v5085_v63, %v5075_v37  ;;  %v2399_v50 = vmax.f32.f32 %v2221_v41, %v5145_v60  ;;  %v2400_v59 = vmax.f32.f32 %v2222_v11, %v5149_v13  ;;  %v2299_v41 = vpop.permute.xlu1 %2298 }
 0x2f9   : > { %v5273_v62 = vand.u32 2147483647, %v2197_v33  ;;  %v5277_v27 = vand.u32 2147483647, %v2198_v55  ;;  %v2209_v55 = vsub.f32 %v2149_v26, %v5072_v56  ;;  %vm5314_vm5 = vcmp.gt.f32.partialorder %v2399_v50, 4.0 }
 0x2fa   : > { %v5101_v31 = vpop.permute.xlu0 %2133  ;;  %vm5318_vm6 = vcmp.gt.f32.partialorder %v2400_v59, 4.0  ;;  %v2355_v50 = vsub.f32 %v2299_v41, %v5080_v3  ;;  %v6125_v26 = vmax.f32.f32 %v5125_v10, %v5165_v29 }
 0x2fb   : > { %v2203_v52 = vsub.f32 %v5101_v31, %v5072_v56  ;;  %v2204_v61 = vsub.f32 %v5101_v31, %v5075_v37  ;;  %v2353_v31 = vsub.f32 %v5181_v12, %v5080_v3  ;;  %v2303_v22 = vpop.permute.xlu1 %2302 }
 0x2fc   : > { %vm5363_vm8 = vcmp.gt.f32.partialorder %v6125_v26, 4.0  ;;  %v2357_v32 = vsub.f32 %v2303_v22, %v5080_v3 }
 0x2fd   : > { %v5285_v63 = vand.u32 2147483647, %v2203_v52  ;;  %v5287_v60 = vand.u32 2147483647, %v2204_v61  ;;  %v5310_v9 = vand.u32 2147483647, %v2353_v31 }
 0x2fe   : > { %v5139_v14 = vpop.permute.xlu0 %2138 }
 0x2ff   : > { %v2205_v13 = vsub.f32 %v5139_v14, %v5072_v56  ;;  %v2206_v24 = vsub.f32 %v5139_v14, %v5075_v37  ;;  %v6115_v14 = vmax.f32.f32 %v5119_v15, %v5127_v19  ;;  %v6122_v15 = vmax.f32.f32 %v5121_v23, %v5129_v39 }
 0x300   : > { %v2356_v23 = vsub.f32 %v2299_v41, %v5083_v45 }
 0x301   : > { %vm5306_vm0 = vcmp.gt.f32.partialorder %v6115_v14, 4.0  ;;  %vm5325_vm7 = vcmp.gt.f32.partialorder %v6122_v15, 4.0  ;;  %v5336_v31 = vand.u32 2147483647, %v2205_v13 }
 0x302   : > { %v5191_v34 = vpop.permute.xlu0 %2153 }
 0x303   : > { %v2211_v61 = vsub.f32 %v5191_v34, %v5072_v56  ;;  %v2212_v17 = vsub.f32 %v5191_v34, %v5075_v37  ;;  %v5357_v34 = vand.u32 2147483647, %v2355_v50 }
 0x306   : > { %v5249_v20 = vpop.permute.xlu0 %2158 }
 0x307   : > { %v2214_v13 = vsub.f32 %v5249_v20, %v5075_v37 }
 0x30b   : > { %v2275_v12 = vpop.permute.xlu0 %2274 }
 0x30c   : > { %v2343_v41 = vsub.f32 %v2275_v12, %v5080_v3  ;;  %v2344_v15 = vsub.f32 %v2275_v12, %v5083_v45 }
 0x388   : > { %v1990_v42 = vpop.f32.mrb[0].mxu0 }
 0x389   : > { %v2929_v5 = vadd.f32 -5.0, %v1990_v42  ;;  %v5283_v2 = vpop.f32.mrb[1].mxu0 }
 0x38a   : > { %v2930_v11 = vadd.f32 -5.0, %v5283_v2  ;;  %v1994_v33 = vpop.f32.mrb[2].mxu0 }
 0x38b   : > { %v2491_v1 = vsel %vm5217_vm1, %v1990_v42, %v2929_v5  ;;  %v2931_v52 = vadd.f32 -5.0, %v1994_v33  ;;  %v1996_v57 = vpop.f32.mrb[3].mxu0  ;;  %v6131_v5 = vmax.f32.f32 %v5183_v8, %v5187_v7 }
 0x38c   : > { %v2492_v18 = vsel %vm5229_vm2, %v5283_v2, %v2930_v11  ;;  %v2932_v40 = vadd.f32 -5.0, %v1996_v57  ;;  %v5338_v2 = vand.u32 2147483647, %v2206_v24  ;;  %v5340_v11 = vand.u32 2147483647, %v2209_v55  ;;  %v2291_v24 = vpop.permute.xlu0 %2290 }
 0x38d   : > { %v2493_v42 = vsel %vm5237_vm3, %v1994_v33, %v2931_v52  ;;  %v5347_v33 = vand.u32 2147483647, %v2211_v61  ;;  %v5349_v52 = vand.u32 2147483647, %v2210_v51  ;;  %v2351_v51 = vsub.f32 %v2291_v24, %v5080_v3 }
 0x38e   : > { %v2494_v59 = vsel %vm5251_vm4, %v1996_v57, %v2932_v40  ;;  %v2213_v57 = vsub.f32 %v5249_v20, %v5072_v56  ;;  %v5367_v20 = vand.u32 2147483647, %v2356_v23  ;;  %v6128_v56 = vmax.f32.f32 %v5133_v30, %v5173_v0 }
 0x38f   : > { %v2352_v10 = vsub.f32 %v2291_v24, %v5083_v45  ;;  %vm5385_vm11 = vcmp.gt.f32.partialorder %v6131_v5, 4.0  ;;  %v2376_v24 = vand.u32 2147483647, %v2344_v15  ;;  %v2383_v8 = vand.u32 2147483647, %v2351_v51 }
 0x390   : > { %v2000_v40 = vpop.f32.mrb[4].mxu0  ;;  %vm5375_vm10 = vcmp.gt.f32.partialorder %v6128_v56, 4.0  ;;  %v2358_v56 = vsub.f32 %v2303_v22, %v5083_v45  ;;  %v5403_v22 = vand.u32 2147483647, %v2213_v57  ;;  %v2307_v49 = vpop.permute.xlu0 %2306  ;;  %v5413_v15 = vand.u32 2147483647, %v2357_v32 }
 0x391   : > { %v2933_v55 = vadd.f32 -5.0, %v2000_v40  ;;  %v2002_v14 = vpop.f32.mrb[5].mxu0 }
 0x392   : > { %v2934_v61 = vadd.f32 -5.0, %v2002_v14  ;;  %v2004_v39 = vpop.f32.mrb[6].mxu0  ;;  %v5421_v57 = vand.u32 2147483647, %v2358_v56 }
 0x393   : > { %v2495_v12 = vsel %vm5314_vm5, %v2000_v40, %v2933_v55  ;;  %v2935_v50 = vadd.f32 -5.0, %v2004_v39  ;;  %v2006_v37 = vpop.f32.mrb[7].mxu0  ;;  %v2375_v55 = vand.u32 2147483647, %v2343_v41  ;;  %v5401_v41 = vand.u32 2147483647, %v2212_v17 }
 0x394   : > { %v2524_v29 = vmax.f32 %v2491_v1, %v2495_v12  ;;  %v2496_v26 = vsel %vm5318_vm6, %v2002_v14, %v2934_v61  ;;  %v2936_v23 = vadd.f32 -5.0, %v2006_v37  ;;  %v6134_v1 = vmax.f32.f32 %v5185_v6, %v5197_v48  ;;  %v5407_v61 = vpop.permute.xlu1 %2163 }
 0x395   : > { %v2545_v30 = vmax.f32 %v2492_v18, %v2496_v26  ;;  %v2497_v0 = vsel %vm5306_vm0, %v2004_v39, %v2935_v50  ;;  %v5405_v18 = vand.u32 2147483647, %v2214_v13  ;;  %v2417_v6 = vmax.f32.f32 %v5269_v35, %v5310_v9 }
 0x396   : > { %vm5395_vm12 = vcmp.gt.f32.partialorder %v6134_v1, 4.0  ;;  %v2525_v7 = vmax.f32 %v2493_v42, %v2497_v0  ;;  %v2498_v14 = vsel %vm5325_vm7, %v2006_v37, %v2936_v23  ;;  %v2418_v48 = vmax.f32.f32 %v5275_v21, %v5331_v28 }
 0x397   : > { %v2546_v39 = vmax.f32 %v2494_v59, %v2498_v14  ;;  %v2384_v42 = vand.u32 2147483647, %v2352_v10  ;;  %v2419_v17 = vmax.f32.f32 %v5340_v11, %v5357_v34  ;;  %v2420_v59 = vmax.f32.f32 %v5349_v52, %v5367_v20 }
 0x398   : > { %v2010_v37 = vpop.f32.mrb[8].mxu0  ;;  %v5415_v19 = vpop.f32.mrb[0].mxu1  ;;  %v6137_v35 = vmax.f32.f32 %v5211_v4, %v5215_v36  ;;  %v2407_v28 = vmax.f32.f32 %v5273_v62, %v2375_v55  ;;  %v2408_v11 = vmax.f32.f32 %v5277_v27, %v2376_v24  ;;  %v2415_v34 = vmax.f32.f32 %v5336_v31, %v2383_v8 }
 0x399   : > { %v2937_v13 = vadd.f32 -5.0, %v2010_v37  ;;  %v2012_v32 = vpop.f32.mrb[9].mxu0  ;;  %v5430_v9 = vpop.f32.mrb[1].mxu1  ;;  %v2359_v10 = vsub.f32 %v2307_v49, %v5080_v3  ;;  %v2360_v4 = vsub.f32 %v2307_v49, %v5083_v45  ;;  %v2416_v62 = vmax.f32.f32 %v5338_v2, %v2384_v42 }
 0x39a   : > { %vm5426_vm13 = vcmp.gt.f32.partialorder %v6137_v35, 4.0  ;;  %v2938_v51 = vadd.f32 -5.0, %v2012_v32  ;;  %v2014_v12 = vpop.f32.mrb[10].mxu0  ;;  %v5435_v50 = vpop.f32.mrb[2].mxu1  ;;  %v6140_v55 = vmax.f32.f32 %v5213_v43, %v5221_v53  ;;  %v2421_v2 = vmax.f32.f32 %v5347_v33, %v5413_v15 }
 0x39b   : > { %v2499_v36 = vsel %vm5363_vm8, %v2010_v37, %v2937_v13  ;;  %v2939_v26 = vadd.f32 -5.0, %v2014_v12  ;;  %v2016_v23 = vpop.f32.mrb[11].mxu0  ;;  %v5441_v5 = vpop.f32.mrb[3].mxu1  ;;  %v2422_v25 = vmax.f32.f32 %v5401_v41, %v5421_v57  ;;  %v6146_v53 = vmax.f32.f32 %v5203_v16, %v5207_v54 }
 0x39c   : > { %v2526_v27 = vmax.f32 %v2524_v29, %v2499_v36  ;;  %v2500_v31 = vsel %vm5375_vm10, %v2012_v32, %v2938_v51  ;;  %vm5449_vm9 = vcmp.gt.f32.partialorder %v6140_v55, 4.0  ;;  %v2940_v0 = vadd.f32 -5.0, %v2016_v23  ;;  %v5487_v16 = vpop.permute.xlu1 %2310 }
 0x39d   : > { %v2547_v29 = vmax.f32 %v2545_v30, %v2500_v31  ;;  %v2501_v43 = vsel %vm5385_vm11, %v2014_v12, %v2939_v26  ;;  %vm5469_vm15 = vcmp.gt.f32.partialorder %v6146_v53, 4.0  ;;  %v2945_v47 = vadd.f32 -5.0, %v5415_v19 }
 0x39e   : > { %v2527_v46 = vmax.f32 %v2525_v7, %v2501_v43  ;;  %v6149_v33 = vmax.f32.f32 %v5285_v63, %v5265_v38  ;;  %v2502_v40 = vsel %vm5395_vm12, %v2016_v23, %v2940_v0  ;;  %vm5483_vm2 = vcmp.gt.f32.partialorder %v2407_v28, 4.0  ;;  %v6154_v63 = vld [vmem:[#allocation96_spill] sm:$0xff] }
 0x39f   : > { %v5489_v54 = vand.u32 2147483647, %v2359_v10  ;;  %v5491_v14 = vand.u32 2147483647, %v2360_v4  ;;  %v2548_v7 = vmax.f32 %v2546_v39, %v2502_v40  ;;  %v6155_v38 = vmax.f32.f32 %v5287_v60, %v6154_v63  ;;  %v6166_v39 = vld [vmem:[#allocation18_spill] sm:$0xff] }
 0x3a0   : > { %vm5477_vm1 = vcmp.gt.f32.partialorder %v6149_v33, 4.0  ;;  %vm5500_vm4 = vcmp.gt.f32.partialorder %v2408_v11, 4.0  ;;  %v2020_v49 = vpop.f32.mrb[12].mxu0  ;;  %v2040_v42 = vpop.f32.mrb[4].mxu1  ;;  %vm5504_vm0 = vcmp.gt.f32.partialorder %v2415_v34, 4.0  ;;  %vm5508_vm5 = vcmp.gt.f32.partialorder %v2416_v62, 4.0 }
 0x3a1   : > { %vm5496_vm3 = vcmp.gt.f32.partialorder %v6155_v38, 4.0  ;;  %vm5512_vm6 = vcmp.gt.f32.partialorder %v2417_v6, 4.0  ;;  %v2215_v57 = vsub.f32 %v5407_v61, %v6166_v39  ;;  %v2946_v13 = vadd.f32 -5.0, %v5430_v9  ;;  %v2022_v32 = vpop.f32.mrb[13].mxu0  ;;  %v2042_v28 = vpop.f32.mrb[5].mxu1  ;;  %v6169_v34 = vld [vmem:[#allocation95_spill] sm:$0xff] }
 0x3a2   : > { %v2941_v35 = vadd.f32 -5.0, %v2020_v49  ;;  %vm5519_vm7 = vcmp.gt.f32.partialorder %v2418_v48, 4.0  ;;  %v2216_v51 = vsub.f32 %v5407_v61, %v6169_v34  ;;  %v2361_v6 = vsub.f32 %v5487_v16, %v5080_v3  ;;  %v2024_v36 = vpop.f32.mrb[14].mxu0  ;;  %v2044_v26 = vpop.f32.mrb[6].mxu1 }
 0x3a3   : > { %v2507_v12 = vsel %vm5426_vm13, %v5415_v19, %v2945_v47  ;;  %v2947_v10 = vadd.f32 -5.0, %v5435_v50  ;;  %v2942_v4 = vadd.f32 -5.0, %v2022_v32  ;;  %vm5531_vm8 = vcmp.gt.f32.partialorder %v2419_v17, 4.0  ;;  %v2026_v19 = vpop.f32.mrb[15].mxu0  ;;  %v2046_v31 = vpop.f32.mrb[7].mxu1 }
 0x3a4   : > { %v2362_v23 = vsub.f32 %v5487_v16, %v5083_v45  ;;  %v2948_v61 = vadd.f32 -5.0, %v5441_v5  ;;  %v2503_v3 = vsel %vm5483_vm2, %v2020_v49, %v2941_v35  ;;  %v2949_v62 = vadd.f32 -5.0, %v2040_v42 }
 0x3a5   : > { %v2943_v21 = vadd.f32 -5.0, %v2024_v36  ;;  %v2528_v55 = vmax.f32 %v2526_v27, %v2503_v3  ;;  %v2504_v0 = vsel %vm5500_vm4, %v2022_v32, %v2942_v4  ;;  %v2950_v17 = vadd.f32 -5.0, %v2042_v28 }
 0x3a6   : > { %v2944_v58 = vadd.f32 -5.0, %v2026_v19  ;;  %vm5542_vm10 = vcmp.gt.f32.partialorder %v2421_v2, 4.0  ;;  %v2508_v45 = vsel %vm5449_vm9, %v5430_v9, %v2946_v13  ;;  %v2549_v53 = vmax.f32 %v2547_v29, %v2504_v0 }
 0x3a7   : > { %v2505_v47 = vsel %vm5456_vm14, %v2024_v36, %v2943_v21  ;;  %v2951_v33 = vadd.f32 -5.0, %v2044_v26  ;;  %vm5551_vm11 = vcmp.gt.f32.partialorder %v2422_v25, 4.0  ;;  %v2530_v40 = vmax.f32 %v2528_v55, %v2507_v12 }
 0x3a8   : > { %v2529_v30 = vmax.f32 %v2527_v46, %v2505_v47  ;;  %v2506_v2 = vsel %vm5469_vm15, %v2026_v19, %v2944_v58  ;;  %v2952_v16 = vadd.f32 -5.0, %v2046_v31  ;;  %v2509_v56 = vsel %vm5477_vm1, %v5435_v50, %v2947_v10  ;;  %v2050_v38 = vpop.f32.mrb[8].mxu1 }
 0x3a9   : > { %v2511_v9 = vsel %vm5504_vm0, %v2040_v42, %v2949_v62  ;;  %v2551_v1 = vmax.f32 %v2549_v53, %v2508_v45  ;;  %v2550_v29 = vmax.f32 %v2548_v7, %v2506_v2  ;;  %v2510_v25 = vsel %vm5496_vm3, %v5441_v5, %v2948_v61  ;;  %v2052_v15 = vpop.f32.mrb[9].mxu1 }
 0x3aa   : > { %v2532_v63 = vmax.f32 %v2530_v40, %v2511_v9  ;;  %v2512_v46 = vsel %vm5508_vm5, %v2042_v28, %v2950_v17  ;;  %v2531_v24 = vmax.f32 %v2529_v30, %v2509_v56  ;;  %v2513_v8 = vsel %vm5512_vm6, %v2044_v26, %v2951_v33  ;;  %v2054_v41 = vpop.f32.mrb[10].mxu1 }
 0x3ab   : > { %v2553_v44 = vmax.f32 %v2551_v1, %v2512_v46  ;;  %v2552_v50 = vmax.f32 %v2550_v29, %v2510_v25  ;;  %v2953_v49 = vadd.f32 -5.0, %v2050_v38  ;;  %v2514_v7 = vsel %vm5519_vm7, %v2046_v31, %v2952_v16  ;;  %v2056_v35 = vpop.f32.mrb[11].mxu1 }
 0x3ac   : > { %v2533_v42 = vmax.f32 %v2531_v24, %v2513_v8  ;;  %vm2452_vm12 = vcmp.gt.f32.partialorder %v2420_v59, 4.0  ;;  %v2954_v5 = vadd.f32 -5.0, %v2052_v15  ;;  %v2247_v39 = vand.u32 2147483647, %v2215_v57  ;;  %v6176_v24 = vld [vmem:[#allocation19_spill] sm:$0xff] }
 0x3ad   : > { %v2554_v37 = vmax.f32 %v2552_v50, %v2514_v7  ;;  %v2515_v13 = vsel %vm5531_vm8, %v2050_v38, %v2953_v49  ;;  %v2955_v60 = vadd.f32 -5.0, %v2054_v41  ;;  %v2393_v28 = vand.u32 2147483647, %v2361_v6  ;;  %v2523_v50 = vld [vmem:[#allocation2] sm:$0x3] }
 0x3ae   : > { %v2534_v32 = vmax.f32 %v2532_v63, %v2515_v13  ;;  %v2516_v34 = vsel %vm2452_vm12, %v2052_v15, %v2954_v5  ;;  %v2956_v12 = vadd.f32 -5.0, %v2056_v35  ;;  %v2248_v10 = vand.u32 2147483647, %v2216_v51  ;;  %v2594_v7 = vld [vmem:[#allocation3] sm:$0x3] (!%p2961_p6) }
 0x3af   : > { %v2394_v11 = vand.u32 2147483647, %v2362_v23  ;;  %v2555_v4 = vmax.f32 %v2553_v44, %v2516_v34  ;;  %v2517_v52 = vsel %vm5542_vm10, %v2054_v41, %v2955_v60  ;;  %v2423_v20 = vmax.f32.f32 %v5403_v22, %v5489_v54  ;;  %v6178_v60 = vld [vmem:[#allocation17_spill] sm:$0xff] (!%p2961_p6) }
 0x3b0   : > { %v2535_v59 = vmax.f32 %v2533_v42, %v2517_v52  ;;  %v2518_v57 = vsel %vm5551_vm11, %v2056_v35, %v2956_v12  ;;  %v2424_v36 = vmax.f32.f32 %v5405_v18, %v5491_v14  ;;  %v2425_v6 = vmax.f32.f32 %v2247_v39, %v2393_v28  ;;  %v2060_v48 = vpop.f32.mrb[12].mxu1 }
 0x3b1   : > { %v2556_v26 = vmax.f32 %v2554_v37, %v2518_v57  ;;  %v2426_v61 = vmax.f32.f32 %v2248_v10, %v2394_v11  ;;  %v2957_v51 = vadd.f32 -5.0, %v2060_v48  ;;  %v2062_v23 = vpop.f32.mrb[13].mxu1  ;;  %vm2455_vm13 = vcmp.gt.f32.partialorder %v2423_v20, 4.0 }
 0x3b2   : > { %v2958_v3 = vadd.f32 -5.0, %v2062_v23  ;;  %v2064_v62 = vpop.f32.mrb[14].mxu1  ;;  %vm2456_vm9 = vcmp.gt.f32.partialorder %v2424_v36, 4.0  ;;  %vm2457_vm14 = vcmp.gt.f32.partialorder %v2425_v6, 4.0  ;;  %v3228_v40 = vmov 1966171168  }
 0x3b3   : > { %v2519_v21 = vsel %vm2455_vm13, %v2060_v48, %v2957_v51  ;;  %v2959_v19 = vadd.f32 -5.0, %v2064_v62  ;;  %v2066_v22 = vpop.f32.mrb[15].mxu1  ;;  %vm2458_vm15 = vcmp.gt.f32.partialorder %v2426_v61, 4.0  ;;  %v2570_v30 = vunpack.c.l.s4 %v3228_v40 }
 0x3b4   : > { %v2536_v54 = vmax.f32 %v2534_v32, %v2519_v21  ;;  %v2520_v31 = vsel %vm2456_vm9, %v2062_v23, %v2958_v3  ;;  %v2960_v55 = vadd.f32 -5.0, %v2066_v22  ;;  %v6177_v15 = vlaneseq  ;;  %v6179_v32 = vld [vmem:[#allocation20_spill] sm:$0xff] (!%p2961_p6) }
 0x3b5   : > { %v2557_v0 = vmax.f32 %v2555_v4, %v2520_v31  ;;  %v2521_v18 = vsel %vm2457_vm14, %v2064_v62, %v2959_v19  ;;  %v2571_v1 = vunpack.c.0.s8 %v2570_v30  ;;  %v2598_v37 = vadd.f32 (!%p2961_p6), 1.0, %v2594_v7 }
 0x3b6   : > { %v2537_v14 = vmax.f32 %v2535_v59, %v2521_v18  ;;  %v2522_v17 = vsel %vm2458_vm15, %v2066_v22, %v2960_v55  ;;  %vm2587_vm1 = vcmp.lt.s32.totalorder %v6177_v15, 256  ;;  %vm2612_vm2 = vcmask (!%p2961_p6), 1040384  }
 0x3b7   : > { %v2558_v58 = vmax.f32 %v2556_v26, %v2522_v17  ;;  %v2574_v38 = vsub.s32 %v2571_v1, %v6176_v24  ;;  %v2624_v34 = vrot.slane (!%p2961_p6), %v2594_v7, %v6178_v60  ;;  %v2628_v10 = vrot.slane (!%p2961_p6), %v2594_v7, %v6179_v32 }
 0x3b8   : > { %v2538_v43 = vmax.f32 %v2536_v54, %v2537_v14  ;;  %vm2654_vm3 = vcmask (!%p2961_p6), 7168   ;;  %vm2656_vm4 = vcmask (!%p2961_p6), 15360   ;;  %vm2658_vm0 = vcmask (!%p2961_p6), 16384  }
 0x3b9   : > { %v2559_v45 = vmax.f32 %v2557_v0, %v2558_v58  ;;  %v2631_v26 = vsel (!%p2961_p6), %vm2612_vm2, %v2624_v34, 0.0  ;;  %v2632_v6 = vsel (!%p2961_p6), %vm2612_vm2, %v2628_v10, 0.0 }
 0x3ba   : > { %v2539_v53 = vrot.slane %v2538_v43, 4  ;;  %v2633_v61 = vadd.f32 (!%p2961_p6), %v2632_v6, %v2631_v26 }
 0x3bb   : > { %v2560_v47 = vrot.slane %v2559_v45, 4 }
 0x3bc   : > { %v2540_v33 = vmax.f32 %v2538_v43, %v2539_v53 }
 0x3bd   : > { %v2561_v27 = vmax.f32 %v2559_v45, %v2560_v47 }
 0x3be   : > { %v2541_v2 = vrot.slane %v2540_v33, 2 }
 0x3bf   : > { %v2562_v16 = vrot.slane %v2561_v27, 2 }
 0x3c0   : > { %v2542_v56 = vmax.f32 %v2540_v33, %v2541_v2 }
 0x3c1   : > { %v2563_v9 = vmax.f32 %v2561_v27, %v2562_v16 }
 0x3c2   : > { %v2543_v29 = vrot.slane %v2542_v56, 1 }
 0x3c3   : > { %v2564_v25 = vrot.slane %v2563_v9, 1 }
 0x3c4   : > { %v2544_v63 = vmax.f32 %v2542_v56, %v2543_v29 }
 0x3c5   : > { %v2565_v46 = vmax.f32 %v2563_v9, %v2564_v25 }
 0x3c7   : > { %v2568_v44 = vcombine.low %v2544_v63, %v2565_v46 }
 0x3c9   : > { %v2575_v8 = vrot.slane %v2568_v44, %v2574_v38  ;;  %2593 = sbr.rel (%p2961_p6) target bundleno = 1147 (0x47b), region = 94 }
 0x3cb   : > { %v2582_v49 = vrot.slane %v2575_v8, %v2574_v38 }
 0x3cd   : > { %v2584_v42 = vmax.f32 %v2523_v50, %v2582_v49 }
 0x3cf   : > { %2589 = vst.msk [vmem:[#allocation2] sm:$0x3] %vm2587_vm1, %v2584_v42 }
 0x3d6   : > { %v2595_v5 = vld [vmem:[#allocation2] sm:$0x3] }
 0x3d7   : > { %v2596_v41 = vmul.f32 2.0, %v2595_v5 }
 0x3d9   : > { %v2597_v39 = vsub.f32 2.0, %v2596_v41 }
 0x3db   : > { %v2599_v13 = vsub.f32 %v2598_v37, %v2597_v39  ;;  %v2641_v35 = vrot.slane %v2597_v39, %v6178_v60  ;;  %v2645_v28 = vrot.slane %v2597_v39, %v6179_v32 }
 0x3dd   : > { %v2600_v12 = vmax.f32 %v2599_v13, 0.0  ;;  %v2648_v11 = vsel %vm2612_vm2, %v2641_v35, 0.0  ;;  %v2649_v4 = vsel %vm2612_vm2, %v2645_v28, 0.0 }
 0x3de   : > { %v2650_v52 = vadd.f32 %v2649_v4, %v2648_v11 }
 0x3df   : > { %v2605_v20 = vrot.slane %v2600_v12, %v6178_v60  ;;  %v2609_v59 = vrot.slane %v2600_v12, %v6179_v32 }
 0x3e0   : > { %2651 = vadd.xlane.f32.xlu1 %v2650_v52 }
 0x3e1   : > { %v2613_v57 = vsel %vm2612_vm2, %v2605_v20, 0.0  ;;  %v2614_v36 = vsel %vm2612_vm2, %v2609_v59, 0.0 }
 0x3e2   : > { %v2615_v48 = vadd.f32 %v2614_v36, %v2613_v57 }
 0x3e4   : > { %2616 = vadd.xlane.f32.xlu0 %v2615_v48 }
 0x3e8   : > { %2634 = vadd.xlane.f32.xlu0 %v2633_v61 }
 0x46d   : > { %v2652_v23 = vpop.xlane.xlu1 %2651 }
 0x46e   : > { %v2653_v62 = vmul.f32 0.00390625, %v2652_v23 }
 0x471   : > { %v2617_v51 = vpop.xlane.xlu0 %2616 }
 0x472   : > { %v2619_v21 = vmul.f32 0.00390625, %v2617_v51 }
 0x475   : > { %v2635_v3 = vpop.xlane.xlu0 %2634 }
 0x476   : > { %v2636_v19 = vmul.f32 0.00390625, %v2635_v3 }
 0x478   : > { %v2655_v22 = vsel %vm2654_vm3, %v2619_v21, %v2636_v19 }
 0x479   : > { %v2657_v54 = vsel %vm2656_vm4, %v2655_v22, %v2653_v62 }
 0x47a   : > { %2659 = vst.msk [vmem:[%s3454_s21] sm:$0x1] %vm2658_vm0, %v2657_v54 }
 0x47b PF: > { %s2962_s2 = sshll.u32 %s3209_s30, 4  ;;  %s2673_s17 = sshll.u32 %s3454_s21, 4  ;;  %s2674_s17 = int_to_ptr.vmem [resolvable:$true] %s2673_s17 }
 0x47c   : > { %s5598_s11 = scalar_lea.hbm %s5661_s7, %s2962_s2  ;;  %s6180_s15 = sand.u32 1, %s3189_s25  }
 0x47d   : > { %s2661_s27 = scalar_lea.sflag [#allocation6], %s6180_s15  ;;  %s3111_s13 = scalar_lea.vmem %s2674_s17, 16 }
 0x47e   : > { %p3112_p8 = scmp.ne.s32.totalorder %s2674_s17, %s3111_s13  ;;  %s3229_s18 = smov [#allocation5]  }
 0x47f   : > { %s3115_s8 = sshll.u32 %s3229_s18, 4  ;;  %s3116_s8 = int_to_ptr.vmem [resolvable:$false] %s3115_s8 }
 0x480   : > { %p3113_p9 = pnand %p3112_p8, %p3342_p7  ;;  %s3117_s9 = scalar_lea.vmem %s3116_s8, 32 }
 0x481   : > { %p3118_p11 = scmp.lt.s32.totalorder %s2674_s17, %s3116_s8  ;;  %p3119_p13 = scmp.lt.s32.totalorder %s3117_s9, %s3111_s13 }
 0x482   : > { %p3114_p10 = pneg %p3113_p9 }
 0x483   : > { %p3120_p0 = por %p3119_p13, %p3118_p11 }
 0x485   : > { %p3121_p1 = pnand %p3120_p0, %p3114_p10 }
 0x487   : > { %3124 = shalt.err (!%p3121_p1)
}
 0x488   : > { %s3125_s30 = scalar_lea.hbm %s5598_s11, 16  ;;  %s3129_s14 = scalar_lea.hbm %s5661_s7, 32 }
 0x489   : > { %p3126_p2 = scmp.ne.s32.totalorder %s5598_s11, %s3125_s30  ;;  %p3130_p5 = scmp.lt.u32.totalorder %s5598_s11, %s5661_s7 }
 0x48a   : > { %p3131_p6 = scmp.lt.u32.totalorder %s3129_s14, %s3125_s30  ;;  %p3133_p9 = scmp.lt.u32.totalorder %s3125_s30, %s5598_s11 }
 0x48b   : > { %p3127_p3 = pnand %p3126_p2, %p3342_p7 }
 0x48c   : > { %p3132_p8 = por %p3131_p6, %p3130_p5 }
 0x48d   : > { %p3128_p4 = pneg %p3127_p3 }
 0x48e   : > { %p3134_p10 = por %p3133_p9, %p3132_p8 }
 0x490   : > { %p3135_p11 = pnand %p3134_p10, %p3128_p4 }
 0x492   : > { %3138 = shalt.err (!%p3135_p11)
}
 0x493   : > { %2978 = dma.vmem_to_hbm [thread:$0]  (%p3342_p7), %s2674_s17, 16, %s5598_s11, %s2661_s27  }
 0x494 PF: > { %p2984_p13 = scmp.ge.s32.totalorder %s3221_s10, 2  ;;  %s2685_s16 = sand.u32 1, %s3185_s24  }
 0x495   : > { %s2686_s21 = scalar_lea.sflag [#allocation6], %s2685_s16 }
 0x496   : > { %p2981_p0 = pnand %p2984_p13, %p3350_p12 }
 0x498   : > { %3180 = dma.done.wait (!%p2981_p0), %s2686_s21, 16  }
 0x499   : > { %3182 = vsyncadd (!%p2981_p0), %s2686_s21, 4294967280  ;;  %s20_s10 = sadd.s32 1, %s3221_s10   ;;  %s6182_s2 = sld [smem:[#allocation8_spill]] }
 0x49a   : > { %p17_p1 = scmp.ge.s32.totalorder %s20_s10, 6   ;;  %s6183_s26 = sld [smem:[#allocation15_spill]] }
 0x49b   : > { %s6184_s27 = sld [smem:[#allocation9_spill]]  ;;  %s6185_s28 = sld [smem:[#allocation16_spill]] }
 0x49c   : > { %s6186_s29 = sld [smem:[#allocation10_spill]]  ;;  %s6187_s30 = sld [smem:[#allocation11_spill]] }
 0x49d   : > { %s6188_s8 = sld [smem:[#allocation12_spill]]  ;;  %s6189_s9 = sld [smem:[#allocation13_spill]] }
 0x49e   : > { %s6190_s24 = smov %s3189_s25  ;;  %19 = sbr.rel (!%p17_p1) target bundleno = 8 (0x8), region = 152 }
 0x49f   : > { %s6191_s25 = smov %s6182_s2 }
 0x4a5   :  { %2690 = vsyncpa [#allocation6], 1 }
 0x4a6   :  { %2692 = vsyncpa [#allocation6 + $0x1], 1 }

</bundles_post_ra>
